<compile_context>
chip_gen: v7x
topology: tpu7x:2x2x1
jax: 0.10.0
libtpu: 0.0.40
codegen_flags: <defaults>
</compile_context>

<pallas_src>
import functools
import math
from types import SimpleNamespace

import jax
import jax.numpy as jnp
from jax.experimental import pallas as pl
from jax.experimental.pallas import tpu as pltpu


# ----------------------------------------------------------------------------
# In-kernel helpers
# ----------------------------------------------------------------------------
def _ln(x, g, b, eps=1e-5):
    m = jnp.mean(x, axis=-1, keepdims=True)
    v = jnp.mean((x - m) ** 2, axis=-1, keepdims=True)
    return (x - m) * jax.lax.rsqrt(v + eps) * g + b


def _softmax_rows(s):
    mx = jnp.max(s, axis=-1, keepdims=True)
    e = jnp.exp(s - mx)
    z = jnp.sum(e, axis=-1, keepdims=True)
    return e * pl.reciprocal(z, approx=True)


def _block_body(x, bias, heads, dim_head,
                ln1g, ln1b, wqkv, bqkv, wo, bo,
                ln2g, ln2b, fw1, fb1, fw2, fb2,
                score_only_cls=False):
    """One pre-norm transformer block (attention + FFN); heads unrolled in-kernel."""
    inner = heads * dim_head
    scale = 1.0 / math.sqrt(dim_head)
    h = _ln(x, ln1g, ln1b)
    qkv = jnp.dot(h, wqkv, preferred_element_type=jnp.float32) + bqkv
    proj = bo                                                   # (1, D), broadcasts up
    for hd in range(heads):
        q = qkv[:, hd * dim_head:(hd + 1) * dim_head]
        k = qkv[:, inner + hd * dim_head:inner + (hd + 1) * dim_head]
        v = qkv[:, 2 * inner + hd * dim_head:2 * inner + (hd + 1) * dim_head]
        s = jax.lax.dot_general(q, k, (((1,), (1,)), ((), ())),
                                preferred_element_type=jnp.float32) * scale
        if bias is not None:
            s = s + bias                                        # (N,N) + (1,N) key mask
        p = _softmax_rows(s)
        oh = jnp.dot(p, v, preferred_element_type=jnp.float32)
        proj = proj + jnp.dot(oh, wo[hd * dim_head:(hd + 1) * dim_head, :],
                              preferred_element_type=jnp.float32)
    x = x + proj                                                # attention residual
    if score_only_cls:
        x = x[0:1, :]                                           # only cls row is consumed
    h2 = _ln(x, ln2g, ln2b)
    h2 = jnp.maximum(jnp.dot(h2, fw1, preferred_element_type=jnp.float32) + fb1, 0.0)
    return x + jnp.dot(h2, fw2, preferred_element_type=jnp.float32) + fb2


# ----------------------------------------------------------------------------
# Kernel 1: patch projection + cls token + img_embedder MLP (fused, one MLP pass)
# ----------------------------------------------------------------------------
def _image_embed_kernel(patch_ref, cls_ref, pw_ref, pb_ref,
                        w1_ref, b1_ref, g_ref, bb_ref, w2_ref, b2_ref,
                        o_ref, feat_scr):
    feat_scr[0:1, :] = cls_ref[...]
    feat_scr[1:, :] = (jnp.dot(patch_ref[0], pw_ref[...],
                               preferred_element_type=jnp.float32) + pb_ref[...])
    t = feat_scr[...]                                           # (1+P, feat)
    h = jnp.dot(t, w1_ref[...], preferred_element_type=jnp.float32) + b1_ref[...]
    h = jnp.maximum(_ln(h, g_ref[...], bb_ref[...]), 0.0)
    o_ref[0] = (jnp.dot(h, w2_ref[...], preferred_element_type=jnp.float32)
                + b2_ref[...]).astype(o_ref.dtype)


def image_embed_pallas(enc_p, mlp_p, img, patch=8):
    """image_encoder (+ detach, forward no-op) + img_embedder fused into one call."""
    B, C, H, W = img.shape
    P = (H // patch) * (W // patch)
    patch_dim = C * patch * patch
    patches = img.reshape(B, C, H // patch, patch, W // patch, patch)
    patches = patches.transpose(0, 2, 4, 1, 3, 5).reshape(B, P, patch_dim)

    feat = enc_p["proj"]["w"].shape[1]
    emb = mlp_p["w2"].shape[1]

    weights = [
        enc_p["cls"].reshape(1, feat),
        enc_p["proj"]["w"], enc_p["proj"]["b"].reshape(1, -1),
        mlp_p["w1"], mlp_p["b1"].reshape(1, -1),
        mlp_p["ln_g"].reshape(1, -1), mlp_p["ln_b"].reshape(1, -1),
        mlp_p["w2"], mlp_p["b2"].reshape(1, -1),
    ]
    weights = [jnp.asarray(w, jnp.float32) for w in weights]

    return pl.pallas_call(
        _image_embed_kernel,
        grid=(B,),
        in_specs=([pl.BlockSpec((1, P, patch_dim), lambda b: (b, 0, 0))]
                  + [pl.BlockSpec(w.shape, lambda b: (0, 0)) for w in weights]),
        out_specs=pl.BlockSpec((1, 1 + P, emb), lambda b: (b, 0, 0)),
        out_shape=jax.ShapeDtypeStruct((B, 1 + P, emb), jnp.float32),
        scratch_shapes=[pltpu.VMEM((1 + P, feat), jnp.float32)],
        compiler_params=pltpu.CompilerParams(dimension_semantics=("parallel",)),
    )(patches.astype(jnp.float32), *weights)


# ----------------------------------------------------------------------------
# Kernel 2: aux_embedder MLP + masked text_encoder transformer block (fused)
# ----------------------------------------------------------------------------
def _text_kernel(aux_ref, bias_ref, cls_ref,
                 mw1, mb1, mg, mbb, mw2, mb2,
                 ln1g, ln1b, wqkv, bqkv, wo, bo,
                 ln2g, ln2b, fw1, fb1, fw2, fb2,
                 o_ref, x_scr, *, heads, dim_head):
    # aux_embedder: linear -> LayerNorm -> ReLU -> linear
    h = jnp.dot(aux_ref[0], mw1[...], preferred_element_type=jnp.float32) + mb1[...]
    h = jnp.maximum(_ln(h, mg[...], mbb[...]), 0.0)
    tok = jnp.dot(h, mw2[...], preferred_element_type=jnp.float32) + mb2[...]   # (S, D)

    x_scr[0:1, :] = cls_ref[...]                                # prepend cls token
    x_scr[1:, :] = tok
    x = _block_body(x_scr[...], bias_ref[0], heads, dim_head,
                    ln1g[...], ln1b[...], wqkv[...], bqkv[...], wo[...], bo[...],
                    ln2g[...], ln2b[...], fw1[...], fb1[...], fw2[...], fb2[...])
    o_ref[0] = x.astype(o_ref.dtype)


def text_embed_pallas(mlp_p, tr_p, aux, aux_mask, heads, dim_head):
    B, S, Din = aux.shape
    D = mlp_p["w2"].shape[1]
    N = S + 1

    mask_full = jnp.concatenate([jnp.ones((B, 1), dtype=bool), aux_mask], axis=1)
    bias = jnp.where(mask_full, 0.0, -1e9).astype(jnp.float32)[:, None, :]   # (B,1,N)

    weights = [
        tr_p["cls"].reshape(1, D),
        mlp_p["w1"], mlp_p["b1"].reshape(1, -1),
        mlp_p["ln_g"].reshape(1, -1), mlp_p["ln_b"].reshape(1, -1),
        mlp_p["w2"], mlp_p["b2"].reshape(1, -1),
        tr_p["ln1_g"].reshape(1, -1), tr_p["ln1_b"].reshape(1, -1),
        tr_p["qkv"]["w"], tr_p["qkv"]["b"].reshape(1, -1),
        tr_p["out"]["w"], tr_p["out"]["b"].reshape(1, -1),
        tr_p["ln2_g"].reshape(1, -1), tr_p["ln2_b"].reshape(1, -1),
        tr_p["ff1"]["w"], tr_p["ff1"]["b"].reshape(1, -1),
        tr_p["ff2"]["w"], tr_p["ff2"]["b"].reshape(1, -1),
    ]
    weights = [jnp.asarray(w, jnp.float32) for w in weights]

    kernel = functools.partial(_text_kernel, heads=heads, dim_head=dim_head)
    return pl.pallas_call(
        kernel,
        grid=(B,),
        in_specs=([pl.BlockSpec((1, S, Din), lambda b: (b, 0, 0)),
                   pl.BlockSpec((1, 1, N), lambda b: (b, 0, 0))]
                  + [pl.BlockSpec(w.shape, lambda b: (0, 0)) for w in weights]),
        out_specs=pl.BlockSpec((1, N, D), lambda b: (b, 0, 0)),
        out_shape=jax.ShapeDtypeStruct((B, N, D), jnp.float32),
        scratch_shapes=[pltpu.VMEM((N, D), jnp.float32)],
        compiler_params=pltpu.CompilerParams(dimension_semantics=("parallel",)),
    )(aux.astype(jnp.float32), bias, *weights)


# ----------------------------------------------------------------------------
# Kernel 3: Image_to_text_attention decoder + full_attention block + score head
# ----------------------------------------------------------------------------
def _cross_score_kernel(img_ref, txt_ref, bias_ref,
                        qi_w, qi_b, kt_w, kt_b, vt_w, vt_b, oi_w, oi_b,
                        qt_w, qt_b, ki_w, ki_b, vi_w, vi_b, ot_w, ot_b,
                        cls_ref,
                        ln1g, ln1b, wqkv, bqkv, wo, bo,
                        ln2g, ln2b, fw1, fb1, fw2, fb2,
                        ws_ref, bs_ref,
                        o_ref, x_scr, *, heads, dim_head, n_img, dec_scale):
    img = img_ref[0]                                            # (P, F)
    txt = txt_ref[0]                                            # (A, F)
    bias = bias_ref[0]                                          # (1, A)

    def lin(t, w, b):
        return jnp.dot(t, w[...], preferred_element_type=jnp.float32) + b[...]

    def attend(q, k, v, add_bias):
        s = jax.lax.dot_general(q, k, (((1,), (1,)), ((), ())),
                                preferred_element_type=jnp.float32) * dec_scale
        if add_bias is not None:
            s = s + add_bias
        p = _softmax_rows(s)
        return jnp.dot(p, v, preferred_element_type=jnp.float32)

    # image tokens attend over (masked) text tokens; residual + out-proj
    imgx = img + lin(attend(lin(img, qi_w, qi_b), lin(txt, kt_w, kt_b),
                            lin(txt, vt_w, vt_b), bias), oi_w, oi_b)
    # text tokens attend over image tokens (all patches valid -> no bias)
    textx = txt + lin(attend(lin(txt, qt_w, qt_b), lin(img, ki_w, ki_b),
                             lin(img, vi_w, vi_b), None), ot_w, ot_b)

    # attention_input = [cls ; imgx ; textx], built directly in VMEM
    x_scr[0:1, :] = cls_ref[...]
    x_scr[1:1 + n_img, :] = imgx
    x_scr[1 + n_img:, :] = textx

    x = _block_body(x_scr[...], None, heads, dim_head,
                    ln1g[...], ln1b[...], wqkv[...], bqkv[...], wo[...], bo[...],
                    ln2g[...], ln2b[...], fw1[...], fb1[...], fw2[...], fb2[...],
                    score_only_cls=True)                        # (1, F)
    sc = jnp.sum(x * ws_ref[...], axis=-1, keepdims=True) + bs_ref[...]      # (1, 1)
    o_ref[0, 0] = sc.astype(o_ref.dtype)


def cross_score_pallas(dec_p, fa_p, score_p, img_tok, txt_tok, aux_mask,
                       heads, dim_head):
    """Pairwise (image i x text t) cross-attn + full_attention + score, one call."""
    I_, Pn, F = img_tok.shape
    T_, A, _ = txt_tok.shape
    N = 1 + Pn + A
    txt_bias = jnp.where(aux_mask, 0.0, -1e9).astype(jnp.float32)[:, None, :]  # (T,1,A)

    weights = []
    for name in ("q_i", "k_t", "v_t", "o_i", "q_t", "k_i", "v_i", "o_t"):
        weights.append(dec_p[name]["w"])
        weights.append(dec_p[name]["b"].reshape(1, -1))
    weights.append(fa_p["cls"].reshape(1, F))
    weights += [fa_p["ln1_g"].reshape(1, -1), fa_p["ln1_b"].reshape(1, -1),
                fa_p["qkv"]["w"], fa_p["qkv"]["b"].reshape(1, -1),
                fa_p["out"]["w"], fa_p["out"]["b"].reshape(1, -1),
                fa_p["ln2_g"].reshape(1, -1), fa_p["ln2_b"].reshape(1, -1),
                fa_p["ff1"]["w"], fa_p["ff1"]["b"].reshape(1, -1),
                fa_p["ff2"]["w"], fa_p["ff2"]["b"].reshape(1, -1)]
    weights += [score_p["w"].reshape(1, -1), score_p["b"].reshape(1, -1)]
    weights = [jnp.asarray(w, jnp.float32) for w in weights]

    kernel = functools.partial(_cross_score_kernel, heads=heads, dim_head=dim_head,
                               n_img=Pn, dec_scale=1.0 / math.sqrt(F))
    out = pl.pallas_call(
        kernel,
        grid=(I_, T_),
        in_specs=([pl.BlockSpec((1, Pn, F), lambda i, t: (i, 0, 0)),
                   pl.BlockSpec((1, A, F), lambda i, t: (t, 0, 0)),
                   pl.BlockSpec((1, 1, A), lambda i, t: (t, 0, 0))]
                  + [pl.BlockSpec(w.shape, lambda i, t: (0, 0)) for w in weights]),
        out_specs=pl.BlockSpec((1, 1, 1, 1), lambda i, t: (i, t, 0, 0)),
        out_shape=jax.ShapeDtypeStruct((I_, T_, 1, 1), jnp.float32),
        scratch_shapes=[pltpu.VMEM((N, F), jnp.float32)],
        compiler_params=pltpu.CompilerParams(
            dimension_semantics=("parallel", "parallel")),
    )(img_tok.astype(jnp.float32), txt_tok.astype(jnp.float32), txt_bias, *weights)
    return out[:, :, 0, 0]                                      # (I, T) score matrix


# ----------------------------------------------------------------------------
# Kernel 4: cls_img @ cls_emb.T similarity logits
# ----------------------------------------------------------------------------
def _cls_sim_kernel(a_ref, b_ref, o_ref):
    o_ref[...] = jax.lax.dot_general(
        a_ref[...], b_ref[...], (((1,), (1,)), ((), ())),
        preferred_element_type=jnp.float32).astype(o_ref.dtype)


def cls_similarity_pallas(cls_img, cls_emb):
    B, D = cls_img.shape
    return pl.pallas_call(
        _cls_sim_kernel,
        grid=(1,),
        in_specs=[pl.BlockSpec((B, D), lambda i: (0, 0)),
                  pl.BlockSpec((B, D), lambda i: (0, 0))],
        out_specs=pl.BlockSpec((B, B), lambda i: (0, 0)),
        out_shape=jax.ShapeDtypeStruct((B, B), jnp.float32),
    )(cls_img.astype(jnp.float32), cls_emb.astype(jnp.float32))


# ----------------------------------------------------------------------------
# JAX glue: parameter init, cross entropy, forward
# ----------------------------------------------------------------------------
def init_linear(key, din, dout, scale=0.02):
    return {
        "w": jax.random.normal(key, (din, dout), jnp.float32) * scale,
        "b": jnp.zeros((dout,), jnp.float32),
    }


def init_mlp(key, din, hidden, dout):
    k1, k2 = jax.random.split(key)
    return {
        "w1": init_linear(k1, din, hidden)["w"], "b1": jnp.zeros((hidden,)),
        "ln_g": jnp.ones((hidden,)), "ln_b": jnp.zeros((hidden,)),
        "w2": init_linear(k2, hidden, dout)["w"], "b2": jnp.zeros((dout,)),
    }


def init_transformer(key, dim, heads, dim_head, add_cls):
    inner = heads * dim_head
    ks = jax.random.split(key, 5)
    p = {
        "ln1_g": jnp.ones((dim,)), "ln1_b": jnp.zeros((dim,)),
        "qkv": init_linear(ks[0], dim, 3 * inner),
        "out": init_linear(ks[1], inner, dim),
        "ln2_g": jnp.ones((dim,)), "ln2_b": jnp.zeros((dim,)),
        "ff1": init_linear(ks[2], dim, 4 * dim),
        "ff2": init_linear(ks[3], 4 * dim, dim),
    }
    if add_cls:
        p["cls"] = jax.random.normal(ks[4], (dim,), jnp.float32) * 0.02
    return p


def init_params(key, cfg, patch_dim):
    ks = jax.random.split(key, 9)
    m, d = cfg.models, cfg.dataset
    return {
        "image_encoder": {
            "proj": init_linear(ks[0], patch_dim, d.feat_dim),
            "cls": jax.random.normal(ks[1], (d.feat_dim,), jnp.float32) * 0.02,
        },
        "img_embedder": init_mlp(ks[2], d.feat_dim, m.hidden_dim, m.emb_dim),
        "aux_embedder": init_mlp(ks[3], d.emb_dim, m.hidden_dim, m.emb_dim),
        "text_encoder": init_transformer(ks[4], m.emb_dim, m.heads,
                                         d.feat_dim // m.heads, add_cls=True),
        "decoder": {name: init_linear(k, m.emb_dim, m.emb_dim)
                    for name, k in zip(
                        ["q_i", "k_t", "v_t", "o_i", "q_t", "k_i", "v_i", "o_t"],
                        jax.random.split(ks[5], 8))},
        "full_attention": init_transformer(ks[6], m.emb_dim, m.img_heads,
                                           d.feat_dim // m.img_heads, add_cls=True),
        "score": init_linear(ks[7], m.emb_dim, 1),
    }


def cross_entropy(logits, labels):
    logz = jax.nn.logsumexp(logits, axis=-1)
    gold = jnp.take_along_axis(logits, labels[:, None], axis=-1)[:, 0]
    return jnp.mean(logz - gold)


def attention_embed_scale_forward(params, cfg, img, aux, aux_mask, labels):
    m, d = cfg.models, cfg.dataset
    heads_t, dh_t = m.heads, d.feat_dim // m.heads
    heads_i, dh_i = m.img_heads, d.feat_dim // m.img_heads

    # image_encoder -> img_embedder MLP (one kernel; detach is a forward no-op).
    img_e = image_embed_pallas(params["image_encoder"], params["img_embedder"], img)

    # cfg.models.img_transformer_depth == 0 -> image_encoder_train stage is skipped.
    # aux_embedder MLP + masked text_encoder block (one kernel).
    token_embeddings = text_embed_pallas(params["aux_embedder"],
                                         params["text_encoder"],
                                         aux, aux_mask, heads_t, dh_t)   # (B, 1+S, emb)

    cls_emb = token_embeddings[:, 0, :]
    cls_img = img_e[:, 0, :]

    # decoder + full_attention + score head fused over all (image, text) pairs.
    cross_out = cross_score_pallas(params["decoder"], params["full_attention"],
                                   params["score"],
                                   img_e[:, 1:, :], token_embeddings[:, 1:, :],
                                   aux_mask, heads_i, dh_i)              # (I, T)

    loss = m.decode * cross_entropy(cross_out, labels)
    if m.lambda_cls > 0:
        out = cls_similarity_pallas(cls_img, cls_emb)                    # (B, B)
        loss = loss + m.lambda_cls * cross_entropy(out, labels)
    else:
        out = cross_out
    return loss, out, cross_out


# ----------------------------------------------------------------------------
# Main
# ----------------------------------------------------------------------------
if __name__ == "__main__":
    cfg = SimpleNamespace(
        models=SimpleNamespace(
            emb_dim=32, hidden_dim=64, heads=4, img_heads=4,
            transformer_depth=1, img_transformer_depth=0,
            img_layers=2, emb_layers=2, image_tokens=4,
            attention_mean=False, cls_token=True, positional=False,
            max_pool=True, decode=1.0, lambda_cls=0.5, freeze_image=True),
        dataset=SimpleNamespace(feat_dim=32, emb_dim=32),
    )

    B, C, H, W, S = 2, 4, 16, 16, 8
    patch = 8
    patch_dim = C * patch * patch

    key = jax.random.PRNGKey(0)
    k_img, k_aux, k_param = jax.random.split(key, 3)

    img = jax.random.normal(k_img, (B, C, H, W), jnp.float32)
    aux = jax.random.normal(k_aux, (B, S, cfg.dataset.emb_dim), jnp.float32)
    aux_mask = jnp.ones((B, S), dtype=bool).at[1, 6:].set(False)
    labels = jnp.arange(B, dtype=jnp.int32)

    params = init_params(k_param, cfg, patch_dim)

    fwd = jax.jit(lambda p, im, ax, mk, lb:
                  attention_embed_scale_forward(p, cfg, im, ax, mk, lb))
    loss, out, cross_out = fwd(params, img, aux, aux_mask, labels)
    jax.block_until_ready((loss, out, cross_out))

    assert out.shape == (B, B) and cross_out.shape == (B, B)
    assert jnp.isfinite(loss)
    print("KERNEL_OK")
</pallas_src>

<mosaic_0001>
module attributes {stable_mosaic.version = 11 : i64} {
  func.func @_image_embed_kernel(%arg0: i32, %arg1: memref<1x4x256xf32, #tpu.memory_space<vmem>>, %arg2: memref<1x32xf32, #tpu.memory_space<vmem>>, %arg3: memref<256x32xf32, #tpu.memory_space<vmem>>, %arg4: memref<1x32xf32, #tpu.memory_space<vmem>>, %arg5: memref<32x64xf32, #tpu.memory_space<vmem>>, %arg6: memref<1x64xf32, #tpu.memory_space<vmem>>, %arg7: memref<1x64xf32, #tpu.memory_space<vmem>>, %arg8: memref<1x64xf32, #tpu.memory_space<vmem>>, %arg9: memref<64x32xf32, #tpu.memory_space<vmem>>, %arg10: memref<1x32xf32, #tpu.memory_space<vmem>>, %arg11: memref<1x5x32xf32, #tpu.memory_space<vmem>>, %arg12: memref<5x32xf32, #tpu.memory_space<vmem>>) attributes {dimension_semantics = [#tpu.dimension_semantics<parallel>], iteration_bounds = array<i64: 2>, scalar_prefetch = 0 : i64, scratch_operands = 1 : i64, tpu.core_type = #tpu.core_type<tc>, window_params = [{transform_indices = @transform_0, window_bounds = array<i64: 1, 4, 256>}, {pipeline_mode = #tpu.pipeline_mode<synchronous>, transform_indices = @transform_1, window_bounds = array<i64: 1, 32>}, {pipeline_mode = #tpu.pipeline_mode<synchronous>, transform_indices = @transform_2, window_bounds = array<i64: 256, 32>}, {pipeline_mode = #tpu.pipeline_mode<synchronous>, transform_indices = @transform_3, window_bounds = array<i64: 1, 32>}, {pipeline_mode = #tpu.pipeline_mode<synchronous>, transform_indices = @transform_4, window_bounds = array<i64: 32, 64>}, {pipeline_mode = #tpu.pipeline_mode<synchronous>, transform_indices = @transform_5, window_bounds = array<i64: 1, 64>}, {pipeline_mode = #tpu.pipeline_mode<synchronous>, transform_indices = @transform_6, window_bounds = array<i64: 1, 64>}, {pipeline_mode = #tpu.pipeline_mode<synchronous>, transform_indices = @transform_7, window_bounds = array<i64: 1, 64>}, {pipeline_mode = #tpu.pipeline_mode<synchronous>, transform_indices = @transform_8, window_bounds = array<i64: 64, 32>}, {pipeline_mode = #tpu.pipeline_mode<synchronous>, transform_indices = @transform_9, window_bounds = array<i64: 1, 32>}, {transform_indices = @transform_10, window_bounds = array<i64: 1, 5, 32>}]} {
    %c0 = arith.constant 0 : index
    %c0_0 = arith.constant 0 : index
    %0 = vector.load %arg2[%c0, %c0_0] : memref<1x32xf32, #tpu.memory_space<vmem>>, vector<1x32xf32>
    %c0_1 = arith.constant 0 : index
    %c0_2 = arith.constant 0 : index
    %1 = vector.load %arg12[%c0_1, %c0_2] : memref<5x32xf32, #tpu.memory_space<vmem>>, vector<1x32xf32>
    tpu.vector_store %arg12[%c0_1, %c0_2], %0 {strides = array<i32>} : memref<5x32xf32, #tpu.memory_space<vmem>>, vector<1x32xf32>,
    %c0_3 = arith.constant 0 : index
    %c0_4 = arith.constant 0 : index
    %c0_5 = arith.constant 0 : index
    %2 = vector.load %arg1[%c0_3, %c0_4, %c0_5] : memref<1x4x256xf32, #tpu.memory_space<vmem>>, vector<1x4x256xf32>
    %3 = vector.shape_cast %2 : vector<1x4x256xf32> to vector<4x256xf32>
    %c0_6 = arith.constant 0 : index
    %c0_7 = arith.constant 0 : index
    %4 = vector.load %arg3[%c0_6, %c0_7] : memref<256x32xf32, #tpu.memory_space<vmem>>, vector<256x32xf32>
    %cst = arith.constant dense<0.000000e+00> : vector<4x32xf32>
    %5 = tpu.matmul %3, %4, %cst {dimension_numbers = #tpu.dot_dimension_numbers<[1], [0], [0], [1], [0, 0, 1, 1], [], []>} : vector<4x256xf32>, vector<256x32xf32>, vector<4x32xf32> -> vector<4x32xf32>
    %c0_8 = arith.constant 0 : index
    %c0_9 = arith.constant 0 : index
    %6 = vector.load %arg4[%c0_8, %c0_9] : memref<1x32xf32, #tpu.memory_space<vmem>>, vector<1x32xf32>
    %7 = vector.broadcast %6 : vector<1x32xf32> to vector<4x32xf32>
    %8 = arith.addf %5, %7 : vector<4x32xf32>
    %c1 = arith.constant 1 : index
    %c0_10 = arith.constant 0 : index
    %9 = vector.load %arg12[%c1, %c0_10] : memref<5x32xf32, #tpu.memory_space<vmem>>, vector<4x32xf32>
    tpu.vector_store %arg12[%c1, %c0_10], %8 {strides = array<i32>} : memref<5x32xf32, #tpu.memory_space<vmem>>, vector<4x32xf32>,
    %c0_11 = arith.constant 0 : index
    %c0_12 = arith.constant 0 : index
    %10 = vector.load %arg12[%c0_11, %c0_12] : memref<5x32xf32, #tpu.memory_space<vmem>>, vector<5x32xf32>
    %c0_13 = arith.constant 0 : index
    %c0_14 = arith.constant 0 : index
    %11 = vector.load %arg5[%c0_13, %c0_14] : memref<32x64xf32, #tpu.memory_space<vmem>>, vector<32x64xf32>
    %cst_15 = arith.constant dense<0.000000e+00> : vector<5x64xf32>
    %12 = tpu.matmul %10, %11, %cst_15 {dimension_numbers = #tpu.dot_dimension_numbers<[1], [0], [0], [1], [0, 0, 1, 1], [], []>} : vector<5x32xf32>, vector<32x64xf32>, vector<5x64xf32> -> vector<5x64xf32>
    %c0_16 = arith.constant 0 : index
    %c0_17 = arith.constant 0 : index
    %13 = vector.load %arg6[%c0_16, %c0_17] : memref<1x64xf32, #tpu.memory_space<vmem>>, vector<1x64xf32>
    %14 = vector.broadcast %13 : vector<1x64xf32> to vector<5x64xf32>
    %15 = arith.addf %12, %14 : vector<5x64xf32>
    %c0_18 = arith.constant 0 : index
    %c0_19 = arith.constant 0 : index
    %16 = vector.load %arg7[%c0_18, %c0_19] : memref<1x64xf32, #tpu.memory_space<vmem>>, vector<1x64xf32>
    %c0_20 = arith.constant 0 : index
    %c0_21 = arith.constant 0 : index
    %17 = vector.load %arg8[%c0_20, %c0_21] : memref<1x64xf32, #tpu.memory_space<vmem>>, vector<1x64xf32>
    %cst_22 = arith.constant dense<0.000000e+00> : vector<5xf32>
    %18 = vector.multi_reduction <add>, %15, %cst_22 [1] : vector<5x64xf32> to vector<5xf32>
    %19 = vector.shape_cast %18 : vector<5xf32> to vector<5x1xf32>
    %cst_23 = arith.constant 6.400000e+01 : f32
    %20 = vector.broadcast %cst_23 : f32 to vector<5x1xf32>
    %21 = arith.divf %19, %20 : vector<5x1xf32>
    %22 = vector.broadcast %21 : vector<5x1xf32> to vector<5x64xf32>
    %23 = arith.subf %15, %22 : vector<5x64xf32>
    %24 = arith.mulf %23, %23 : vector<5x64xf32>
    %cst_24 = arith.constant dense<0.000000e+00> : vector<5xf32>
    %25 = vector.multi_reduction <add>, %24, %cst_24 [1] : vector<5x64xf32> to vector<5xf32>
    %26 = vector.shape_cast %25 : vector<5xf32> to vector<5x1xf32>
    %cst_25 = arith.constant 6.400000e+01 : f32
    %27 = vector.broadcast %cst_25 : f32 to vector<5x1xf32>
    %28 = arith.divf %26, %27 : vector<5x1xf32>
    %29 = vector.broadcast %21 : vector<5x1xf32> to vector<5x64xf32>
    %30 = arith.subf %15, %29 : vector<5x64xf32>
    %cst_26 = arith.constant 9.99999974E-6 : f32
    %31 = vector.broadcast %cst_26 : f32 to vector<5x1xf32>
    %32 = arith.addf %28, %31 : vector<5x1xf32>
    %33 = math.rsqrt %32 : vector<5x1xf32>
    %34 = vector.broadcast %33 : vector<5x1xf32> to vector<5x64xf32>
    %35 = arith.mulf %30, %34 : vector<5x64xf32>
    %36 = vector.broadcast %16 : vector<1x64xf32> to vector<5x64xf32>
    %37 = arith.mulf %35, %36 : vector<5x64xf32>
    %38 = vector.broadcast %17 : vector<1x64xf32> to vector<5x64xf32>
    %39 = arith.addf %37, %38 : vector<5x64xf32>
    %cst_27 = arith.constant 0.000000e+00 : f32
    %40 = vector.broadcast %cst_27 : f32 to vector<5x64xf32>
    %41 = arith.maximumf %39, %40 : vector<5x64xf32>
    %c0_28 = arith.constant 0 : index
    %c0_29 = arith.constant 0 : index
    %42 = vector.load %arg9[%c0_28, %c0_29] : memref<64x32xf32, #tpu.memory_space<vmem>>, vector<64x32xf32>
    %cst_30 = arith.constant dense<0.000000e+00> : vector<5x32xf32>
    %43 = tpu.matmul %41, %42, %cst_30 {dimension_numbers = #tpu.dot_dimension_numbers<[1], [0], [0], [1], [0, 0, 1, 1], [], []>} : vector<5x64xf32>, vector<64x32xf32>, vector<5x32xf32> -> vector<5x32xf32>
    %c0_31 = arith.constant 0 : index
    %c0_32 = arith.constant 0 : index
    %44 = vector.load %arg10[%c0_31, %c0_32] : memref<1x32xf32, #tpu.memory_space<vmem>>, vector<1x32xf32>
    %45 = vector.broadcast %44 : vector<1x32xf32> to vector<5x32xf32>
    %46 = arith.addf %43, %45 : vector<5x32xf32>
    %c0_33 = arith.constant 0 : index
    %c0_34 = arith.constant 0 : index
    %c0_35 = arith.constant 0 : index
    %47 = vector.load %arg11[%c0_33, %c0_34, %c0_35] : memref<1x5x32xf32, #tpu.memory_space<vmem>>, vector<1x5x32xf32>
    %48 = vector.shape_cast %47 : vector<1x5x32xf32> to vector<5x32xf32>
    %49 = vector.shape_cast %46 : vector<5x32xf32> to vector<1x5x32xf32>
    tpu.vector_store %arg11[%c0_33, %c0_34, %c0_35], %49 {strides = array<i32>} : memref<1x5x32xf32, #tpu.memory_space<vmem>>, vector<1x5x32xf32>,
    return
  }
  func.func @transform_0(%arg0: i32) -> (i32, i32, i32) {
    %c0_i32 = arith.constant 0 : i32
    %c0_i32_0 = arith.constant 0 : i32
    %c0_i32_1 = arith.constant 0 : i32
    return %arg0, %c0_i32, %c0_i32_0 : i32, i32, i32
  }
  func.func @transform_1(%arg0: i32) -> (i32, i32) {
    %c0_i32 = arith.constant 0 : i32
    %c0_i32_0 = arith.constant 0 : i32
    %c0_i32_1 = arith.constant 0 : i32
    return %c0_i32, %c0_i32_0 : i32, i32
  }
  func.func @transform_2(%arg0: i32) -> (i32, i32) {
    %c0_i32 = arith.constant 0 : i32
    %c0_i32_0 = arith.constant 0 : i32
    %c0_i32_1 = arith.constant 0 : i32
    return %c0_i32, %c0_i32_0 : i32, i32
  }
  func.func @transform_3(%arg0: i32) -> (i32, i32) {
    %c0_i32 = arith.constant 0 : i32
    %c0_i32_0 = arith.constant 0 : i32
    %c0_i32_1 = arith.constant 0 : i32
    return %c0_i32, %c0_i32_0 : i32, i32
  }
  func.func @transform_4(%arg0: i32) -> (i32, i32) {
    %c0_i32 = arith.constant 0 : i32
    %c0_i32_0 = arith.constant 0 : i32
    %c0_i32_1 = arith.constant 0 : i32
    return %c0_i32, %c0_i32_0 : i32, i32
  }
  func.func @transform_5(%arg0: i32) -> (i32, i32) {
    %c0_i32 = arith.constant 0 : i32
    %c0_i32_0 = arith.constant 0 : i32
    %c0_i32_1 = arith.constant 0 : i32
    return %c0_i32, %c0_i32_0 : i32, i32
  }
  func.func @transform_6(%arg0: i32) -> (i32, i32) {
    %c0_i32 = arith.constant 0 : i32
    %c0_i32_0 = arith.constant 0 : i32
    %c0_i32_1 = arith.constant 0 : i32
    return %c0_i32, %c0_i32_0 : i32, i32
  }
  func.func @transform_7(%arg0: i32) -> (i32, i32) {
    %c0_i32 = arith.constant 0 : i32
    %c0_i32_0 = arith.constant 0 : i32
    %c0_i32_1 = arith.constant 0 : i32
    return %c0_i32, %c0_i32_0 : i32, i32
  }
  func.func @transform_8(%arg0: i32) -> (i32, i32) {
    %c0_i32 = arith.constant 0 : i32
    %c0_i32_0 = arith.constant 0 : i32
    %c0_i32_1 = arith.constant 0 : i32
    return %c0_i32, %c0_i32_0 : i32, i32
  }
  func.func @transform_9(%arg0: i32) -> (i32, i32) {
    %c0_i32 = arith.constant 0 : i32
    %c0_i32_0 = arith.constant 0 : i32
    %c0_i32_1 = arith.constant 0 : i32
    return %c0_i32, %c0_i32_0 : i32, i32
  }
  func.func @transform_10(%arg0: i32) -> (i32, i32, i32) {
    %c0_i32 = arith.constant 0 : i32
    %c0_i32_0 = arith.constant 0 : i32
    %c0_i32_1 = arith.constant 0 : i32
    return %arg0, %c0_i32, %c0_i32_0 : i32, i32, i32
  }
}

module attributes {stable_mosaic.version = 11 : i64} {
  func.func @_cls_sim_kernel(%arg0: i32, %arg1: memref<2x32xf32, #tpu.memory_space<vmem>>, %arg2: memref<2x32xf32, #tpu.memory_space<vmem>>, %arg3: memref<2x2xf32, #tpu.memory_space<vmem>>) attributes {dimension_semantics = [#tpu.dimension_semantics<arbitrary>], iteration_bounds = array<i64: 1>, scalar_prefetch = 0 : i64, scratch_operands = 0 : i64, tpu.core_type = #tpu.core_type<tc>, window_params = [{pipeline_mode = #tpu.pipeline_mode<synchronous>, transform_indices = @transform_0, window_bounds = array<i64: 2, 32>}, {pipeline_mode = #tpu.pipeline_mode<synchronous>, transform_indices = @transform_1, window_bounds = array<i64: 2, 32>}, {pipeline_mode = #tpu.pipeline_mode<synchronous>, transform_indices = @transform_2, window_bounds = array<i64: 2, 2>}]} {
    %c0 = arith.constant 0 : index
    %c0_0 = arith.constant 0 : index
    %0 = vector.load %arg1[%c0, %c0_0] : memref<2x32xf32, #tpu.memory_space<vmem>>, vector<2x32xf32>
    %c0_1 = arith.constant 0 : index
    %c0_2 = arith.constant 0 : index
    %1 = vector.load %arg2[%c0_1, %c0_2] : memref<2x32xf32, #tpu.memory_space<vmem>>, vector<2x32xf32>
    %cst = arith.constant dense<0.000000e+00> : vector<2x2xf32>
    %2 = tpu.matmul %0, %1, %cst {dimension_numbers = #tpu.dot_dimension_numbers<[1], [1], [0], [0], [0, 0, 1, 0], [], []>} : vector<2x32xf32>, vector<2x32xf32>, vector<2x2xf32> -> vector<2x2xf32>
    %c0_3 = arith.constant 0 : index
    %c0_4 = arith.constant 0 : index
    %3 = vector.load %arg3[%c0_3, %c0_4] : memref<2x2xf32, #tpu.memory_space<vmem>>, vector<2x2xf32>
    tpu.vector_store %arg3[%c0_3, %c0_4], %2 {strides = array<i32>} : memref<2x2xf32, #tpu.memory_space<vmem>>, vector<2x2xf32>,
    return
  }
  func.func @transform_0(%arg0: i32) -> (i32, i32) {
    %c0_i32 = arith.constant 0 : i32
    %c0_i32_0 = arith.constant 0 : i32
    %c0_i32_1 = arith.constant 0 : i32
    return %c0_i32, %c0_i32_0 : i32, i32
  }
  func.func @transform_1(%arg0: i32) -> (i32, i32) {
    %c0_i32 = arith.constant 0 : i32
    %c0_i32_0 = arith.constant 0 : i32
    %c0_i32_1 = arith.constant 0 : i32
    return %c0_i32, %c0_i32_0 : i32, i32
  }
  func.func @transform_2(%arg0: i32) -> (i32, i32) {
    %c0_i32 = arith.constant 0 : i32
    %c0_i32_0 = arith.constant 0 : i32
    %c0_i32_1 = arith.constant 0 : i32
    return %c0_i32, %c0_i32_0 : i32, i32
  }
}

module attributes {stable_mosaic.version = 11 : i64} {
  func.func @_text_kernel(%arg0: i32, %arg1: memref<1x8x32xf32, #tpu.memory_space<vmem>>, %arg2: memref<1x1x9xf32, #tpu.memory_space<vmem>>, %arg3: memref<1x32xf32, #tpu.memory_space<vmem>>, %arg4: memref<32x64xf32, #tpu.memory_space<vmem>>, %arg5: memref<1x64xf32, #tpu.memory_space<vmem>>, %arg6: memref<1x64xf32, #tpu.memory_space<vmem>>, %arg7: memref<1x64xf32, #tpu.memory_space<vmem>>, %arg8: memref<64x32xf32, #tpu.memory_space<vmem>>, %arg9: memref<1x32xf32, #tpu.memory_space<vmem>>, %arg10: memref<1x32xf32, #tpu.memory_space<vmem>>, %arg11: memref<1x32xf32, #tpu.memory_space<vmem>>, %arg12: memref<32x96xf32, #tpu.memory_space<vmem>>, %arg13: memref<1x96xf32, #tpu.memory_space<vmem>>, %arg14: memref<32x32xf32, #tpu.memory_space<vmem>>, %arg15: memref<1x32xf32, #tpu.memory_space<vmem>>, %arg16: memref<1x32xf32, #tpu.memory_space<vmem>>, %arg17: memref<1x32xf32, #tpu.memory_space<vmem>>, %arg18: memref<32x128xf32, #tpu.memory_space<vmem>>, %arg19: memref<1x128xf32, #tpu.memory_space<vmem>>, %arg20: memref<128x32xf32, #tpu.memory_space<vmem>>, %arg21: memref<1x32xf32, #tpu.memory_space<vmem>>, %arg22: memref<1x9x32xf32, #tpu.memory_space<vmem>>, %arg23: memref<9x32xf32, #tpu.memory_space<vmem>>) attributes {dimension_semantics = [#tpu.dimension_semantics<parallel>], iteration_bounds = array<i64: 2>, scalar_prefetch = 0 : i64, scratch_operands = 1 : i64, tpu.core_type = #tpu.core_type<tc>, window_params = [{transform_indices = @transform_0, window_bounds = array<i64: 1, 8, 32>}, {transform_indices = @transform_1, window_bounds = array<i64: 1, 1, 9>}, {pipeline_mode = #tpu.pipeline_mode<synchronous>, transform_indices = @transform_2, window_bounds = array<i64: 1, 32>}, {pipeline_mode = #tpu.pipeline_mode<synchronous>, transform_indices = @transform_3, window_bounds = array<i64: 32, 64>}, {pipeline_mode = #tpu.pipeline_mode<synchronous>, transform_indices = @transform_4, window_bounds = array<i64: 1, 64>}, {pipeline_mode = #tpu.pipeline_mode<synchronous>, transform_indices = @transform_5, window_bounds = array<i64: 1, 64>}, {pipeline_mode = #tpu.pipeline_mode<synchronous>, transform_indices = @transform_6, window_bounds = array<i64: 1, 64>}, {pipeline_mode = #tpu.pipeline_mode<synchronous>, transform_indices = @transform_7, window_bounds = array<i64: 64, 32>}, {pipeline_mode = #tpu.pipeline_mode<synchronous>, transform_indices = @transform_8, window_bounds = array<i64: 1, 32>}, {pipeline_mode = #tpu.pipeline_mode<synchronous>, transform_indices = @transform_9, window_bounds = array<i64: 1, 32>}, {pipeline_mode = #tpu.pipeline_mode<synchronous>, transform_indices = @transform_10, window_bounds = array<i64: 1, 32>}, {pipeline_mode = #tpu.pipeline_mode<synchronous>, transform_indices = @transform_11, window_bounds = array<i64: 32, 96>}, {pipeline_mode = #tpu.pipeline_mode<synchronous>, transform_indices = @transform_12, window_bounds = array<i64: 1, 96>}, {pipeline_mode = #tpu.pipeline_mode<synchronous>, transform_indices = @transform_13, window_bounds = array<i64: 32, 32>}, {pipeline_mode = #tpu.pipeline_mode<synchronous>, transform_indices = @transform_14, window_bounds = array<i64: 1, 32>}, {pipeline_mode = #tpu.pipeline_mode<synchronous>, transform_indices = @transform_15, window_bounds = array<i64: 1, 32>}, {pipeline_mode = #tpu.pipeline_mode<synchronous>, transform_indices = @transform_16, window_bounds = array<i64: 1, 32>}, {pipeline_mode = #tpu.pipeline_mode<synchronous>, transform_indices = @transform_17, window_bounds = array<i64: 32, 128>}, {pipeline_mode = #tpu.pipeline_mode<synchronous>, transform_indices = @transform_18, window_bounds = array<i64: 1, 128>}, {pipeline_mode = #tpu.pipeline_mode<synchronous>, transform_indices = @transform_19, window_bounds = array<i64: 128, 32>}, {pipeline_mode = #tpu.pipeline_mode<synchronous>, transform_indices = @transform_20, window_bounds = array<i64: 1, 32>}, {transform_indices = @transform_21, window_bounds = array<i64: 1, 9, 32>}]} {
    %c0 = arith.constant 0 : index
    %c0_0 = arith.constant 0 : index
    %c0_1 = arith.constant 0 : index
    %0 = vector.load %arg1[%c0, %c0_0, %c0_1] : memref<1x8x32xf32, #tpu.memory_space<vmem>>, vector<1x8x32xf32>
    %1 = vector.shape_cast %0 : vector<1x8x32xf32> to vector<8x32xf32>
    %c0_2 = arith.constant 0 : index
    %c0_3 = arith.constant 0 : index
    %2 = vector.load %arg4[%c0_2, %c0_3] : memref<32x64xf32, #tpu.memory_space<vmem>>, vector<32x64xf32>
    %cst = arith.constant dense<0.000000e+00> : vector<8x64xf32>
    %3 = tpu.matmul %1, %2, %cst {dimension_numbers = #tpu.dot_dimension_numbers<[1], [0], [0], [1], [0, 0, 1, 1], [], []>} : vector<8x32xf32>, vector<32x64xf32>, vector<8x64xf32> -> vector<8x64xf32>
    %c0_4 = arith.constant 0 : index
    %c0_5 = arith.constant 0 : index
    %4 = vector.load %arg5[%c0_4, %c0_5] : memref<1x64xf32, #tpu.memory_space<vmem>>, vector<1x64xf32>
    %5 = vector.broadcast %4 : vector<1x64xf32> to vector<8x64xf32>
    %6 = arith.addf %3, %5 : vector<8x64xf32>
    %c0_6 = arith.constant 0 : index
    %c0_7 = arith.constant 0 : index
    %7 = vector.load %arg6[%c0_6, %c0_7] : memref<1x64xf32, #tpu.memory_space<vmem>>, vector<1x64xf32>
    %c0_8 = arith.constant 0 : index
    %c0_9 = arith.constant 0 : index
    %8 = vector.load %arg7[%c0_8, %c0_9] : memref<1x64xf32, #tpu.memory_space<vmem>>, vector<1x64xf32>
    %cst_10 = arith.constant dense<0.000000e+00> : vector<8xf32>
    %9 = vector.multi_reduction <add>, %6, %cst_10 [1] : vector<8x64xf32> to vector<8xf32>
    %10 = vector.shape_cast %9 : vector<8xf32> to vector<8x1xf32>
    %cst_11 = arith.constant 6.400000e+01 : f32
    %11 = vector.broadcast %cst_11 : f32 to vector<8x1xf32>
    %12 = arith.divf %10, %11 : vector<8x1xf32>
    %13 = vector.broadcast %12 : vector<8x1xf32> to vector<8x64xf32>
    %14 = arith.subf %6, %13 : vector<8x64xf32>
    %15 = arith.mulf %14, %14 : vector<8x64xf32>
    %cst_12 = arith.constant dense<0.000000e+00> : vector<8xf32>
    %16 = vector.multi_reduction <add>, %15, %cst_12 [1] : vector<8x64xf32> to vector<8xf32>
    %17 = vector.shape_cast %16 : vector<8xf32> to vector<8x1xf32>
    %cst_13 = arith.constant 6.400000e+01 : f32
    %18 = vector.broadcast %cst_13 : f32 to vector<8x1xf32>
    %19 = arith.divf %17, %18 : vector<8x1xf32>
    %20 = vector.broadcast %12 : vector<8x1xf32> to vector<8x64xf32>
    %21 = arith.subf %6, %20 : vector<8x64xf32>
    %cst_14 = arith.constant 9.99999974E-6 : f32
    %22 = vector.broadcast %cst_14 : f32 to vector<8x1xf32>
    %23 = arith.addf %19, %22 : vector<8x1xf32>
    %24 = math.rsqrt %23 : vector<8x1xf32>
    %25 = vector.broadcast %24 : vector<8x1xf32> to vector<8x64xf32>
    %26 = arith.mulf %21, %25 : vector<8x64xf32>
    %27 = vector.broadcast %7 : vector<1x64xf32> to vector<8x64xf32>
    %28 = arith.mulf %26, %27 : vector<8x64xf32>
    %29 = vector.broadcast %8 : vector<1x64xf32> to vector<8x64xf32>
    %30 = arith.addf %28, %29 : vector<8x64xf32>
    %cst_15 = arith.constant 0.000000e+00 : f32
    %31 = vector.broadcast %cst_15 : f32 to vector<8x64xf32>
    %32 = arith.maximumf %30, %31 : vector<8x64xf32>
    %c0_16 = arith.constant 0 : index
    %c0_17 = arith.constant 0 : index
    %33 = vector.load %arg8[%c0_16, %c0_17] : memref<64x32xf32, #tpu.memory_space<vmem>>, vector<64x32xf32>
    %cst_18 = arith.constant dense<0.000000e+00> : vector<8x32xf32>
    %34 = tpu.matmul %32, %33, %cst_18 {dimension_numbers = #tpu.dot_dimension_numbers<[1], [0], [0], [1], [0, 0, 1, 1], [], []>} : vector<8x64xf32>, vector<64x32xf32>, vector<8x32xf32> -> vector<8x32xf32>
    %c0_19 = arith.constant 0 : index
    %c0_20 = arith.constant 0 : index
    %35 = vector.load %arg9[%c0_19, %c0_20] : memref<1x32xf32, #tpu.memory_space<vmem>>, vector<1x32xf32>
    %36 = vector.broadcast %35 : vector<1x32xf32> to vector<8x32xf32>
    %37 = arith.addf %34, %36 : vector<8x32xf32>
    %c0_21 = arith.constant 0 : index
    %c0_22 = arith.constant 0 : index
    %38 = vector.load %arg3[%c0_21, %c0_22] : memref<1x32xf32, #tpu.memory_space<vmem>>, vector<1x32xf32>
    %c0_23 = arith.constant 0 : index
    %c0_24 = arith.constant 0 : index
    %39 = vector.load %arg23[%c0_23, %c0_24] : memref<9x32xf32, #tpu.memory_space<vmem>>, vector<1x32xf32>
    tpu.vector_store %arg23[%c0_23, %c0_24], %38 {strides = array<i32>} : memref<9x32xf32, #tpu.memory_space<vmem>>, vector<1x32xf32>,
    %c1 = arith.constant 1 : index
    %c0_25 = arith.constant 0 : index
    %40 = vector.load %arg23[%c1, %c0_25] : memref<9x32xf32, #tpu.memory_space<vmem>>, vector<8x32xf32>
    tpu.vector_store %arg23[%c1, %c0_25], %37 {strides = array<i32>} : memref<9x32xf32, #tpu.memory_space<vmem>>, vector<8x32xf32>,
    %c0_26 = arith.constant 0 : index
    %c0_27 = arith.constant 0 : index
    %41 = vector.load %arg23[%c0_26, %c0_27] : memref<9x32xf32, #tpu.memory_space<vmem>>, vector<9x32xf32>
    %c0_28 = arith.constant 0 : index
    %c0_29 = arith.constant 0 : index
    %c0_30 = arith.constant 0 : index
    %42 = vector.load %arg2[%c0_28, %c0_29, %c0_30] : memref<1x1x9xf32, #tpu.memory_space<vmem>>, vector<1x1x9xf32>
    %43 = vector.shape_cast %42 : vector<1x1x9xf32> to vector<1x9xf32>
    %c0_31 = arith.constant 0 : index
    %c0_32 = arith.constant 0 : index
    %44 = vector.load %arg10[%c0_31, %c0_32] : memref<1x32xf32, #tpu.memory_space<vmem>>, vector<1x32xf32>
    %c0_33 = arith.constant 0 : index
    %c0_34 = arith.constant 0 : index
    %45 = vector.load %arg11[%c0_33, %c0_34] : memref<1x32xf32, #tpu.memory_space<vmem>>, vector<1x32xf32>
    %c0_35 = arith.constant 0 : index
    %c0_36 = arith.constant 0 : index
    %46 = vector.load %arg12[%c0_35, %c0_36] : memref<32x96xf32, #tpu.memory_space<vmem>>, vector<32x96xf32>
    %c0_37 = arith.constant 0 : index
    %c0_38 = arith.constant 0 : index
    %47 = vector.load %arg13[%c0_37, %c0_38] : memref<1x96xf32, #tpu.memory_space<vmem>>, vector<1x96xf32>
    %c0_39 = arith.constant 0 : index
    %c0_40 = arith.constant 0 : index
    %48 = vector.load %arg14[%c0_39, %c0_40] : memref<32x32xf32, #tpu.memory_space<vmem>>, vector<32x32xf32>
    %c0_41 = arith.constant 0 : index
    %c0_42 = arith.constant 0 : index
    %49 = vector.load %arg15[%c0_41, %c0_42] : memref<1x32xf32, #tpu.memory_space<vmem>>, vector<1x32xf32>
    %c0_43 = arith.constant 0 : index
    %c0_44 = arith.constant 0 : index
    %50 = vector.load %arg16[%c0_43, %c0_44] : memref<1x32xf32, #tpu.memory_space<vmem>>, vector<1x32xf32>
    %c0_45 = arith.constant 0 : index
    %c0_46 = arith.constant 0 : index
    %51 = vector.load %arg17[%c0_45, %c0_46] : memref<1x32xf32, #tpu.memory_space<vmem>>, vector<1x32xf32>
    %c0_47 = arith.constant 0 : index
    %c0_48 = arith.constant 0 : index
    %52 = vector.load %arg18[%c0_47, %c0_48] : memref<32x128xf32, #tpu.memory_space<vmem>>, vector<32x128xf32>
    %c0_49 = arith.constant 0 : index
    %c0_50 = arith.constant 0 : index
    %53 = vector.load %arg19[%c0_49, %c0_50] : memref<1x128xf32, #tpu.memory_space<vmem>>, vector<1x128xf32>
    %c0_51 = arith.constant 0 : index
    %c0_52 = arith.constant 0 : index
    %54 = vector.load %arg20[%c0_51, %c0_52] : memref<128x32xf32, #tpu.memory_space<vmem>>, vector<128x32xf32>
    %c0_53 = arith.constant 0 : index
    %c0_54 = arith.constant 0 : index
    %55 = vector.load %arg21[%c0_53, %c0_54] : memref<1x32xf32, #tpu.memory_space<vmem>>, vector<1x32xf32>
    %cst_55 = arith.constant dense<0.000000e+00> : vector<9xf32>
    %56 = vector.multi_reduction <add>, %41, %cst_55 [1] : vector<9x32xf32> to vector<9xf32>
    %57 = vector.shape_cast %56 : vector<9xf32> to vector<9x1xf32>
    %cst_56 = arith.constant 3.200000e+01 : f32
    %58 = vector.broadcast %cst_56 : f32 to vector<9x1xf32>
    %59 = arith.divf %57, %58 : vector<9x1xf32>
    %60 = vector.broadcast %59 : vector<9x1xf32> to vector<9x32xf32>
    %61 = arith.subf %41, %60 : vector<9x32xf32>
    %62 = arith.mulf %61, %61 : vector<9x32xf32>
    %cst_57 = arith.constant dense<0.000000e+00> : vector<9xf32>
    %63 = vector.multi_reduction <add>, %62, %cst_57 [1] : vector<9x32xf32> to vector<9xf32>
    %64 = vector.shape_cast %63 : vector<9xf32> to vector<9x1xf32>
    %cst_58 = arith.constant 3.200000e+01 : f32
    %65 = vector.broadcast %cst_58 : f32 to vector<9x1xf32>
    %66 = arith.divf %64, %65 : vector<9x1xf32>
    %67 = vector.broadcast %59 : vector<9x1xf32> to vector<9x32xf32>
    %68 = arith.subf %41, %67 : vector<9x32xf32>
    %cst_59 = arith.constant 9.99999974E-6 : f32
    %69 = vector.broadcast %cst_59 : f32 to vector<9x1xf32>
    %70 = arith.addf %66, %69 : vector<9x1xf32>
    %71 = math.rsqrt %70 : vector<9x1xf32>
    %72 = vector.broadcast %71 : vector<9x1xf32> to vector<9x32xf32>
    %73 = arith.mulf %68, %72 : vector<9x32xf32>
    %74 = vector.broadcast %44 : vector<1x32xf32> to vector<9x32xf32>
    %75 = arith.mulf %73, %74 : vector<9x32xf32>
    %76 = vector.broadcast %45 : vector<1x32xf32> to vector<9x32xf32>
    %77 = arith.addf %75, %76 : vector<9x32xf32>
    %cst_60 = arith.constant dense<0.000000e+00> : vector<9x96xf32>
    %78 = tpu.matmul %77, %46, %cst_60 {dimension_numbers = #tpu.dot_dimension_numbers<[1], [0], [0], [1], [0, 0, 1, 1], [], []>} : vector<9x32xf32>, vector<32x96xf32>, vector<9x96xf32> -> vector<9x96xf32>
    %79 = vector.broadcast %47 : vector<1x96xf32> to vector<9x96xf32>
    %80 = arith.addf %78, %79 : vector<9x96xf32>
    %81 = vector.extract_strided_slice %80 {offsets = [0, 0], sizes = [9, 8], strides = [1, 1]} : vector<9x96xf32> to vector<9x8xf32>
    %82 = vector.extract_strided_slice %80 {offsets = [0, 32], sizes = [9, 8], strides = [1, 1]} : vector<9x96xf32> to vector<9x8xf32>
    %83 = vector.extract_strided_slice %80 {offsets = [0, 64], sizes = [9, 8], strides = [1, 1]} : vector<9x96xf32> to vector<9x8xf32>
    %cst_61 = arith.constant dense<0.000000e+00> : vector<9x9xf32>
    %84 = tpu.matmul %81, %82, %cst_61 {dimension_numbers = #tpu.dot_dimension_numbers<[1], [1], [0], [0], [0, 0, 1, 0], [], []>} : vector<9x8xf32>, vector<9x8xf32>, vector<9x9xf32> -> vector<9x9xf32>
    %cst_62 = arith.constant 0.353553385 : f32
    %85 = vector.broadcast %cst_62 : f32 to vector<9x9xf32>
    %86 = arith.mulf %84, %85 : vector<9x9xf32>
    %87 = vector.broadcast %43 : vector<1x9xf32> to vector<9x9xf32>
    %88 = arith.addf %86, %87 : vector<9x9xf32>
    %cst_63 = arith.constant dense<0xFF800000> : vector<9xf32>
    %89 = vector.multi_reduction <maximumf>, %88, %cst_63 [1] : vector<9x9xf32> to vector<9xf32>
    %90 = vector.shape_cast %89 : vector<9xf32> to vector<9x1xf32>
    %91 = vector.broadcast %90 : vector<9x1xf32> to vector<9x9xf32>
    %92 = arith.subf %88, %91 : vector<9x9xf32>
    %93 = math.exp %92 : vector<9x9xf32>
    %cst_64 = arith.constant dense<0.000000e+00> : vector<9xf32>
    %94 = vector.multi_reduction <add>, %93, %cst_64 [1] : vector<9x9xf32> to vector<9xf32>
    %95 = vector.shape_cast %94 : vector<9xf32> to vector<9x1xf32>
    %96 = tpu.reciprocal %95 {approx = true} : vector<9x1xf32> -> vector<9x1xf32>
    %97 = vector.broadcast %96 : vector<9x1xf32> to vector<9x9xf32>
    %98 = arith.mulf %93, %97 : vector<9x9xf32>
    %cst_65 = arith.constant dense<0.000000e+00> : vector<9x8xf32>
    %99 = tpu.matmul %98, %83, %cst_65 {dimension_numbers = #tpu.dot_dimension_numbers<[1], [0], [0], [1], [0, 0, 1, 1], [], []>} : vector<9x9xf32>, vector<9x8xf32>, vector<9x8xf32> -> vector<9x8xf32>
    %100 = vector.extract_strided_slice %48 {offsets = [0, 0], sizes = [8, 32], strides = [1, 1]} : vector<32x32xf32> to vector<8x32xf32>
    %cst_66 = arith.constant dense<0.000000e+00> : vector<9x32xf32>
    %101 = tpu.matmul %99, %100, %cst_66 {dimension_numbers = #tpu.dot_dimension_numbers<[1], [0], [0], [1], [0, 0, 1, 1], [], []>} : vector<9x8xf32>, vector<8x32xf32>, vector<9x32xf32> -> vector<9x32xf32>
    %102 = vector.broadcast %49 : vector<1x32xf32> to vector<9x32xf32>
    %103 = arith.addf %102, %101 : vector<9x32xf32>
    %104 = vector.extract_strided_slice %80 {offsets = [0, 8], sizes = [9, 8], strides = [1, 1]} : vector<9x96xf32> to vector<9x8xf32>
    %105 = vector.extract_strided_slice %80 {offsets = [0, 40], sizes = [9, 8], strides = [1, 1]} : vector<9x96xf32> to vector<9x8xf32>
    %106 = vector.extract_strided_slice %80 {offsets = [0, 72], sizes = [9, 8], strides = [1, 1]} : vector<9x96xf32> to vector<9x8xf32>
    %cst_67 = arith.constant dense<0.000000e+00> : vector<9x9xf32>
    %107 = tpu.matmul %104, %105, %cst_67 {dimension_numbers = #tpu.dot_dimension_numbers<[1], [1], [0], [0], [0, 0, 1, 0], [], []>} : vector<9x8xf32>, vector<9x8xf32>, vector<9x9xf32> -> vector<9x9xf32>
    %cst_68 = arith.constant 0.353553385 : f32
    %108 = vector.broadcast %cst_68 : f32 to vector<9x9xf32>
    %109 = arith.mulf %107, %108 : vector<9x9xf32>
    %110 = vector.broadcast %43 : vector<1x9xf32> to vector<9x9xf32>
    %111 = arith.addf %109, %110 : vector<9x9xf32>
    %cst_69 = arith.constant dense<0xFF800000> : vector<9xf32>
    %112 = vector.multi_reduction <maximumf>, %111, %cst_69 [1] : vector<9x9xf32> to vector<9xf32>
    %113 = vector.shape_cast %112 : vector<9xf32> to vector<9x1xf32>
    %114 = vector.broadcast %113 : vector<9x1xf32> to vector<9x9xf32>
    %115 = arith.subf %111, %114 : vector<9x9xf32>
    %116 = math.exp %115 : vector<9x9xf32>
    %cst_70 = arith.constant dense<0.000000e+00> : vector<9xf32>
    %117 = vector.multi_reduction <add>, %116, %cst_70 [1] : vector<9x9xf32> to vector<9xf32>
    %118 = vector.shape_cast %117 : vector<9xf32> to vector<9x1xf32>
    %119 = tpu.reciprocal %118 {approx = true} : vector<9x1xf32> -> vector<9x1xf32>
    %120 = vector.broadcast %119 : vector<9x1xf32> to vector<9x9xf32>
    %121 = arith.mulf %116, %120 : vector<9x9xf32>
    %cst_71 = arith.constant dense<0.000000e+00> : vector<9x8xf32>
    %122 = tpu.matmul %121, %106, %cst_71 {dimension_numbers = #tpu.dot_dimension_numbers<[1], [0], [0], [1], [0, 0, 1, 1], [], []>} : vector<9x9xf32>, vector<9x8xf32>, vector<9x8xf32> -> vector<9x8xf32>
    %123 = vector.extract_strided_slice %48 {offsets = [8, 0], sizes = [8, 32], strides = [1, 1]} : vector<32x32xf32> to vector<8x32xf32>
    %cst_72 = arith.constant dense<0.000000e+00> : vector<9x32xf32>
    %124 = tpu.matmul %122, %123, %cst_72 {dimension_numbers = #tpu.dot_dimension_numbers<[1], [0], [0], [1], [0, 0, 1, 1], [], []>} : vector<9x8xf32>, vector<8x32xf32>, vector<9x32xf32> -> vector<9x32xf32>
    %125 = arith.addf %103, %124 : vector<9x32xf32>
    %126 = vector.extract_strided_slice %80 {offsets = [0, 16], sizes = [9, 8], strides = [1, 1]} : vector<9x96xf32> to vector<9x8xf32>
    %127 = vector.extract_strided_slice %80 {offsets = [0, 48], sizes = [9, 8], strides = [1, 1]} : vector<9x96xf32> to vector<9x8xf32>
    %128 = vector.extract_strided_slice %80 {offsets = [0, 80], sizes = [9, 8], strides = [1, 1]} : vector<9x96xf32> to vector<9x8xf32>
    %cst_73 = arith.constant dense<0.000000e+00> : vector<9x9xf32>
    %129 = tpu.matmul %126, %127, %cst_73 {dimension_numbers = #tpu.dot_dimension_numbers<[1], [1], [0], [0], [0, 0, 1, 0], [], []>} : vector<9x8xf32>, vector<9x8xf32>, vector<9x9xf32> -> vector<9x9xf32>
    %cst_74 = arith.constant 0.353553385 : f32
    %130 = vector.broadcast %cst_74 : f32 to vector<9x9xf32>
    %131 = arith.mulf %129, %130 : vector<9x9xf32>
    %132 = vector.broadcast %43 : vector<1x9xf32> to vector<9x9xf32>
    %133 = arith.addf %131, %132 : vector<9x9xf32>
    %cst_75 = arith.constant dense<0xFF800000> : vector<9xf32>
    %134 = vector.multi_reduction <maximumf>, %133, %cst_75 [1] : vector<9x9xf32> to vector<9xf32>
    %135 = vector.shape_cast %134 : vector<9xf32> to vector<9x1xf32>
    %136 = vector.broadcast %135 : vector<9x1xf32> to vector<9x9xf32>
    %137 = arith.subf %133, %136 : vector<9x9xf32>
    %138 = math.exp %137 : vector<9x9xf32>
    %cst_76 = arith.constant dense<0.000000e+00> : vector<9xf32>
    %139 = vector.multi_reduction <add>, %138, %cst_76 [1] : vector<9x9xf32> to vector<9xf32>
    %140 = vector.shape_cast %139 : vector<9xf32> to vector<9x1xf32>
    %141 = tpu.reciprocal %140 {approx = true} : vector<9x1xf32> -> vector<9x1xf32>
    %142 = vector.broadcast %141 : vector<9x1xf32> to vector<9x9xf32>
    %143 = arith.mulf %138, %142 : vector<9x9xf32>
    %cst_77 = arith.constant dense<0.000000e+00> : vector<9x8xf32>
    %144 = tpu.matmul %143, %128, %cst_77 {dimension_numbers = #tpu.dot_dimension_numbers<[1], [0], [0], [1], [0, 0, 1, 1], [], []>} : vector<9x9xf32>, vector<9x8xf32>, vector<9x8xf32> -> vector<9x8xf32>
    %145 = vector.extract_strided_slice %48 {offsets = [16, 0], sizes = [8, 32], strides = [1, 1]} : vector<32x32xf32> to vector<8x32xf32>
    %cst_78 = arith.constant dense<0.000000e+00> : vector<9x32xf32>
    %146 = tpu.matmul %144, %145, %cst_78 {dimension_numbers = #tpu.dot_dimension_numbers<[1], [0], [0], [1], [0, 0, 1, 1], [], []>} : vector<9x8xf32>, vector<8x32xf32>, vector<9x32xf32> -> vector<9x32xf32>
    %147 = arith.addf %125, %146 : vector<9x32xf32>
    %148 = vector.extract_strided_slice %80 {offsets = [0, 24], sizes = [9, 8], strides = [1, 1]} : vector<9x96xf32> to vector<9x8xf32>
    %149 = vector.extract_strided_slice %80 {offsets = [0, 56], sizes = [9, 8], strides = [1, 1]} : vector<9x96xf32> to vector<9x8xf32>
    %150 = vector.extract_strided_slice %80 {offsets = [0, 88], sizes = [9, 8], strides = [1, 1]} : vector<9x96xf32> to vector<9x8xf32>
    %cst_79 = arith.constant dense<0.000000e+00> : vector<9x9xf32>
    %151 = tpu.matmul %148, %149, %cst_79 {dimension_numbers = #tpu.dot_dimension_numbers<[1], [1], [0], [0], [0, 0, 1, 0], [], []>} : vector<9x8xf32>, vector<9x8xf32>, vector<9x9xf32> -> vector<9x9xf32>
    %cst_80 = arith.constant 0.353553385 : f32
    %152 = vector.broadcast %cst_80 : f32 to vector<9x9xf32>
    %153 = arith.mulf %151, %152 : vector<9x9xf32>
    %154 = vector.broadcast %43 : vector<1x9xf32> to vector<9x9xf32>
    %155 = arith.addf %153, %154 : vector<9x9xf32>
    %cst_81 = arith.constant dense<0xFF800000> : vector<9xf32>
    %156 = vector.multi_reduction <maximumf>, %155, %cst_81 [1] : vector<9x9xf32> to vector<9xf32>
    %157 = vector.shape_cast %156 : vector<9xf32> to vector<9x1xf32>
    %158 = vector.broadcast %157 : vector<9x1xf32> to vector<9x9xf32>
    %159 = arith.subf %155, %158 : vector<9x9xf32>
    %160 = math.exp %159 : vector<9x9xf32>
    %cst_82 = arith.constant dense<0.000000e+00> : vector<9xf32>
    %161 = vector.multi_reduction <add>, %160, %cst_82 [1] : vector<9x9xf32> to vector<9xf32>
    %162 = vector.shape_cast %161 : vector<9xf32> to vector<9x1xf32>
    %163 = tpu.reciprocal %162 {approx = true} : vector<9x1xf32> -> vector<9x1xf32>
    %164 = vector.broadcast %163 : vector<9x1xf32> to vector<9x9xf32>
    %165 = arith.mulf %160, %164 : vector<9x9xf32>
    %cst_83 = arith.constant dense<0.000000e+00> : vector<9x8xf32>
    %166 = tpu.matmul %165, %150, %cst_83 {dimension_numbers = #tpu.dot_dimension_numbers<[1], [0], [0], [1], [0, 0, 1, 1], [], []>} : vector<9x9xf32>, vector<9x8xf32>, vector<9x8xf32> -> vector<9x8xf32>
    %167 = vector.extract_strided_slice %48 {offsets = [24, 0], sizes = [8, 32], strides = [1, 1]} : vector<32x32xf32> to vector<8x32xf32>
    %cst_84 = arith.constant dense<0.000000e+00> : vector<9x32xf32>
    %168 = tpu.matmul %166, %167, %cst_84 {dimension_numbers = #tpu.dot_dimension_numbers<[1], [0], [0], [1], [0, 0, 1, 1], [], []>} : vector<9x8xf32>, vector<8x32xf32>, vector<9x32xf32> -> vector<9x32xf32>
    %169 = arith.addf %147, %168 : vector<9x32xf32>
    %170 = arith.addf %41, %169 : vector<9x32xf32>
    %cst_85 = arith.constant dense<0.000000e+00> : vector<9xf32>
    %171 = vector.multi_reduction <add>, %170, %cst_85 [1] : vector<9x32xf32> to vector<9xf32>
    %172 = vector.shape_cast %171 : vector<9xf32> to vector<9x1xf32>
    %cst_86 = arith.constant 3.200000e+01 : f32
    %173 = vector.broadcast %cst_86 : f32 to vector<9x1xf32>
    %174 = arith.divf %172, %173 : vector<9x1xf32>
    %175 = vector.broadcast %174 : vector<9x1xf32> to vector<9x32xf32>
    %176 = arith.subf %170, %175 : vector<9x32xf32>
    %177 = arith.mulf %176, %176 : vector<9x32xf32>
    %cst_87 = arith.constant dense<0.000000e+00> : vector<9xf32>
    %178 = vector.multi_reduction <add>, %177, %cst_87 [1] : vector<9x32xf32> to vector<9xf32>
    %179 = vector.shape_cast %178 : vector<9xf32> to vector<9x1xf32>
    %cst_88 = arith.constant 3.200000e+01 : f32
    %180 = vector.broadcast %cst_88 : f32 to vector<9x1xf32>
    %181 = arith.divf %179, %180 : vector<9x1xf32>
    %182 = vector.broadcast %174 : vector<9x1xf32> to vector<9x32xf32>
    %183 = arith.subf %170, %182 : vector<9x32xf32>
    %cst_89 = arith.constant 9.99999974E-6 : f32
    %184 = vector.broadcast %cst_89 : f32 to vector<9x1xf32>
    %185 = arith.addf %181, %184 : vector<9x1xf32>
    %186 = math.rsqrt %185 : vector<9x1xf32>
    %187 = vector.broadcast %186 : vector<9x1xf32> to vector<9x32xf32>
    %188 = arith.mulf %183, %187 : vector<9x32xf32>
    %189 = vector.broadcast %50 : vector<1x32xf32> to vector<9x32xf32>
    %190 = arith.mulf %188, %189 : vector<9x32xf32>
    %191 = vector.broadcast %51 : vector<1x32xf32> to vector<9x32xf32>
    %192 = arith.addf %190, %191 : vector<9x32xf32>
    %cst_90 = arith.constant dense<0.000000e+00> : vector<9x128xf32>
    %193 = tpu.matmul %192, %52, %cst_90 {dimension_numbers = #tpu.dot_dimension_numbers<[1], [0], [0], [1], [0, 0, 1, 1], [], []>} : vector<9x32xf32>, vector<32x128xf32>, vector<9x128xf32> -> vector<9x128xf32>
    %194 = vector.broadcast %53 : vector<1x128xf32> to vector<9x128xf32>
    %195 = arith.addf %193, %194 : vector<9x128xf32>
    %cst_91 = arith.constant 0.000000e+00 : f32
    %196 = vector.broadcast %cst_91 : f32 to vector<9x128xf32>
    %197 = arith.maximumf %195, %196 : vector<9x128xf32>
    %cst_92 = arith.constant dense<0.000000e+00> : vector<9x32xf32>
    %198 = tpu.matmul %197, %54, %cst_92 {dimension_numbers = #tpu.dot_dimension_numbers<[1], [0], [0], [1], [0, 0, 1, 1], [], []>} : vector<9x128xf32>, vector<128x32xf32>, vector<9x32xf32> -> vector<9x32xf32>
    %199 = arith.addf %170, %198 : vector<9x32xf32>
    %200 = vector.broadcast %55 : vector<1x32xf32> to vector<9x32xf32>
    %201 = arith.addf %199, %200 : vector<9x32xf32>
    %c0_93 = arith.constant 0 : index
    %c0_94 = arith.constant 0 : index
    %c0_95 = arith.constant 0 : index
    %202 = vector.load %arg22[%c0_93, %c0_94, %c0_95] : memref<1x9x32xf32, #tpu.memory_space<vmem>>, vector<1x9x32xf32>
    %203 = vector.shape_cast %202 : vector<1x9x32xf32> to vector<9x32xf32>
    %204 = vector.shape_cast %201 : vector<9x32xf32> to vector<1x9x32xf32>
    tpu.vector_store %arg22[%c0_93, %c0_94, %c0_95], %204 {strides = array<i32>} : memref<1x9x32xf32, #tpu.memory_space<vmem>>, vector<1x9x32xf32>,
    return
  }
  func.func @transform_0(%arg0: i32) -> (i32, i32, i32) {
    %c0_i32 = arith.constant 0 : i32
    %c0_i32_0 = arith.constant 0 : i32
    %c0_i32_1 = arith.constant 0 : i32
    return %arg0, %c0_i32, %c0_i32_0 : i32, i32, i32
  }
  func.func @transform_1(%arg0: i32) -> (i32, i32, i32) {
    %c0_i32 = arith.constant 0 : i32
    %c0_i32_0 = arith.constant 0 : i32
    %c0_i32_1 = arith.constant 0 : i32
    return %arg0, %c0_i32, %c0_i32_0 : i32, i32, i32
  }
  func.func @transform_2(%arg0: i32) -> (i32, i32) {
    %c0_i32 = arith.constant 0 : i32
    %c0_i32_0 = arith.constant 0 : i32
    %c0_i32_1 = arith.constant 0 : i32
    return %c0_i32, %c0_i32_0 : i32, i32
  }
  func.func @transform_3(%arg0: i32) -> (i32, i32) {
    %c0_i32 = arith.constant 0 : i32
    %c0_i32_0 = arith.constant 0 : i32
    %c0_i32_1 = arith.constant 0 : i32
    return %c0_i32, %c0_i32_0 : i32, i32
  }
  func.func @transform_4(%arg0: i32) -> (i32, i32) {
    %c0_i32 = arith.constant 0 : i32
    %c0_i32_0 = arith.constant 0 : i32
    %c0_i32_1 = arith.constant 0 : i32
    return %c0_i32, %c0_i32_0 : i32, i32
  }
  func.func @transform_5(%arg0: i32) -> (i32, i32) {
    %c0_i32 = arith.constant 0 : i32
    %c0_i32_0 = arith.constant 0 : i32
    %c0_i32_1 = arith.constant 0 : i32
    return %c0_i32, %c0_i32_0 : i32, i32
  }
  func.func @transform_6(%arg0: i32) -> (i32, i32) {
    %c0_i32 = arith.constant 0 : i32
    %c0_i32_0 = arith.constant 0 : i32
    %c0_i32_1 = arith.constant 0 : i32
    return %c0_i32, %c0_i32_0 : i32, i32
  }
  func.func @transform_7(%arg0: i32) -> (i32, i32) {
    %c0_i32 = arith.constant 0 : i32
    %c0_i32_0 = arith.constant 0 : i32
    %c0_i32_1 = arith.constant 0 : i32
    return %c0_i32, %c0_i32_0 : i32, i32
  }
  func.func @transform_8(%arg0: i32) -> (i32, i32) {
    %c0_i32 = arith.constant 0 : i32
    %c0_i32_0 = arith.constant 0 : i32
    %c0_i32_1 = arith.constant 0 : i32
    return %c0_i32, %c0_i32_0 : i32, i32
  }
  func.func @transform_9(%arg0: i32) -> (i32, i32) {
    %c0_i32 = arith.constant 0 : i32
    %c0_i32_0 = arith.constant 0 : i32
    %c0_i32_1 = arith.constant 0 : i32
    return %c0_i32, %c0_i32_0 : i32, i32
  }
  func.func @transform_10(%arg0: i32) -> (i32, i32) {
    %c0_i32 = arith.constant 0 : i32
    %c0_i32_0 = arith.constant 0 : i32
    %c0_i32_1 = arith.constant 0 : i32
    return %c0_i32, %c0_i32_0 : i32, i32
  }
  func.func @transform_11(%arg0: i32) -> (i32, i32) {
    %c0_i32 = arith.constant 0 : i32
    %c0_i32_0 = arith.constant 0 : i32
    %c0_i32_1 = arith.constant 0 : i32
    return %c0_i32, %c0_i32_0 : i32, i32
  }
  func.func @transform_12(%arg0: i32) -> (i32, i32) {
    %c0_i32 = arith.constant 0 : i32
    %c0_i32_0 = arith.constant 0 : i32
    %c0_i32_1 = arith.constant 0 : i32
    return %c0_i32, %c0_i32_0 : i32, i32
  }
  func.func @transform_13(%arg0: i32) -> (i32, i32) {
    %c0_i32 = arith.constant 0 : i32
    %c0_i32_0 = arith.constant 0 : i32
    %c0_i32_1 = arith.constant 0 : i32
    return %c0_i32, %c0_i32_0 : i32, i32
  }
  func.func @transform_14(%arg0: i32) -> (i32, i32) {
    %c0_i32 = arith.constant 0 : i32
    %c0_i32_0 = arith.constant 0 : i32
    %c0_i32_1 = arith.constant 0 : i32
    return %c0_i32, %c0_i32_0 : i32, i32
  }
  func.func @transform_15(%arg0: i32) -> (i32, i32) {
    %c0_i32 = arith.constant 0 : i32
    %c0_i32_0 = arith.constant 0 : i32
    %c0_i32_1 = arith.constant 0 : i32
    return %c0_i32, %c0_i32_0 : i32, i32
  }
  func.func @transform_16(%arg0: i32) -> (i32, i32) {
    %c0_i32 = arith.constant 0 : i32
    %c0_i32_0 = arith.constant 0 : i32
    %c0_i32_1 = arith.constant 0 : i32
    return %c0_i32, %c0_i32_0 : i32, i32
  }
  func.func @transform_17(%arg0: i32) -> (i32, i32) {
    %c0_i32 = arith.constant 0 : i32
    %c0_i32_0 = arith.constant 0 : i32
    %c0_i32_1 = arith.constant 0 : i32
    return %c0_i32, %c0_i32_0 : i32, i32
  }
  func.func @transform_18(%arg0: i32) -> (i32, i32) {
    %c0_i32 = arith.constant 0 : i32
    %c0_i32_0 = arith.constant 0 : i32
    %c0_i32_1 = arith.constant 0 : i32
    return %c0_i32, %c0_i32_0 : i32, i32
  }
  func.func @transform_19(%arg0: i32) -> (i32, i32) {
    %c0_i32 = arith.constant 0 : i32
    %c0_i32_0 = arith.constant 0 : i32
    %c0_i32_1 = arith.constant 0 : i32
    return %c0_i32, %c0_i32_0 : i32, i32
  }
  func.func @transform_20(%arg0: i32) -> (i32, i32) {
    %c0_i32 = arith.constant 0 : i32
    %c0_i32_0 = arith.constant 0 : i32
    %c0_i32_1 = arith.constant 0 : i32
    return %c0_i32, %c0_i32_0 : i32, i32
  }
  func.func @transform_21(%arg0: i32) -> (i32, i32, i32) {
    %c0_i32 = arith.constant 0 : i32
    %c0_i32_0 = arith.constant 0 : i32
    %c0_i32_1 = arith.constant 0 : i32
    return %arg0, %c0_i32, %c0_i32_0 : i32, i32, i32
  }
}

module attributes {stable_mosaic.version = 11 : i64} {
  func.func @_cross_score_kernel(%arg0: i32, %arg1: i32, %arg2: memref<1x4x32xf32, #tpu.memory_space<vmem>>, %arg3: memref<1x8x32xf32, #tpu.memory_space<vmem>>, %arg4: memref<1x1x8xf32, #tpu.memory_space<vmem>>, %arg5: memref<32x32xf32, #tpu.memory_space<vmem>>, %arg6: memref<1x32xf32, #tpu.memory_space<vmem>>, %arg7: memref<32x32xf32, #tpu.memory_space<vmem>>, %arg8: memref<1x32xf32, #tpu.memory_space<vmem>>, %arg9: memref<32x32xf32, #tpu.memory_space<vmem>>, %arg10: memref<1x32xf32, #tpu.memory_space<vmem>>, %arg11: memref<32x32xf32, #tpu.memory_space<vmem>>, %arg12: memref<1x32xf32, #tpu.memory_space<vmem>>, %arg13: memref<32x32xf32, #tpu.memory_space<vmem>>, %arg14: memref<1x32xf32, #tpu.memory_space<vmem>>, %arg15: memref<32x32xf32, #tpu.memory_space<vmem>>, %arg16: memref<1x32xf32, #tpu.memory_space<vmem>>, %arg17: memref<32x32xf32, #tpu.memory_space<vmem>>, %arg18: memref<1x32xf32, #tpu.memory_space<vmem>>, %arg19: memref<32x32xf32, #tpu.memory_space<vmem>>, %arg20: memref<1x32xf32, #tpu.memory_space<vmem>>, %arg21: memref<1x32xf32, #tpu.memory_space<vmem>>, %arg22: memref<1x32xf32, #tpu.memory_space<vmem>>, %arg23: memref<1x32xf32, #tpu.memory_space<vmem>>, %arg24: memref<32x96xf32, #tpu.memory_space<vmem>>, %arg25: memref<1x96xf32, #tpu.memory_space<vmem>>, %arg26: memref<32x32xf32, #tpu.memory_space<vmem>>, %arg27: memref<1x32xf32, #tpu.memory_space<vmem>>, %arg28: memref<1x32xf32, #tpu.memory_space<vmem>>, %arg29: memref<1x32xf32, #tpu.memory_space<vmem>>, %arg30: memref<32x128xf32, #tpu.memory_space<vmem>>, %arg31: memref<1x128xf32, #tpu.memory_space<vmem>>, %arg32: memref<128x32xf32, #tpu.memory_space<vmem>>, %arg33: memref<1x32xf32, #tpu.memory_space<vmem>>, %arg34: memref<1x32xf32, #tpu.memory_space<vmem>>, %arg35: memref<1x1xf32, #tpu.memory_space<vmem>>, %arg36: memref<1x1x1x1xf32, #tpu.memory_space<vmem>>, %arg37: memref<13x32xf32, #tpu.memory_space<vmem>>) attributes {dimension_semantics = [#tpu.dimension_semantics<parallel>, #tpu.dimension_semantics<parallel>], iteration_bounds = array<i64: 2, 2>, scalar_prefetch = 0 : i64, scratch_operands = 1 : i64, tpu.core_type = #tpu.core_type<tc>, window_params = [{transform_indices = @transform_0, window_bounds = array<i64: 1, 4, 32>}, {transform_indices = @transform_1, window_bounds = array<i64: 1, 8, 32>}, {transform_indices = @transform_2, window_bounds = array<i64: 1, 1, 8>}, {pipeline_mode = #tpu.pipeline_mode<synchronous>, transform_indices = @transform_3, window_bounds = array<i64: 32, 32>}, {pipeline_mode = #tpu.pipeline_mode<synchronous>, transform_indices = @transform_4, window_bounds = array<i64: 1, 32>}, {pipeline_mode = #tpu.pipeline_mode<synchronous>, transform_indices = @transform_5, window_bounds = array<i64: 32, 32>}, {pipeline_mode = #tpu.pipeline_mode<synchronous>, transform_indices = @transform_6, window_bounds = array<i64: 1, 32>}, {pipeline_mode = #tpu.pipeline_mode<synchronous>, transform_indices = @transform_7, window_bounds = array<i64: 32, 32>}, {pipeline_mode = #tpu.pipeline_mode<synchronous>, transform_indices = @transform_8, window_bounds = array<i64: 1, 32>}, {pipeline_mode = #tpu.pipeline_mode<synchronous>, transform_indices = @transform_9, window_bounds = array<i64: 32, 32>}, {pipeline_mode = #tpu.pipeline_mode<synchronous>, transform_indices = @transform_10, window_bounds = array<i64: 1, 32>}, {pipeline_mode = #tpu.pipeline_mode<synchronous>, transform_indices = @transform_11, window_bounds = array<i64: 32, 32>}, {pipeline_mode = #tpu.pipeline_mode<synchronous>, transform_indices = @transform_12, window_bounds = array<i64: 1, 32>}, {pipeline_mode = #tpu.pipeline_mode<synchronous>, transform_indices = @transform_13, window_bounds = array<i64: 32, 32>}, {pipeline_mode = #tpu.pipeline_mode<synchronous>, transform_indices = @transform_14, window_bounds = array<i64: 1, 32>}, {pipeline_mode = #tpu.pipeline_mode<synchronous>, transform_indices = @transform_15, window_bounds = array<i64: 32, 32>}, {pipeline_mode = #tpu.pipeline_mode<synchronous>, transform_indices = @transform_16, window_bounds = array<i64: 1, 32>}, {pipeline_mode = #tpu.pipeline_mode<synchronous>, transform_indices = @transform_17, window_bounds = array<i64: 32, 32>}, {pipeline_mode = #tpu.pipeline_mode<synchronous>, transform_indices = @transform_18, window_bounds = array<i64: 1, 32>}, {pipeline_mode = #tpu.pipeline_mode<synchronous>, transform_indices = @transform_19, window_bounds = array<i64: 1, 32>}, {pipeline_mode = #tpu.pipeline_mode<synchronous>, transform_indices = @transform_20, window_bounds = array<i64: 1, 32>}, {pipeline_mode = #tpu.pipeline_mode<synchronous>, transform_indices = @transform_21, window_bounds = array<i64: 1, 32>}, {pipeline_mode = #tpu.pipeline_mode<synchronous>, transform_indices = @transform_22, window_bounds = array<i64: 32, 96>}, {pipeline_mode = #tpu.pipeline_mode<synchronous>, transform_indices = @transform_23, window_bounds = array<i64: 1, 96>}, {pipeline_mode = #tpu.pipeline_mode<synchronous>, transform_indices = @transform_24, window_bounds = array<i64: 32, 32>}, {pipeline_mode = #tpu.pipeline_mode<synchronous>, transform_indices = @transform_25, window_bounds = array<i64: 1, 32>}, {pipeline_mode = #tpu.pipeline_mode<synchronous>, transform_indices = @transform_26, window_bounds = array<i64: 1, 32>}, {pipeline_mode = #tpu.pipeline_mode<synchronous>, transform_indices = @transform_27, window_bounds = array<i64: 1, 32>}, {pipeline_mode = #tpu.pipeline_mode<synchronous>, transform_indices = @transform_28, window_bounds = array<i64: 32, 128>}, {pipeline_mode = #tpu.pipeline_mode<synchronous>, transform_indices = @transform_29, window_bounds = array<i64: 1, 128>}, {pipeline_mode = #tpu.pipeline_mode<synchronous>, transform_indices = @transform_30, window_bounds = array<i64: 128, 32>}, {pipeline_mode = #tpu.pipeline_mode<synchronous>, transform_indices = @transform_31, window_bounds = array<i64: 1, 32>}, {pipeline_mode = #tpu.pipeline_mode<synchronous>, transform_indices = @transform_32, window_bounds = array<i64: 1, 32>}, {pipeline_mode = #tpu.pipeline_mode<synchronous>, transform_indices = @transform_33, window_bounds = array<i64: 1, 1>}, {transform_indices = @transform_34, window_bounds = array<i64: 1, 1, 1, 1>}]} {
    %c0 = arith.constant 0 : index
    %c0_0 = arith.constant 0 : index
    %c0_1 = arith.constant 0 : index
    %0 = vector.load %arg2[%c0, %c0_0, %c0_1] : memref<1x4x32xf32, #tpu.memory_space<vmem>>, vector<1x4x32xf32>
    %1 = vector.shape_cast %0 : vector<1x4x32xf32> to vector<4x32xf32>
    %c0_2 = arith.constant 0 : index
    %c0_3 = arith.constant 0 : index
    %c0_4 = arith.constant 0 : index
    %2 = vector.load %arg3[%c0_2, %c0_3, %c0_4] : memref<1x8x32xf32, #tpu.memory_space<vmem>>, vector<1x8x32xf32>
    %3 = vector.shape_cast %2 : vector<1x8x32xf32> to vector<8x32xf32>
    %c0_5 = arith.constant 0 : index
    %c0_6 = arith.constant 0 : index
    %c0_7 = arith.constant 0 : index
    %4 = vector.load %arg4[%c0_5, %c0_6, %c0_7] : memref<1x1x8xf32, #tpu.memory_space<vmem>>, vector<1x1x8xf32>
    %5 = vector.shape_cast %4 : vector<1x1x8xf32> to vector<1x8xf32>
    %c0_8 = arith.constant 0 : index
    %c0_9 = arith.constant 0 : index
    %6 = vector.load %arg5[%c0_8, %c0_9] : memref<32x32xf32, #tpu.memory_space<vmem>>, vector<32x32xf32>
    %cst = arith.constant dense<0.000000e+00> : vector<4x32xf32>
    %7 = tpu.matmul %1, %6, %cst {dimension_numbers = #tpu.dot_dimension_numbers<[1], [0], [0], [1], [0, 0, 1, 1], [], []>} : vector<4x32xf32>, vector<32x32xf32>, vector<4x32xf32> -> vector<4x32xf32>
    %c0_10 = arith.constant 0 : index
    %c0_11 = arith.constant 0 : index
    %8 = vector.load %arg6[%c0_10, %c0_11] : memref<1x32xf32, #tpu.memory_space<vmem>>, vector<1x32xf32>
    %9 = vector.broadcast %8 : vector<1x32xf32> to vector<4x32xf32>
    %10 = arith.addf %7, %9 : vector<4x32xf32>
    %c0_12 = arith.constant 0 : index
    %c0_13 = arith.constant 0 : index
    %11 = vector.load %arg7[%c0_12, %c0_13] : memref<32x32xf32, #tpu.memory_space<vmem>>, vector<32x32xf32>
    %cst_14 = arith.constant dense<0.000000e+00> : vector<8x32xf32>
    %12 = tpu.matmul %3, %11, %cst_14 {dimension_numbers = #tpu.dot_dimension_numbers<[1], [0], [0], [1], [0, 0, 1, 1], [], []>} : vector<8x32xf32>, vector<32x32xf32>, vector<8x32xf32> -> vector<8x32xf32>
    %c0_15 = arith.constant 0 : index
    %c0_16 = arith.constant 0 : index
    %13 = vector.load %arg8[%c0_15, %c0_16] : memref<1x32xf32, #tpu.memory_space<vmem>>, vector<1x32xf32>
    %14 = vector.broadcast %13 : vector<1x32xf32> to vector<8x32xf32>
    %15 = arith.addf %12, %14 : vector<8x32xf32>
    %c0_17 = arith.constant 0 : index
    %c0_18 = arith.constant 0 : index
    %16 = vector.load %arg9[%c0_17, %c0_18] : memref<32x32xf32, #tpu.memory_space<vmem>>, vector<32x32xf32>
    %cst_19 = arith.constant dense<0.000000e+00> : vector<8x32xf32>
    %17 = tpu.matmul %3, %16, %cst_19 {dimension_numbers = #tpu.dot_dimension_numbers<[1], [0], [0], [1], [0, 0, 1, 1], [], []>} : vector<8x32xf32>, vector<32x32xf32>, vector<8x32xf32> -> vector<8x32xf32>
    %c0_20 = arith.constant 0 : index
    %c0_21 = arith.constant 0 : index
    %18 = vector.load %arg10[%c0_20, %c0_21] : memref<1x32xf32, #tpu.memory_space<vmem>>, vector<1x32xf32>
    %19 = vector.broadcast %18 : vector<1x32xf32> to vector<8x32xf32>
    %20 = arith.addf %17, %19 : vector<8x32xf32>
    %cst_22 = arith.constant dense<0.000000e+00> : vector<4x8xf32>
    %21 = tpu.matmul %10, %15, %cst_22 {dimension_numbers = #tpu.dot_dimension_numbers<[1], [1], [0], [0], [0, 0, 1, 0], [], []>} : vector<4x32xf32>, vector<8x32xf32>, vector<4x8xf32> -> vector<4x8xf32>
    %cst_23 = arith.constant 0.176776692 : f32
    %22 = vector.broadcast %cst_23 : f32 to vector<4x8xf32>
    %23 = arith.mulf %21, %22 : vector<4x8xf32>
    %24 = vector.broadcast %5 : vector<1x8xf32> to vector<4x8xf32>
    %25 = arith.addf %23, %24 : vector<4x8xf32>
    %cst_24 = arith.constant dense<0xFF800000> : vector<4xf32>
    %26 = vector.multi_reduction <maximumf>, %25, %cst_24 [1] : vector<4x8xf32> to vector<4xf32>
    %27 = vector.shape_cast %26 : vector<4xf32> to vector<4x1xf32>
    %28 = vector.broadcast %27 : vector<4x1xf32> to vector<4x8xf32>
    %29 = arith.subf %25, %28 : vector<4x8xf32>
    %30 = math.exp %29 : vector<4x8xf32>
    %cst_25 = arith.constant dense<0.000000e+00> : vector<4xf32>
    %31 = vector.multi_reduction <add>, %30, %cst_25 [1] : vector<4x8xf32> to vector<4xf32>
    %32 = vector.shape_cast %31 : vector<4xf32> to vector<4x1xf32>
    %33 = tpu.reciprocal %32 {approx = true} : vector<4x1xf32> -> vector<4x1xf32>
    %34 = vector.broadcast %33 : vector<4x1xf32> to vector<4x8xf32>
    %35 = arith.mulf %30, %34 : vector<4x8xf32>
    %cst_26 = arith.constant dense<0.000000e+00> : vector<4x32xf32>
    %36 = tpu.matmul %35, %20, %cst_26 {dimension_numbers = #tpu.dot_dimension_numbers<[1], [0], [0], [1], [0, 0, 1, 1], [], []>} : vector<4x8xf32>, vector<8x32xf32>, vector<4x32xf32> -> vector<4x32xf32>
    %c0_27 = arith.constant 0 : index
    %c0_28 = arith.constant 0 : index
    %37 = vector.load %arg11[%c0_27, %c0_28] : memref<32x32xf32, #tpu.memory_space<vmem>>, vector<32x32xf32>
    %cst_29 = arith.constant dense<0.000000e+00> : vector<4x32xf32>
    %38 = tpu.matmul %36, %37, %cst_29 {dimension_numbers = #tpu.dot_dimension_numbers<[1], [0], [0], [1], [0, 0, 1, 1], [], []>} : vector<4x32xf32>, vector<32x32xf32>, vector<4x32xf32> -> vector<4x32xf32>
    %c0_30 = arith.constant 0 : index
    %c0_31 = arith.constant 0 : index
    %39 = vector.load %arg12[%c0_30, %c0_31] : memref<1x32xf32, #tpu.memory_space<vmem>>, vector<1x32xf32>
    %40 = vector.broadcast %39 : vector<1x32xf32> to vector<4x32xf32>
    %41 = arith.addf %38, %40 : vector<4x32xf32>
    %42 = arith.addf %1, %41 : vector<4x32xf32>
    %c0_32 = arith.constant 0 : index
    %c0_33 = arith.constant 0 : index
    %43 = vector.load %arg13[%c0_32, %c0_33] : memref<32x32xf32, #tpu.memory_space<vmem>>, vector<32x32xf32>
    %cst_34 = arith.constant dense<0.000000e+00> : vector<8x32xf32>
    %44 = tpu.matmul %3, %43, %cst_34 {dimension_numbers = #tpu.dot_dimension_numbers<[1], [0], [0], [1], [0, 0, 1, 1], [], []>} : vector<8x32xf32>, vector<32x32xf32>, vector<8x32xf32> -> vector<8x32xf32>
    %c0_35 = arith.constant 0 : index
    %c0_36 = arith.constant 0 : index
    %45 = vector.load %arg14[%c0_35, %c0_36] : memref<1x32xf32, #tpu.memory_space<vmem>>, vector<1x32xf32>
    %46 = vector.broadcast %45 : vector<1x32xf32> to vector<8x32xf32>
    %47 = arith.addf %44, %46 : vector<8x32xf32>
    %c0_37 = arith.constant 0 : index
    %c0_38 = arith.constant 0 : index
    %48 = vector.load %arg15[%c0_37, %c0_38] : memref<32x32xf32, #tpu.memory_space<vmem>>, vector<32x32xf32>
    %cst_39 = arith.constant dense<0.000000e+00> : vector<4x32xf32>
    %49 = tpu.matmul %1, %48, %cst_39 {dimension_numbers = #tpu.dot_dimension_numbers<[1], [0], [0], [1], [0, 0, 1, 1], [], []>} : vector<4x32xf32>, vector<32x32xf32>, vector<4x32xf32> -> vector<4x32xf32>
    %c0_40 = arith.constant 0 : index
    %c0_41 = arith.constant 0 : index
    %50 = vector.load %arg16[%c0_40, %c0_41] : memref<1x32xf32, #tpu.memory_space<vmem>>, vector<1x32xf32>
    %51 = vector.broadcast %50 : vector<1x32xf32> to vector<4x32xf32>
    %52 = arith.addf %49, %51 : vector<4x32xf32>
    %c0_42 = arith.constant 0 : index
    %c0_43 = arith.constant 0 : index
    %53 = vector.load %arg17[%c0_42, %c0_43] : memref<32x32xf32, #tpu.memory_space<vmem>>, vector<32x32xf32>
    %cst_44 = arith.constant dense<0.000000e+00> : vector<4x32xf32>
    %54 = tpu.matmul %1, %53, %cst_44 {dimension_numbers = #tpu.dot_dimension_numbers<[1], [0], [0], [1], [0, 0, 1, 1], [], []>} : vector<4x32xf32>, vector<32x32xf32>, vector<4x32xf32> -> vector<4x32xf32>
    %c0_45 = arith.constant 0 : index
    %c0_46 = arith.constant 0 : index
    %55 = vector.load %arg18[%c0_45, %c0_46] : memref<1x32xf32, #tpu.memory_space<vmem>>, vector<1x32xf32>
    %56 = vector.broadcast %55 : vector<1x32xf32> to vector<4x32xf32>
    %57 = arith.addf %54, %56 : vector<4x32xf32>
    %cst_47 = arith.constant dense<0.000000e+00> : vector<8x4xf32>
    %58 = tpu.matmul %47, %52, %cst_47 {dimension_numbers = #tpu.dot_dimension_numbers<[1], [1], [0], [0], [0, 0, 1, 0], [], []>} : vector<8x32xf32>, vector<4x32xf32>, vector<8x4xf32> -> vector<8x4xf32>
    %cst_48 = arith.constant 0.176776692 : f32
    %59 = vector.broadcast %cst_48 : f32 to vector<8x4xf32>
    %60 = arith.mulf %58, %59 : vector<8x4xf32>
    %cst_49 = arith.constant dense<0xFF800000> : vector<8xf32>
    %61 = vector.multi_reduction <maximumf>, %60, %cst_49 [1] : vector<8x4xf32> to vector<8xf32>
    %62 = vector.shape_cast %61 : vector<8xf32> to vector<8x1xf32>
    %63 = vector.broadcast %62 : vector<8x1xf32> to vector<8x4xf32>
    %64 = arith.subf %60, %63 : vector<8x4xf32>
    %65 = math.exp %64 : vector<8x4xf32>
    %cst_50 = arith.constant dense<0.000000e+00> : vector<8xf32>
    %66 = vector.multi_reduction <add>, %65, %cst_50 [1] : vector<8x4xf32> to vector<8xf32>
    %67 = vector.shape_cast %66 : vector<8xf32> to vector<8x1xf32>
    %68 = tpu.reciprocal %67 {approx = true} : vector<8x1xf32> -> vector<8x1xf32>
    %69 = vector.broadcast %68 : vector<8x1xf32> to vector<8x4xf32>
    %70 = arith.mulf %65, %69 : vector<8x4xf32>
    %cst_51 = arith.constant dense<0.000000e+00> : vector<8x32xf32>
    %71 = tpu.matmul %70, %57, %cst_51 {dimension_numbers = #tpu.dot_dimension_numbers<[1], [0], [0], [1], [0, 0, 1, 1], [], []>} : vector<8x4xf32>, vector<4x32xf32>, vector<8x32xf32> -> vector<8x32xf32>
    %c0_52 = arith.constant 0 : index
    %c0_53 = arith.constant 0 : index
    %72 = vector.load %arg19[%c0_52, %c0_53] : memref<32x32xf32, #tpu.memory_space<vmem>>, vector<32x32xf32>
    %cst_54 = arith.constant dense<0.000000e+00> : vector<8x32xf32>
    %73 = tpu.matmul %71, %72, %cst_54 {dimension_numbers = #tpu.dot_dimension_numbers<[1], [0], [0], [1], [0, 0, 1, 1], [], []>} : vector<8x32xf32>, vector<32x32xf32>, vector<8x32xf32> -> vector<8x32xf32>
    %c0_55 = arith.constant 0 : index
    %c0_56 = arith.constant 0 : index
    %74 = vector.load %arg20[%c0_55, %c0_56] : memref<1x32xf32, #tpu.memory_space<vmem>>, vector<1x32xf32>
    %75 = vector.broadcast %74 : vector<1x32xf32> to vector<8x32xf32>
    %76 = arith.addf %73, %75 : vector<8x32xf32>
    %77 = arith.addf %3, %76 : vector<8x32xf32>
    %c0_57 = arith.constant 0 : index
    %c0_58 = arith.constant 0 : index
    %78 = vector.load %arg21[%c0_57, %c0_58] : memref<1x32xf32, #tpu.memory_space<vmem>>, vector<1x32xf32>
    %c0_59 = arith.constant 0 : index
    %c0_60 = arith.constant 0 : index
    %79 = vector.load %arg37[%c0_59, %c0_60] : memref<13x32xf32, #tpu.memory_space<vmem>>, vector<1x32xf32>
    tpu.vector_store %arg37[%c0_59, %c0_60], %78 {strides = array<i32>} : memref<13x32xf32, #tpu.memory_space<vmem>>, vector<1x32xf32>,
    %c1 = arith.constant 1 : index
    %c0_61 = arith.constant 0 : index
    %80 = vector.load %arg37[%c1, %c0_61] : memref<13x32xf32, #tpu.memory_space<vmem>>, vector<4x32xf32>
    tpu.vector_store %arg37[%c1, %c0_61], %42 {strides = array<i32>} : memref<13x32xf32, #tpu.memory_space<vmem>>, vector<4x32xf32>,
    %c5 = arith.constant 5 : index
    %c0_62 = arith.constant 0 : index
    %81 = vector.load %arg37[%c5, %c0_62] : memref<13x32xf32, #tpu.memory_space<vmem>>, vector<8x32xf32>
    tpu.vector_store %arg37[%c5, %c0_62], %77 {strides = array<i32>} : memref<13x32xf32, #tpu.memory_space<vmem>>, vector<8x32xf32>,
    %c0_63 = arith.constant 0 : index
    %c0_64 = arith.constant 0 : index
    %82 = vector.load %arg37[%c0_63, %c0_64] : memref<13x32xf32, #tpu.memory_space<vmem>>, vector<13x32xf32>
    %c0_65 = arith.constant 0 : index
    %c0_66 = arith.constant 0 : index
    %83 = vector.load %arg22[%c0_65, %c0_66] : memref<1x32xf32, #tpu.memory_space<vmem>>, vector<1x32xf32>
    %c0_67 = arith.constant 0 : index
    %c0_68 = arith.constant 0 : index
    %84 = vector.load %arg23[%c0_67, %c0_68] : memref<1x32xf32, #tpu.memory_space<vmem>>, vector<1x32xf32>
    %c0_69 = arith.constant 0 : index
    %c0_70 = arith.constant 0 : index
    %85 = vector.load %arg24[%c0_69, %c0_70] : memref<32x96xf32, #tpu.memory_space<vmem>>, vector<32x96xf32>
    %c0_71 = arith.constant 0 : index
    %c0_72 = arith.constant 0 : index
    %86 = vector.load %arg25[%c0_71, %c0_72] : memref<1x96xf32, #tpu.memory_space<vmem>>, vector<1x96xf32>
    %c0_73 = arith.constant 0 : index
    %c0_74 = arith.constant 0 : index
    %87 = vector.load %arg26[%c0_73, %c0_74] : memref<32x32xf32, #tpu.memory_space<vmem>>, vector<32x32xf32>
    %c0_75 = arith.constant 0 : index
    %c0_76 = arith.constant 0 : index
    %88 = vector.load %arg27[%c0_75, %c0_76] : memref<1x32xf32, #tpu.memory_space<vmem>>, vector<1x32xf32>
    %c0_77 = arith.constant 0 : index
    %c0_78 = arith.constant 0 : index
    %89 = vector.load %arg28[%c0_77, %c0_78] : memref<1x32xf32, #tpu.memory_space<vmem>>, vector<1x32xf32>
    %c0_79 = arith.constant 0 : index
    %c0_80 = arith.constant 0 : index
    %90 = vector.load %arg29[%c0_79, %c0_80] : memref<1x32xf32, #tpu.memory_space<vmem>>, vector<1x32xf32>
    %c0_81 = arith.constant 0 : index
    %c0_82 = arith.constant 0 : index
    %91 = vector.load %arg30[%c0_81, %c0_82] : memref<32x128xf32, #tpu.memory_space<vmem>>, vector<32x128xf32>
    %c0_83 = arith.constant 0 : index
    %c0_84 = arith.constant 0 : index
    %92 = vector.load %arg31[%c0_83, %c0_84] : memref<1x128xf32, #tpu.memory_space<vmem>>, vector<1x128xf32>
    %c0_85 = arith.constant 0 : index
    %c0_86 = arith.constant 0 : index
    %93 = vector.load %arg32[%c0_85, %c0_86] : memref<128x32xf32, #tpu.memory_space<vmem>>, vector<128x32xf32>
    %c0_87 = arith.constant 0 : index
    %c0_88 = arith.constant 0 : index
    %94 = vector.load %arg33[%c0_87, %c0_88] : memref<1x32xf32, #tpu.memory_space<vmem>>, vector<1x32xf32>
    %cst_89 = arith.constant dense<0.000000e+00> : vector<13xf32>
    %95 = vector.multi_reduction <add>, %82, %cst_89 [1] : vector<13x32xf32> to vector<13xf32>
    %96 = vector.shape_cast %95 : vector<13xf32> to vector<13x1xf32>
    %cst_90 = arith.constant 3.200000e+01 : f32
    %97 = vector.broadcast %cst_90 : f32 to vector<13x1xf32>
    %98 = arith.divf %96, %97 : vector<13x1xf32>
    %99 = vector.broadcast %98 : vector<13x1xf32> to vector<13x32xf32>
    %100 = arith.subf %82, %99 : vector<13x32xf32>
    %101 = arith.mulf %100, %100 : vector<13x32xf32>
    %cst_91 = arith.constant dense<0.000000e+00> : vector<13xf32>
    %102 = vector.multi_reduction <add>, %101, %cst_91 [1] : vector<13x32xf32> to vector<13xf32>
    %103 = vector.shape_cast %102 : vector<13xf32> to vector<13x1xf32>
    %cst_92 = arith.constant 3.200000e+01 : f32
    %104 = vector.broadcast %cst_92 : f32 to vector<13x1xf32>
    %105 = arith.divf %103, %104 : vector<13x1xf32>
    %106 = vector.broadcast %98 : vector<13x1xf32> to vector<13x32xf32>
    %107 = arith.subf %82, %106 : vector<13x32xf32>
    %cst_93 = arith.constant 9.99999974E-6 : f32
    %108 = vector.broadcast %cst_93 : f32 to vector<13x1xf32>
    %109 = arith.addf %105, %108 : vector<13x1xf32>
    %110 = math.rsqrt %109 : vector<13x1xf32>
    %111 = vector.broadcast %110 : vector<13x1xf32> to vector<13x32xf32>
    %112 = arith.mulf %107, %111 : vector<13x32xf32>
    %113 = vector.broadcast %83 : vector<1x32xf32> to vector<13x32xf32>
    %114 = arith.mulf %112, %113 : vector<13x32xf32>
    %115 = vector.broadcast %84 : vector<1x32xf32> to vector<13x32xf32>
    %116 = arith.addf %114, %115 : vector<13x32xf32>
    %cst_94 = arith.constant dense<0.000000e+00> : vector<13x96xf32>
    %117 = tpu.matmul %116, %85, %cst_94 {dimension_numbers = #tpu.dot_dimension_numbers<[1], [0], [0], [1], [0, 0, 1, 1], [], []>} : vector<13x32xf32>, vector<32x96xf32>, vector<13x96xf32> -> vector<13x96xf32>
    %118 = vector.broadcast %86 : vector<1x96xf32> to vector<13x96xf32>
    %119 = arith.addf %117, %118 : vector<13x96xf32>
    %120 = vector.extract_strided_slice %119 {offsets = [0, 0], sizes = [13, 8], strides = [1, 1]} : vector<13x96xf32> to vector<13x8xf32>
    %121 = vector.extract_strided_slice %119 {offsets = [0, 32], sizes = [13, 8], strides = [1, 1]} : vector<13x96xf32> to vector<13x8xf32>
    %122 = vector.extract_strided_slice %119 {offsets = [0, 64], sizes = [13, 8], strides = [1, 1]} : vector<13x96xf32> to vector<13x8xf32>
    %cst_95 = arith.constant dense<0.000000e+00> : vector<13x13xf32>
    %123 = tpu.matmul %120, %121, %cst_95 {dimension_numbers = #tpu.dot_dimension_numbers<[1], [1], [0], [0], [0, 0, 1, 0], [], []>} : vector<13x8xf32>, vector<13x8xf32>, vector<13x13xf32> -> vector<13x13xf32>
    %cst_96 = arith.constant 0.353553385 : f32
    %124 = vector.broadcast %cst_96 : f32 to vector<13x13xf32>
    %125 = arith.mulf %123, %124 : vector<13x13xf32>
    %cst_97 = arith.constant dense<0xFF800000> : vector<13xf32>
    %126 = vector.multi_reduction <maximumf>, %125, %cst_97 [1] : vector<13x13xf32> to vector<13xf32>
    %127 = vector.shape_cast %126 : vector<13xf32> to vector<13x1xf32>
    %128 = vector.broadcast %127 : vector<13x1xf32> to vector<13x13xf32>
    %129 = arith.subf %125, %128 : vector<13x13xf32>
    %130 = math.exp %129 : vector<13x13xf32>
    %cst_98 = arith.constant dense<0.000000e+00> : vector<13xf32>
    %131 = vector.multi_reduction <add>, %130, %cst_98 [1] : vector<13x13xf32> to vector<13xf32>
    %132 = vector.shape_cast %131 : vector<13xf32> to vector<13x1xf32>
    %133 = tpu.reciprocal %132 {approx = true} : vector<13x1xf32> -> vector<13x1xf32>
    %134 = vector.broadcast %133 : vector<13x1xf32> to vector<13x13xf32>
    %135 = arith.mulf %130, %134 : vector<13x13xf32>
    %cst_99 = arith.constant dense<0.000000e+00> : vector<13x8xf32>
    %136 = tpu.matmul %135, %122, %cst_99 {dimension_numbers = #tpu.dot_dimension_numbers<[1], [0], [0], [1], [0, 0, 1, 1], [], []>} : vector<13x13xf32>, vector<13x8xf32>, vector<13x8xf32> -> vector<13x8xf32>
    %137 = vector.extract_strided_slice %87 {offsets = [0, 0], sizes = [8, 32], strides = [1, 1]} : vector<32x32xf32> to vector<8x32xf32>
    %cst_100 = arith.constant dense<0.000000e+00> : vector<13x32xf32>
    %138 = tpu.matmul %136, %137, %cst_100 {dimension_numbers = #tpu.dot_dimension_numbers<[1], [0], [0], [1], [0, 0, 1, 1], [], []>} : vector<13x8xf32>, vector<8x32xf32>, vector<13x32xf32> -> vector<13x32xf32>
    %139 = vector.broadcast %88 : vector<1x32xf32> to vector<13x32xf32>
    %140 = arith.addf %139, %138 : vector<13x32xf32>
    %141 = vector.extract_strided_slice %119 {offsets = [0, 8], sizes = [13, 8], strides = [1, 1]} : vector<13x96xf32> to vector<13x8xf32>
    %142 = vector.extract_strided_slice %119 {offsets = [0, 40], sizes = [13, 8], strides = [1, 1]} : vector<13x96xf32> to vector<13x8xf32>
    %143 = vector.extract_strided_slice %119 {offsets = [0, 72], sizes = [13, 8], strides = [1, 1]} : vector<13x96xf32> to vector<13x8xf32>
    %cst_101 = arith.constant dense<0.000000e+00> : vector<13x13xf32>
    %144 = tpu.matmul %141, %142, %cst_101 {dimension_numbers = #tpu.dot_dimension_numbers<[1], [1], [0], [0], [0, 0, 1, 0], [], []>} : vector<13x8xf32>, vector<13x8xf32>, vector<13x13xf32> -> vector<13x13xf32>
    %cst_102 = arith.constant 0.353553385 : f32
    %145 = vector.broadcast %cst_102 : f32 to vector<13x13xf32>
    %146 = arith.mulf %144, %145 : vector<13x13xf32>
    %cst_103 = arith.constant dense<0xFF800000> : vector<13xf32>
    %147 = vector.multi_reduction <maximumf>, %146, %cst_103 [1] : vector<13x13xf32> to vector<13xf32>
    %148 = vector.shape_cast %147 : vector<13xf32> to vector<13x1xf32>
    %149 = vector.broadcast %148 : vector<13x1xf32> to vector<13x13xf32>
    %150 = arith.subf %146, %149 : vector<13x13xf32>
    %151 = math.exp %150 : vector<13x13xf32>
    %cst_104 = arith.constant dense<0.000000e+00> : vector<13xf32>
    %152 = vector.multi_reduction <add>, %151, %cst_104 [1] : vector<13x13xf32> to vector<13xf32>
    %153 = vector.shape_cast %152 : vector<13xf32> to vector<13x1xf32>
    %154 = tpu.reciprocal %153 {approx = true} : vector<13x1xf32> -> vector<13x1xf32>
    %155 = vector.broadcast %154 : vector<13x1xf32> to vector<13x13xf32>
    %156 = arith.mulf %151, %155 : vector<13x13xf32>
    %cst_105 = arith.constant dense<0.000000e+00> : vector<13x8xf32>
    %157 = tpu.matmul %156, %143, %cst_105 {dimension_numbers = #tpu.dot_dimension_numbers<[1], [0], [0], [1], [0, 0, 1, 1], [], []>} : vector<13x13xf32>, vector<13x8xf32>, vector<13x8xf32> -> vector<13x8xf32>
    %158 = vector.extract_strided_slice %87 {offsets = [8, 0], sizes = [8, 32], strides = [1, 1]} : vector<32x32xf32> to vector<8x32xf32>
    %cst_106 = arith.constant dense<0.000000e+00> : vector<13x32xf32>
    %159 = tpu.matmul %157, %158, %cst_106 {dimension_numbers = #tpu.dot_dimension_numbers<[1], [0], [0], [1], [0, 0, 1, 1], [], []>} : vector<13x8xf32>, vector<8x32xf32>, vector<13x32xf32> -> vector<13x32xf32>
    %160 = arith.addf %140, %159 : vector<13x32xf32>
    %161 = vector.extract_strided_slice %119 {offsets = [0, 16], sizes = [13, 8], strides = [1, 1]} : vector<13x96xf32> to vector<13x8xf32>
    %162 = vector.extract_strided_slice %119 {offsets = [0, 48], sizes = [13, 8], strides = [1, 1]} : vector<13x96xf32> to vector<13x8xf32>
    %163 = vector.extract_strided_slice %119 {offsets = [0, 80], sizes = [13, 8], strides = [1, 1]} : vector<13x96xf32> to vector<13x8xf32>
    %cst_107 = arith.constant dense<0.000000e+00> : vector<13x13xf32>
    %164 = tpu.matmul %161, %162, %cst_107 {dimension_numbers = #tpu.dot_dimension_numbers<[1], [1], [0], [0], [0, 0, 1, 0], [], []>} : vector<13x8xf32>, vector<13x8xf32>, vector<13x13xf32> -> vector<13x13xf32>
    %cst_108 = arith.constant 0.353553385 : f32
    %165 = vector.broadcast %cst_108 : f32 to vector<13x13xf32>
    %166 = arith.mulf %164, %165 : vector<13x13xf32>
    %cst_109 = arith.constant dense<0xFF800000> : vector<13xf32>
    %167 = vector.multi_reduction <maximumf>, %166, %cst_109 [1] : vector<13x13xf32> to vector<13xf32>
    %168 = vector.shape_cast %167 : vector<13xf32> to vector<13x1xf32>
    %169 = vector.broadcast %168 : vector<13x1xf32> to vector<13x13xf32>
    %170 = arith.subf %166, %169 : vector<13x13xf32>
    %171 = math.exp %170 : vector<13x13xf32>
    %cst_110 = arith.constant dense<0.000000e+00> : vector<13xf32>
    %172 = vector.multi_reduction <add>, %171, %cst_110 [1] : vector<13x13xf32> to vector<13xf32>
    %173 = vector.shape_cast %172 : vector<13xf32> to vector<13x1xf32>
    %174 = tpu.reciprocal %173 {approx = true} : vector<13x1xf32> -> vector<13x1xf32>
    %175 = vector.broadcast %174 : vector<13x1xf32> to vector<13x13xf32>
    %176 = arith.mulf %171, %175 : vector<13x13xf32>
    %cst_111 = arith.constant dense<0.000000e+00> : vector<13x8xf32>
    %177 = tpu.matmul %176, %163, %cst_111 {dimension_numbers = #tpu.dot_dimension_numbers<[1], [0], [0], [1], [0, 0, 1, 1], [], []>} : vector<13x13xf32>, vector<13x8xf32>, vector<13x8xf32> -> vector<13x8xf32>
    %178 = vector.extract_strided_slice %87 {offsets = [16, 0], sizes = [8, 32], strides = [1, 1]} : vector<32x32xf32> to vector<8x32xf32>
    %cst_112 = arith.constant dense<0.000000e+00> : vector<13x32xf32>
    %179 = tpu.matmul %177, %178, %cst_112 {dimension_numbers = #tpu.dot_dimension_numbers<[1], [0], [0], [1], [0, 0, 1, 1], [], []>} : vector<13x8xf32>, vector<8x32xf32>, vector<13x32xf32> -> vector<13x32xf32>
    %180 = arith.addf %160, %179 : vector<13x32xf32>
    %181 = vector.extract_strided_slice %119 {offsets = [0, 24], sizes = [13, 8], strides = [1, 1]} : vector<13x96xf32> to vector<13x8xf32>
    %182 = vector.extract_strided_slice %119 {offsets = [0, 56], sizes = [13, 8], strides = [1, 1]} : vector<13x96xf32> to vector<13x8xf32>
    %183 = vector.extract_strided_slice %119 {offsets = [0, 88], sizes = [13, 8], strides = [1, 1]} : vector<13x96xf32> to vector<13x8xf32>
    %cst_113 = arith.constant dense<0.000000e+00> : vector<13x13xf32>
    %184 = tpu.matmul %181, %182, %cst_113 {dimension_numbers = #tpu.dot_dimension_numbers<[1], [1], [0], [0], [0, 0, 1, 0], [], []>} : vector<13x8xf32>, vector<13x8xf32>, vector<13x13xf32> -> vector<13x13xf32>
    %cst_114 = arith.constant 0.353553385 : f32
    %185 = vector.broadcast %cst_114 : f32 to vector<13x13xf32>
    %186 = arith.mulf %184, %185 : vector<13x13xf32>
    %cst_115 = arith.constant dense<0xFF800000> : vector<13xf32>
    %187 = vector.multi_reduction <maximumf>, %186, %cst_115 [1] : vector<13x13xf32> to vector<13xf32>
    %188 = vector.shape_cast %187 : vector<13xf32> to vector<13x1xf32>
    %189 = vector.broadcast %188 : vector<13x1xf32> to vector<13x13xf32>
    %190 = arith.subf %186, %189 : vector<13x13xf32>
    %191 = math.exp %190 : vector<13x13xf32>
    %cst_116 = arith.constant dense<0.000000e+00> : vector<13xf32>
    %192 = vector.multi_reduction <add>, %191, %cst_116 [1] : vector<13x13xf32> to vector<13xf32>
    %193 = vector.shape_cast %192 : vector<13xf32> to vector<13x1xf32>
    %194 = tpu.reciprocal %193 {approx = true} : vector<13x1xf32> -> vector<13x1xf32>
    %195 = vector.broadcast %194 : vector<13x1xf32> to vector<13x13xf32>
    %196 = arith.mulf %191, %195 : vector<13x13xf32>
    %cst_117 = arith.constant dense<0.000000e+00> : vector<13x8xf32>
    %197 = tpu.matmul %196, %183, %cst_117 {dimension_numbers = #tpu.dot_dimension_numbers<[1], [0], [0], [1], [0, 0, 1, 1], [], []>} : vector<13x13xf32>, vector<13x8xf32>, vector<13x8xf32> -> vector<13x8xf32>
    %198 = vector.extract_strided_slice %87 {offsets = [24, 0], sizes = [8, 32], strides = [1, 1]} : vector<32x32xf32> to vector<8x32xf32>
    %cst_118 = arith.constant dense<0.000000e+00> : vector<13x32xf32>
    %199 = tpu.matmul %197, %198, %cst_118 {dimension_numbers = #tpu.dot_dimension_numbers<[1], [0], [0], [1], [0, 0, 1, 1], [], []>} : vector<13x8xf32>, vector<8x32xf32>, vector<13x32xf32> -> vector<13x32xf32>
    %200 = arith.addf %180, %199 : vector<13x32xf32>
    %201 = arith.addf %82, %200 : vector<13x32xf32>
    %202 = vector.extract_strided_slice %201 {offsets = [0, 0], sizes = [1, 32], strides = [1, 1]} : vector<13x32xf32> to vector<1x32xf32>
    %cst_119 = arith.constant dense<0.000000e+00> : vector<1xf32>
    %203 = vector.multi_reduction <add>, %202, %cst_119 [1] : vector<1x32xf32> to vector<1xf32>
    %204 = vector.shape_cast %203 : vector<1xf32> to vector<1x1xf32>
    %cst_120 = arith.constant 3.200000e+01 : f32
    %205 = vector.broadcast %cst_120 : f32 to vector<1x1xf32>
    %206 = arith.divf %204, %205 : vector<1x1xf32>
    %207 = vector.broadcast %206 : vector<1x1xf32> to vector<1x32xf32>
    %208 = arith.subf %202, %207 : vector<1x32xf32>
    %209 = arith.mulf %208, %208 : vector<1x32xf32>
    %cst_121 = arith.constant dense<0.000000e+00> : vector<1xf32>
    %210 = vector.multi_reduction <add>, %209, %cst_121 [1] : vector<1x32xf32> to vector<1xf32>
    %211 = vector.shape_cast %210 : vector<1xf32> to vector<1x1xf32>
    %cst_122 = arith.constant 3.200000e+01 : f32
    %212 = vector.broadcast %cst_122 : f32 to vector<1x1xf32>
    %213 = arith.divf %211, %212 : vector<1x1xf32>
    %214 = vector.broadcast %206 : vector<1x1xf32> to vector<1x32xf32>
    %215 = arith.subf %202, %214 : vector<1x32xf32>
    %cst_123 = arith.constant 9.99999974E-6 : f32
    %216 = vector.broadcast %cst_123 : f32 to vector<1x1xf32>
    %217 = arith.addf %213, %216 : vector<1x1xf32>
    %218 = math.rsqrt %217 : vector<1x1xf32>
    %219 = vector.broadcast %218 : vector<1x1xf32> to vector<1x32xf32>
    %220 = arith.mulf %215, %219 : vector<1x32xf32>
    %221 = arith.mulf %220, %89 : vector<1x32xf32>
    %222 = arith.addf %221, %90 : vector<1x32xf32>
    %cst_124 = arith.constant dense<0.000000e+00> : vector<1x128xf32>
    %223 = tpu.matmul %222, %91, %cst_124 {dimension_numbers = #tpu.dot_dimension_numbers<[1], [0], [0], [1], [0, 0, 1, 1], [], []>} : vector<1x32xf32>, vector<32x128xf32>, vector<1x128xf32> -> vector<1x128xf32>
    %224 = arith.addf %223, %92 : vector<1x128xf32>
    %cst_125 = arith.constant 0.000000e+00 : f32
    %225 = vector.broadcast %cst_125 : f32 to vector<1x128xf32>
    %226 = arith.maximumf %224, %225 : vector<1x128xf32>
    %cst_126 = arith.constant dense<0.000000e+00> : vector<1x32xf32>
    %227 = tpu.matmul %226, %93, %cst_126 {dimension_numbers = #tpu.dot_dimension_numbers<[1], [0], [0], [1], [0, 0, 1, 1], [], []>} : vector<1x128xf32>, vector<128x32xf32>, vector<1x32xf32> -> vector<1x32xf32>
    %228 = arith.addf %202, %227 : vector<1x32xf32>
    %229 = arith.addf %228, %94 : vector<1x32xf32>
    %c0_127 = arith.constant 0 : index
    %c0_128 = arith.constant 0 : index
    %230 = vector.load %arg34[%c0_127, %c0_128] : memref<1x32xf32, #tpu.memory_space<vmem>>, vector<1x32xf32>
    %231 = arith.mulf %229, %230 : vector<1x32xf32>
    %cst_129 = arith.constant dense<0.000000e+00> : vector<1xf32>
    %232 = vector.multi_reduction <add>, %231, %cst_129 [1] : vector<1x32xf32> to vector<1xf32>
    %233 = vector.shape_cast %232 : vector<1xf32> to vector<1x1xf32>
    %c0_130 = arith.constant 0 : index
    %c0_131 = arith.constant 0 : index
    %234 = vector.load %arg35[%c0_130, %c0_131] : memref<1x1xf32, #tpu.memory_space<vmem>>, vector<1x1xf32>
    %235 = arith.addf %233, %234 : vector<1x1xf32>
    %c0_132 = arith.constant 0 : index
    %c0_133 = arith.constant 0 : index
    %c0_134 = arith.constant 0 : index
    %c0_135 = arith.constant 0 : index
    %236 = vector.load %arg36[%c0_132, %c0_133, %c0_134, %c0_135] : memref<1x1x1x1xf32, #tpu.memory_space<vmem>>, vector<1x1x1x1xf32>
    %237 = vector.shape_cast %236 : vector<1x1x1x1xf32> to vector<1x1xf32>
    %238 = vector.shape_cast %235 : vector<1x1xf32> to vector<1x1x1x1xf32>
    tpu.vector_store %arg36[%c0_132, %c0_133, %c0_134, %c0_135], %238 {strides = array<i32>} : memref<1x1x1x1xf32, #tpu.memory_space<vmem>>, vector<1x1x1x1xf32>,
    return
  }
  func.func @transform_0(%arg0: i32, %arg1: i32) -> (i32, i32, i32) {
    %c0_i32 = arith.constant 0 : i32
    %c0_i32_0 = arith.constant 0 : i32
    %c0_i32_1 = arith.constant 0 : i32
    return %arg0, %c0_i32, %c0_i32_0 : i32, i32, i32
  }
  func.func @transform_1(%arg0: i32, %arg1: i32) -> (i32, i32, i32) {
    %c0_i32 = arith.constant 0 : i32
    %c0_i32_0 = arith.constant 0 : i32
    %c0_i32_1 = arith.constant 0 : i32
    return %arg1, %c0_i32, %c0_i32_0 : i32, i32, i32
  }
  func.func @transform_2(%arg0: i32, %arg1: i32) -> (i32, i32, i32) {
    %c0_i32 = arith.constant 0 : i32
    %c0_i32_0 = arith.constant 0 : i32
    %c0_i32_1 = arith.constant 0 : i32
    return %arg1, %c0_i32, %c0_i32_0 : i32, i32, i32
  }
  func.func @transform_3(%arg0: i32, %arg1: i32) -> (i32, i32) {
    %c0_i32 = arith.constant 0 : i32
    %c0_i32_0 = arith.constant 0 : i32
    %c0_i32_1 = arith.constant 0 : i32
    return %c0_i32, %c0_i32_0 : i32, i32
  }
  func.func @transform_4(%arg0: i32, %arg1: i32) -> (i32, i32) {
    %c0_i32 = arith.constant 0 : i32
    %c0_i32_0 = arith.constant 0 : i32
    %c0_i32_1 = arith.constant 0 : i32
    return %c0_i32, %c0_i32_0 : i32, i32
  }
  func.func @transform_5(%arg0: i32, %arg1: i32) -> (i32, i32) {
    %c0_i32 = arith.constant 0 : i32
    %c0_i32_0 = arith.constant 0 : i32
    %c0_i32_1 = arith.constant 0 : i32
    return %c0_i32, %c0_i32_0 : i32, i32
  }
  func.func @transform_6(%arg0: i32, %arg1: i32) -> (i32, i32) {
    %c0_i32 = arith.constant 0 : i32
    %c0_i32_0 = arith.constant 0 : i32
    %c0_i32_1 = arith.constant 0 : i32
    return %c0_i32, %c0_i32_0 : i32, i32
  }
  func.func @transform_7(%arg0: i32, %arg1: i32) -> (i32, i32) {
    %c0_i32 = arith.constant 0 : i32
    %c0_i32_0 = arith.constant 0 : i32
    %c0_i32_1 = arith.constant 0 : i32
    return %c0_i32, %c0_i32_0 : i32, i32
  }
  func.func @transform_8(%arg0: i32, %arg1: i32) -> (i32, i32) {
    %c0_i32 = arith.constant 0 : i32
    %c0_i32_0 = arith.constant 0 : i32
    %c0_i32_1 = arith.constant 0 : i32
    return %c0_i32, %c0_i32_0 : i32, i32
  }
  func.func @transform_9(%arg0: i32, %arg1: i32) -> (i32, i32) {
    %c0_i32 = arith.constant 0 : i32
    %c0_i32_0 = arith.constant 0 : i32
    %c0_i32_1 = arith.constant 0 : i32
    return %c0_i32, %c0_i32_0 : i32, i32
  }
  func.func @transform_10(%arg0: i32, %arg1: i32) -> (i32, i32) {
    %c0_i32 = arith.constant 0 : i32
    %c0_i32_0 = arith.constant 0 : i32
    %c0_i32_1 = arith.constant 0 : i32
    return %c0_i32, %c0_i32_0 : i32, i32
  }
  func.func @transform_11(%arg0: i32, %arg1: i32) -> (i32, i32) {
    %c0_i32 = arith.constant 0 : i32
    %c0_i32_0 = arith.constant 0 : i32
    %c0_i32_1 = arith.constant 0 : i32
    return %c0_i32, %c0_i32_0 : i32, i32
  }
  func.func @transform_12(%arg0: i32, %arg1: i32) -> (i32, i32) {
    %c0_i32 = arith.constant 0 : i32
    %c0_i32_0 = arith.constant 0 : i32
    %c0_i32_1 = arith.constant 0 : i32
    return %c0_i32, %c0_i32_0 : i32, i32
  }
  func.func @transform_13(%arg0: i32, %arg1: i32) -> (i32, i32) {
    %c0_i32 = arith.constant 0 : i32
    %c0_i32_0 = arith.constant 0 : i32
    %c0_i32_1 = arith.constant 0 : i32
    return %c0_i32, %c0_i32_0 : i32, i32
  }
  func.func @transform_14(%arg0: i32, %arg1: i32) -> (i32, i32) {
    %c0_i32 = arith.constant 0 : i32
    %c0_i32_0 = arith.constant 0 : i32
    %c0_i32_1 = arith.constant 0 : i32
    return %c0_i32, %c0_i32_0 : i32, i32
  }
  func.func @transform_15(%arg0: i32, %arg1: i32) -> (i32, i32) {
    %c0_i32 = arith.constant 0 : i32
    %c0_i32_0 = arith.constant 0 : i32
    %c0_i32_1 = arith.constant 0 : i32
    return %c0_i32, %c0_i32_0 : i32, i32
  }
  func.func @transform_16(%arg0: i32, %arg1: i32) -> (i32, i32) {
    %c0_i32 = arith.constant 0 : i32
    %c0_i32_0 = arith.constant 0 : i32
    %c0_i32_1 = arith.constant 0 : i32
    return %c0_i32, %c0_i32_0 : i32, i32
  }
  func.func @transform_17(%arg0: i32, %arg1: i32) -> (i32, i32) {
    %c0_i32 = arith.constant 0 : i32
    %c0_i32_0 = arith.constant 0 : i32
    %c0_i32_1 = arith.constant 0 : i32
    return %c0_i32, %c0_i32_0 : i32, i32
  }
  func.func @transform_18(%arg0: i32, %arg1: i32) -> (i32, i32) {
    %c0_i32 = arith.constant 0 : i32
    %c0_i32_0 = arith.constant 0 : i32
    %c0_i32_1 = arith.constant 0 : i32
    return %c0_i32, %c0_i32_0 : i32, i32
  }
  func.func @transform_19(%arg0: i32, %arg1: i32) -> (i32, i32) {
    %c0_i32 = arith.constant 0 : i32
    %c0_i32_0 = arith.constant 0 : i32
    %c0_i32_1 = arith.constant 0 : i32
    return %c0_i32, %c0_i32_0 : i32, i32
  }
  func.func @transform_20(%arg0: i32, %arg1: i32) -> (i32, i32) {
    %c0_i32 = arith.constant 0 : i32
    %c0_i32_0 = arith.constant 0 : i32
    %c0_i32_1 = arith.constant 0 : i32
    return %c0_i32, %c0_i32_0 : i32, i32
  }
  func.func @transform_21(%arg0: i32, %arg1: i32) -> (i32, i32) {
    %c0_i32 = arith.constant 0 : i32
    %c0_i32_0 = arith.constant 0 : i32
    %c0_i32_1 = arith.constant 0 : i32
    return %c0_i32, %c0_i32_0 : i32, i32
  }
  func.func @transform_22(%arg0: i32, %arg1: i32) -> (i32, i32) {
    %c0_i32 = arith.constant 0 : i32
    %c0_i32_0 = arith.constant 0 : i32
    %c0_i32_1 = arith.constant 0 : i32
    return %c0_i32, %c0_i32_0 : i32, i32
  }
  func.func @transform_23(%arg0: i32, %arg1: i32) -> (i32, i32) {
    %c0_i32 = arith.constant 0 : i32
    %c0_i32_0 = arith.constant 0 : i32
    %c0_i32_1 = arith.constant 0 : i32
    return %c0_i32, %c0_i32_0 : i32, i32
  }
  func.func @transform_24(%arg0: i32, %arg1: i32) -> (i32, i32) {
    %c0_i32 = arith.constant 0 : i32
    %c0_i32_0 = arith.constant 0 : i32
    %c0_i32_1 = arith.constant 0 : i32
    return %c0_i32, %c0_i32_0 : i32, i32
  }
  func.func @transform_25(%arg0: i32, %arg1: i32) -> (i32, i32) {
    %c0_i32 = arith.constant 0 : i32
    %c0_i32_0 = arith.constant 0 : i32
    %c0_i32_1 = arith.constant 0 : i32
    return %c0_i32, %c0_i32_0 : i32, i32
  }
  func.func @transform_26(%arg0: i32, %arg1: i32) -> (i32, i32) {
    %c0_i32 = arith.constant 0 : i32
    %c0_i32_0 = arith.constant 0 : i32
    %c0_i32_1 = arith.constant 0 : i32
    return %c0_i32, %c0_i32_0 : i32, i32
  }
  func.func @transform_27(%arg0: i32, %arg1: i32) -> (i32, i32) {
    %c0_i32 = arith.constant 0 : i32
    %c0_i32_0 = arith.constant 0 : i32
    %c0_i32_1 = arith.constant 0 : i32
    return %c0_i32, %c0_i32_0 : i32, i32
  }
  func.func @transform_28(%arg0: i32, %arg1: i32) -> (i32, i32) {
    %c0_i32 = arith.constant 0 : i32
    %c0_i32_0 = arith.constant 0 : i32
    %c0_i32_1 = arith.constant 0 : i32
    return %c0_i32, %c0_i32_0 : i32, i32
  }
  func.func @transform_29(%arg0: i32, %arg1: i32) -> (i32, i32) {
    %c0_i32 = arith.constant 0 : i32
    %c0_i32_0 = arith.constant 0 : i32
    %c0_i32_1 = arith.constant 0 : i32
    return %c0_i32, %c0_i32_0 : i32, i32
  }
  func.func @transform_30(%arg0: i32, %arg1: i32) -> (i32, i32) {
    %c0_i32 = arith.constant 0 : i32
    %c0_i32_0 = arith.constant 0 : i32
    %c0_i32_1 = arith.constant 0 : i32
    return %c0_i32, %c0_i32_0 : i32, i32
  }
  func.func @transform_31(%arg0: i32, %arg1: i32) -> (i32, i32) {
    %c0_i32 = arith.constant 0 : i32
    %c0_i32_0 = arith.constant 0 : i32
    %c0_i32_1 = arith.constant 0 : i32
    return %c0_i32, %c0_i32_0 : i32, i32
  }
  func.func @transform_32(%arg0: i32, %arg1: i32) -> (i32, i32) {
    %c0_i32 = arith.constant 0 : i32
    %c0_i32_0 = arith.constant 0 : i32
    %c0_i32_1 = arith.constant 0 : i32
    return %c0_i32, %c0_i32_0 : i32, i32
  }
  func.func @transform_33(%arg0: i32, %arg1: i32) -> (i32, i32) {
    %c0_i32 = arith.constant 0 : i32
    %c0_i32_0 = arith.constant 0 : i32
    %c0_i32_1 = arith.constant 0 : i32
    return %c0_i32, %c0_i32_0 : i32, i32
  }
  func.func @transform_34(%arg0: i32, %arg1: i32) -> (i32, i32, i32, i32) {
    %c0_i32 = arith.constant 0 : i32
    %c0_i32_0 = arith.constant 0 : i32
    %c0_i32_1 = arith.constant 0 : i32
    return %arg0, %arg1, %c0_i32, %c0_i32_0 : i32, i32, i32, i32
  }
}

</mosaic_0001>

<bundles_post_ra>
// kernel: _lambda_.7
= control target key start
LH: loop header
LB: loop body
LE: loop exit
PB: predicated region body
PF: predicated region fallthrough
CT: control target
= control target key end

     0   :  { %vm13_vm0 = vcmask 261120   ;;  %v107_v0 = vmov 0.0   ;;  %vm108_vm1 = vmmov 0   ;;  %vm90_vm2 = vcmask 9216   ;;  %s133_s1 = inlined_call_operand.vmem [shape: f32[2,32], index: 1, kind: input, shape index: {}]   ;;  %s134_s0 = inlined_call_operand.vmem [shape: f32[2,32], index: 0, kind: input, shape index: {}]   ;;  %s135_s2 = inlined_call_operand.vmem [shape: f32[2,2], index: 2, kind: output, shape index: {}]  }
   0x1   :  { %100 = vmatprep.subr.mxu0 %v107_v0  ;;  %v12_v1 = vld [vmem:[%s133_s1] sm:$0x3]  ;;  %102 = vmatprep.mubr.msk.f32.mxu0 %vm108_vm1, %v107_v0 }
   0x2   :  { %101 = vmatpush3.xpose.msk.msra.mxu0 %vm13_vm0, %v12_v1  ;;  %v11_v2 = vld [vmem:[%s134_s0] sm:$0x3] }
   0x5   :  { %103 = vmatmul.mubr.msk.f32.vlgmr.msra.gmra.mrb[0].mxu0 %vm13_vm0, %v11_v2 }
  0xd8   :  { %v86_v3 = vpop.f32.mrb[0].mxu0 }
  0xd9   :  { %91 = vst.msk [vmem:[%s135_s2] sm:$0x3] %vm90_vm2, %v86_v3  ;;  %v104_v4 = vpop.f32.mrb[1].mxu0 }

// kernel: _lambda_.4
= control target key start
LH: loop header
LB: loop body
LE: loop exit
PB: predicated region body
PF: predicated region fallthrough
CT: control target
= control target key end

     0   :  { %s965_s13 = smov 0   ;;  %s1141_s0 = inlined_call_operand.vmem [shape: f32[2,4,256], index: 0, kind: input, shape index: {}]   ;;  %s1142_s1 = inlined_call_operand.vmem [shape: f32[1,32], index: 1, kind: input, shape index: {}]   ;;  %s1143_s2 = inlined_call_operand.vmem [shape: f32[256,32], index: 2, kind: input, shape index: {}]   ;;  %s1144_s3 = inlined_call_operand.vmem [shape: f32[1,32], index: 3, kind: input, shape index: {}]   ;;  %s1145_s4 = inlined_call_operand.vmem [shape: f32[32,64], index: 4, kind: input, shape index: {}]   ;;  %s1146_s5 = inlined_call_operand.vmem [shape: f32[1,64], index: 5, kind: input, shape index: {}]   ;;  %s1147_s6 = inlined_call_operand.vmem [shape: f32[1,64], index: 6, kind: input, shape index: {}]   ;;  %s1148_s7 = inlined_call_operand.vmem [shape: f32[1,64], index: 7, kind: input, shape index: {}]   ;;  %s1149_s8 = inlined_call_operand.vmem [shape: f32[64,32], index: 8, kind: input, shape index: {}]   ;;  %s1150_s9 = inlined_call_operand.vmem [shape: f32[1,32], index: 9, kind: input, shape index: {}]   ;;  %s1151_s10 = inlined_call_operand.vmem [shape: f32[2,5,32], index: 10, kind: output, shape index: {}]  }
   0x1 LB: > { %s738_s14 = sadd.s32 4294967295, %s905_s13   ;;  %p742_p0 = scmp.ge.s32.totalorder %s905_s13, 1  ;;  %s905_s13 = sphi %s965_s13, %s20_s13  }
   0x2   : > { %p312_p1 = scmp.lt.s32.totalorder %s905_s13, 3 }
   0x4   : > { %p313_p2 = pnand %p742_p0, %p312_p1 }
   0x5   : > { %v378_v0 = vld [vmem:[%s1143_s2 + $0x80] sm:$0xff] (!%p313_p2)  ;;  %v379_v1 = vld [vmem:[%s1143_s2 + $0x88] sm:$0xff] (!%p313_p2)  ;;  %p349_p3 = scmp.lt.s32.totalorder (!%p313_p2), %s738_s14, 1  ;;  %v380_v5 = vld [vmem:[%s1143_s2 + $0x90] sm:$0xff] (!%p313_p2)  ;;  %vm359_vm0 = vcmask (!%p313_p2), 253952   ;;  %v907_v54 = vmov (!%p313_p2), 0.0|0.0  }
   0x6   : > { %316 = sbr.rel (%p313_p2) target bundleno = 1009 (0x3f1), region = 60  ;;  %v362_v2 = vld [vmem:[%s1143_s2] sm:$0xff] (!%p313_p2)  ;;  %v835_v3 = vpack.c.bf16 (!%p313_p2), %v379_v1, %v378_v0  ;;  %v363_v4 = vld [vmem:[%s1143_s2 + $0x8] sm:$0xff] (!%p313_p2)  ;;  %v381_v6 = vld [vmem:[%s1143_s2 + $0x98] sm:$0xff] (!%p313_p2)  ;;  %867 = vmatprep.subr.bf16.mxu1 (!%p313_p2), %v907_v54  ;;  %vm908_vm1 = vmmov (!%p313_p2), 0   ;;  %v909_v58 = vmov (!%p313_p2), 0.0  }
   0x7   : > { %v837_v7 = vpack.c.bf16 (!%p313_p2), %v363_v4, %v362_v2  ;;  %v839_v8 = vpack.c.bf16 (!%p313_p2), %v381_v6, %v380_v5  ;;  %v364_v9 = vld [vmem:[%s1143_s2 + $0x10] sm:$0xff] (!%p313_p2)  ;;  %v365_v10 = vld [vmem:[%s1143_s2 + $0x18] sm:$0xff] (!%p313_p2)  ;;  %v382_v11 = vld [vmem:[%s1143_s2 + $0xa0] sm:$0xff] (!%p313_p2)  ;;  %813 = vmatprep.mubr.msk.f32.mxu1 (!%p313_p2), %vm908_vm1, %v909_v58  ;;  %vm474_vm2 = vcmask (!%p313_p2), 257024   ;;  %vm488_vm3 = vcmask (!%p313_p2), 261120  }
   0x8   : > { %836 = vmatprep.subr.bf16.mxu0 (!%p313_p2), %v835_v3  ;;  %v383_v12 = vld [vmem:[%s1143_s2 + $0xa8] sm:$0xff] (!%p313_p2)  ;;  %v841_v13 = vpack.c.bf16 (!%p313_p2), %v365_v10, %v364_v9  ;;  %v366_v15 = vld [vmem:[%s1143_s2 + $0x20] sm:$0xff] (!%p313_p2)  ;;  %v384_v17 = vld [vmem:[%s1143_s2 + $0xb0] sm:$0xff] (!%p313_p2)  ;;  %vm564_vm4 = vcmask (!%p313_p2), 520192   ;;  %vm609_vm5 = vcmask (!%p313_p2), 523264   ;;  %vm683_vm6 = vcmask (!%p313_p2), 258048  }
   0x9   : > { %838 = vmatpush3.bf16.msra.mxu0 (!%p313_p2), %v837_v7  ;;  %v843_v14 = vpack.c.bf16 (!%p313_p2), %v383_v12, %v382_v11  ;;  %v367_v16 = vld [vmem:[%s1143_s2 + $0x28] sm:$0xff] (!%p313_p2)  ;;  %v385_v18 = vld [vmem:[%s1143_s2 + $0xb8] sm:$0xff] (!%p313_p2)  ;;  %v368_v21 = vld [vmem:[%s1143_s2 + $0x30] sm:$0xff] (!%p313_p2) }
   0xa   : > { %840 = vmatprep.subr.bf16.mxu0 (!%p313_p2), %v839_v8  ;;  %v845_v19 = vpack.c.bf16 (!%p313_p2), %v367_v16, %v366_v15  ;;  %v847_v20 = vpack.c.bf16 (!%p313_p2), %v385_v18, %v384_v17  ;;  %v369_v22 = vld [vmem:[%s1143_s2 + $0x38] sm:$0xff] (!%p313_p2)  ;;  %v386_v23 = vld [vmem:[%s1143_s2 + $0xc0] sm:$0xff] (!%p313_p2)  ;;  %v387_v24 = vld [vmem:[%s1143_s2 + $0xc8] sm:$0xff] (!%p313_p2) }
   0xb   : > { %v849_v27 = vpack.c.bf16 (!%p313_p2), %v369_v22, %v368_v21  ;;  %v851_v28 = vpack.c.bf16 (!%p313_p2), %v387_v24, %v386_v23  ;;  %v370_v29 = vld [vmem:[%s1143_s2 + $0x40] sm:$0xff] (!%p313_p2)  ;;  %v371_v30 = vld [vmem:[%s1143_s2 + $0x48] sm:$0xff] (!%p313_p2)  ;;  %v388_v31 = vld [vmem:[%s1143_s2 + $0xd0] sm:$0xff] (!%p313_p2) }
   0xc   : > { %v389_v32 = vld [vmem:[%s1143_s2 + $0xd8] sm:$0xff] (!%p313_p2)  ;;  %v853_v33 = vpack.c.bf16 (!%p313_p2), %v371_v30, %v370_v29  ;;  %v372_v35 = vld [vmem:[%s1143_s2 + $0x50] sm:$0xff] (!%p313_p2)  ;;  %v390_v37 = vld [vmem:[%s1143_s2 + $0xe0] sm:$0xff] (!%p313_p2) }
   0xd   : > { %s1153_s14 = smov (!%p349_p3, %s738_s14), 1  ;;  %842 = vmatpush3.bf16.msra.mxu0 %v841_v13  ;;  %v855_v34 = vpack.c.bf16 %v389_v32, %v388_v31  ;;  %v373_v36 = vld [vmem:[%s1143_s2 + $0x58] sm:$0xff]  ;;  %v391_v38 = vld [vmem:[%s1143_s2 + $0xe8] sm:$0xff]  ;;  %v374_v41 = vld [vmem:[%s1143_s2 + $0x60] sm:$0xff] }
   0xe   : > { %s755_s17 = sshll.u32 %s1153_s14, 3  ;;  %844 = vmatprep.subr.bf16.mxu0 %v843_v14  ;;  %v857_v39 = vpack.c.bf16 %v373_v36, %v372_v35  ;;  %v859_v40 = vpack.c.bf16 %v391_v38, %v390_v37  ;;  %v375_v42 = vld [vmem:[%s1143_s2 + $0x68] sm:$0xff]  ;;  %v392_v43 = vld [vmem:[%s1143_s2 + $0xf0] sm:$0xff]  ;;  %v393_v44 = vld [vmem:[%s1143_s2 + $0xf8] sm:$0xff] }
   0xf   : > { %s353_s28 = scalar_lea.vmem %s1141_s0, %s755_s17  ;;  %v861_v45 = vpack.c.bf16 %v375_v42, %v374_v41  ;;  %v863_v46 = vpack.c.bf16 %v393_v44, %v392_v43  ;;  %v376_v47 = vld [vmem:[%s1143_s2 + $0x70] sm:$0xff]  ;;  %v377_v48 = vld [vmem:[%s1143_s2 + $0x78] sm:$0xff]  ;;  %v477_v50 = vld [vmem:[%s1145_s4] sm:$0xff]  ;;  %s357_s18 = scalar_lea.vmem %s1151_s10, %s755_s17 }
  0x10   : > { %v361_v25 = vld [vmem:[%s353_s28] sm:$0xff]  ;;  %v865_v49 = vpack.c.bf16 %v377_v48, %v376_v47  ;;  %v478_v51 = vld [vmem:[%s1145_s4 + $0x8] sm:$0xff]  ;;  %v479_v55 = vld [vmem:[%s1145_s4 + $0x10] sm:$0xff] }
  0x11   : > { %v402_v26 = vcombine.high %v361_v25, %v361_v25  ;;  %846 = vmatpush3.bf16.msra.mxu0 %v845_v19  ;;  %v868_v52 = vpack.c.bf16 %v478_v51, %v477_v50  ;;  %v358_v53 = vld [vmem:[%s1142_s1] sm:$0x1]  ;;  %v480_v56 = vld [vmem:[%s1145_s4 + $0x18] sm:$0xff]  ;;  %v595_v12 = vld [vmem:[%s1149_s8 + $0x8] sm:$0xff] }
  0x12   : > { %848 = vmatprep.subr.bf16.mxu0 %v847_v20  ;;  %360 = vst.msk [vmem:[#allocation2] sm:$0x1] %vm359_vm0, %v358_v53  ;;  %v871_v57 = vpack.c.bf16 %v480_v56, %v479_v55  ;;  %v746_v60 = vld [vmem:[%s1144_s3] ss:$0 sm:$0xff]  ;;  %v596_v14 = vld [vmem:[%s1149_s8 + $0x10] sm:$0xff]  ;;  %v597_v15 = vld [vmem:[%s1149_s8 + $0x18] sm:$0xff] }
  0x13   : > { %468 = vmatprep.mubr.f32.mxu0 %v402_v26  ;;  %869 = vmatpush3.bf16.msra.mxu1 %v868_v52  ;;  %v747_v1 = vld [vmem:[%s1146_s5] ss:$0 sm:$0xff]  ;;  %v877_v16 = vpack.c.bf16 %v597_v15, %v596_v14  ;;  %v599_v18 = vld [vmem:[%s1149_s8 + $0x28] sm:$0xff]  ;;  %v600_v20 = vld [vmem:[%s1149_s8 + $0x30] sm:$0xff] }
  0x14   : > { %870 = vmatprep.subr.bf16.mxu1 %v907_v54  ;;  %v594_v11 = vld [vmem:[%s1149_s8] sm:$0xff]  ;;  %v601_v21 = vld [vmem:[%s1149_s8 + $0x38] sm:$0xff] }
  0x15   : > { %850 = vmatpush3.bf16.msra.mxu0 %v849_v27  ;;  %v874_v13 = vpack.c.bf16 %v595_v12, %v594_v11  ;;  %v598_v17 = vld [vmem:[%s1149_s8 + $0x20] sm:$0xff]  ;;  %v883_v22 = vpack.c.bf16 %v601_v21, %v600_v20 }
  0x16   : > { %852 = vmatprep.subr.bf16.mxu0 %v851_v28  ;;  %v880_v19 = vpack.c.bf16 %v599_v18, %v598_v17  ;;  %v749_v27 = vld [vmem:[%s1147_s6] ss:$0 sm:$0xff] }
  0x17   : > { %872 = vmatpush3.bf16.msra.mxu1 %v871_v57  ;;  %v750_v29 = vld [vmem:[%s1148_s7] ss:$0 sm:$0xff] }
  0x18   : > { %873 = vmatprep.subr.bf16.mxu1 %v907_v54 }
  0x19   : > { %854 = vmatpush3.bf16.msra.mxu0 %v853_v33  ;;  %v751_v33 = vld [vmem:[%s1150_s9] ss:$0 sm:$0xff] }
  0x1a   : > { %856 = vmatprep.subr.bf16.mxu0 %v855_v34 }
  0x1d   : > { %858 = vmatpush3.bf16.msra.mxu0 %v857_v39 }
  0x1e   : > { %860 = vmatprep.subr.bf16.mxu0 %v859_v40 }
  0x21   : > { %862 = vmatpush3.bf16.msra.mxu0 %v861_v45 }
  0x22   : > { %864 = vmatprep.subr.bf16.mxu0 %v863_v46 }
  0x25   : > { %866 = vmatpush3.bf16.msra.mxu0 %v865_v49 }
  0x28   : > { %469 = vmatmul.mubr.f32.vlgmr.msra.gmra.mrb[0].mxu0 %v361_v25 }
  0xfb   : > { %v788_v59 = vpop.f32.mrb[0].mxu0 }
  0xfc   : > { %v789_v61 = vpop.f32.mrb[1].mxu0 }
  0xfd   : > { %v790_v62 = vadd.f32 %v789_v61, %v788_v59 }
  0xff   : > { %v471_v63 = vadd.f32 %v790_v62, %v746_v60 }
 0x101   : > { %475 = vst.msk [vmem:[#allocation2 + $0x1] sm:$0xf] %vm474_vm2, %v471_v63 }
 0x108   : > { %v476_v0 = vld [vmem:[#allocation2] sm:$0x1f] }
 0x109   : > { %814 = vmatmul.mubr.msk.f32.vlgmr.msra.gmra.mrb[0].mxu1 %vm488_vm3, %v476_v0 }
 0x10a   : > { %832 = vmatprep.mubr.msk.f32.mxu1 %vm908_vm1, %v909_v58  ;;  %875 = vmatpush3.bf16.msra.mxu1 %v874_v13 }
 0x10b   : > { %876 = vmatprep.subr.bf16.mxu1 %v907_v54 }
 0x10e   : > { %878 = vmatpush3.bf16.msra.mxu1 %v877_v16 }
 0x10f   : > { %879 = vmatprep.subr.bf16.mxu1 %v907_v54 }
 0x112   : > { %881 = vmatpush3.bf16.msra.mxu1 %v880_v19 }
 0x113   : > { %882 = vmatprep.subr.bf16.mxu1 %v907_v54 }
 0x116   : > { %884 = vmatpush3.bf16.msra.mxu1 %v883_v22 }
 0x1dc   : > { %v558_v2 = vpop.f32.mrb[0].mxu1 }
 0x1dd   : > { %v559_v3 = vadd.f32 %v747_v1, %v558_v2  ;;  %v815_v4 = vpop.f32.mrb[1].mxu1 }
 0x1df   : > { %v565_v5 = vsel %vm564_vm4, %v559_v3, 0.0 }
 0x1e0   : > { %566 = vadd.xlane.f32.xlu0 %v565_v5 }
 0x26d   : > { %v567_v6 = vpop.xlane.xlu0 %566 }
 0x26e   : > { %v569_v7 = vmul.f32 0.015625, %v567_v6 }
 0x270   : > { %v570_v8 = vsub.f32 %v559_v3, %v569_v7 }
 0x272   : > { %v571_v9 = vmul.f32 %v570_v8, %v570_v8 }
 0x274   : > { %v572_v10 = vsel %vm564_vm4, %v571_v9, 0.0 }
 0x275   : > { %573 = vadd.xlane.f32.xlu0 %v572_v10 }
 0x302   : > { %v574_v23 = vpop.xlane.xlu0 %573 }
 0x303   : > { %v575_v24 = vmul.f32 0.015625, %v574_v23 }
 0x305   : > { %v576_v25 = vadd.f32 1e-05, %v575_v24 }
 0x307   : > { %897 = vrsqrt.f32 %v576_v25 }
 0x311   : > { %v898_v26 = vpop.eup %897 }
 0x312   : > { %v578_v28 = vmul.f32 %v898_v26, %v570_v8 }
 0x314   : > { %v585_v30 = vmul.f32 %v749_v27, %v578_v28 }
 0x316   : > { %v592_v31 = vadd.f32 %v750_v29, %v585_v30 }
 0x318   : > { %v593_v32 = vmax.f32 %v592_v31, 0.0 }
 0x31a   : > { %833 = vmatmul.mubr.msk.f32.vlgmr.msra.gmra.mrb[2].mxu1 %vm609_vm5, %v593_v32 }
 0x3ed   : > { %v679_v34 = vpop.f32.mrb[2].mxu1 }
 0x3ee   : > { %v680_v35 = vadd.f32 %v751_v33, %v679_v34  ;;  %v834_v36 = vpop.f32.mrb[3].mxu1 }
 0x3f0   : > { %684 = vst.msk [vmem:[%s357_s18] sm:$0x1f] %vm683_vm6, %v680_v35 }
 0x3f1 PF: > { %s20_s13 = sadd.s32 1, %s905_s13  }
 0x3f2   : > { %p17_p4 = scmp.ge.s32.totalorder %s20_s13, 4  }
 0x3f4   :  { %19 = sbr.rel (!%p17_p4) target bundleno = 1 (0x1), region = 90 }

// kernel: _lambda_.5
= control target key start
LH: loop header
LB: loop body
LE: loop exit
PB: predicated region body
PF: predicated region fallthrough
CT: control target
= control target key end

     0   :  { %s3509_s0 = inlined_call_operand.vmem [shape: f32[2,8,32], index: 0, kind: input, shape index: {}]   ;;  %s3510_s1 = inlined_call_operand.vmem [shape: f32[2,1,9], index: 1, kind: input, shape index: {}]   ;;  %s3511_s2 = inlined_call_operand.vmem [shape: f32[1,32], index: 2, kind: input, shape index: {}]   ;;  %s3512_s3 = inlined_call_operand.vmem [shape: f32[32,64], index: 3, kind: input, shape index: {}]   ;;  %s3513_s4 = inlined_call_operand.vmem [shape: f32[1,64], index: 4, kind: input, shape index: {}]   ;;  %s3514_s5 = inlined_call_operand.vmem [shape: f32[1,64], index: 5, kind: input, shape index: {}]   ;;  %s3515_s6 = inlined_call_operand.vmem [shape: f32[1,64], index: 6, kind: input, shape index: {}]   ;;  %s3516_s7 = inlined_call_operand.vmem [shape: f32[64,32], index: 7, kind: input, shape index: {}]   ;;  %s3517_s8 = inlined_call_operand.vmem [shape: f32[1,32], index: 8, kind: input, shape index: {}]   ;;  %s3518_s9 = inlined_call_operand.vmem [shape: f32[1,32], index: 9, kind: input, shape index: {}]   ;;  %s3519_s10 = inlined_call_operand.vmem [shape: f32[1,32], index: 10, kind: input, shape index: {}]   ;;  %s3520_s11 = inlined_call_operand.vmem [shape: f32[32,96], index: 11, kind: input, shape index: {}]   ;;  %s3521_s12 = inlined_call_operand.vmem [shape: f32[1,96], index: 12, kind: input, shape index: {}]   ;;  %s3522_s13 = inlined_call_operand.vmem [shape: f32[32,32], index: 13, kind: input, shape index: {}]   ;;  %s3523_s14 = inlined_call_operand.vmem [shape: f32[1,32], index: 14, kind: input, shape index: {}]   ;;  %s3524_s15 = inlined_call_operand.vmem [shape: f32[1,32], index: 15, kind: input, shape index: {}]   ;;  %s3525_s16 = inlined_call_operand.vmem [shape: f32[1,32], index: 16, kind: input, shape index: {}]   ;;  %s3526_s17 = inlined_call_operand.vmem [shape: f32[32,128], index: 17, kind: input, shape index: {}]   ;;  %s3527_s18 = inlined_call_operand.vmem [shape: f32[1,128], index: 18, kind: input, shape index: {}]   ;;  %s3528_s19 = inlined_call_operand.vmem [shape: f32[128,32], index: 19, kind: input, shape index: {}]   ;;  %s3529_s20 = inlined_call_operand.vmem [shape: f32[1,32], index: 20, kind: input, shape index: {}]   ;;  %s3530_s21 = inlined_call_operand.vmem [shape: f32[2,9,32], index: 21, kind: output, shape index: {}]  }
   0x1   :  { %3532 = sst [smem:[#allocation3_spill]] %s3509_s0 }
   0x2   :  { %3533 = sst [smem:[#allocation4_spill]] %s3510_s1 }
   0x3   :  { %3534 = sst [smem:[#allocation5_spill]] %s3511_s2  ;;  %s3174_s2 = smov 0  }
   0x4   :  { %3535 = sst [smem:[#allocation6_spill]] %s3512_s3 }
   0x5   :  { %3536 = sst [smem:[#allocation7_spill]] %s3513_s4 }
   0x6   :  { %3537 = sst [smem:[#allocation8_spill]] %s3514_s5 }
   0x7 LB: > { %s2497_s25 = sadd.s32 4294967295, %s3047_s2   ;;  %p2501_p0 = scmp.ge.s32.totalorder %s3047_s2, 1  ;;  %s3047_s2 = sphi %s3174_s2, %s31_s2  }
   0x8   : > { %p594_p1 = scmp.lt.s32.totalorder %s3047_s2, 3 }
   0xa   : > { %p595_p2 = pnand %p2501_p0, %p594_p1 }
   0xb   : > { %s3538_s3 = sld [smem:[#allocation6_spill]] (!%p595_p2)  ;;  %v3049_v3 = vmov (!%p595_p2), 0.0|0.0   ;;  %vm3050_vm0 = vmmov (!%p595_p2), 0   ;;  %v3051_v6 = vmov (!%p595_p2), 0.0   ;;  %p656_p3 = scmp.lt.s32.totalorder (!%p595_p2), %s2497_s25, 1  ;;  %vm680_vm1 = vcmask (!%p595_p2), 261120  }
   0xc   : > { %598 = sbr.rel (%p595_p2) target bundleno = 3812 (0xee4), region = 104  ;;  %2814 = vmatprep.subr.bf16.mxu0 (!%p595_p2), %v3049_v3  ;;  %2659 = vmatprep.mubr.msk.f32.mxu0 (!%p595_p2), %vm3050_vm0, %v3051_v6  ;;  %s3539_s24 = sld [smem:[#allocation3_spill]] (!%p595_p2)  ;;  %vm756_vm2 = vcmask (!%p595_p2), 523264   ;;  %v786_v19 = vld [vmem:[%s3516_s7] sm:$0xff] (!%p595_p2)  ;;  %v787_v20 = vld [vmem:[%s3516_s7 + $0x8] sm:$0xff] (!%p595_p2)  ;;  %v788_v22 = vld [vmem:[%s3516_s7 + $0x10] sm:$0xff] (!%p595_p2) }
   0xd   : > { %s3540_s29 = sld [smem:[#allocation7_spill]] (!%p595_p2)  ;;  %v2821_v21 = vpack.c.bf16 (!%p595_p2), %v787_v20, %v786_v19  ;;  %v789_v23 = vld [vmem:[%s3516_s7 + $0x18] sm:$0xff] (!%p595_p2)  ;;  %v790_v25 = vld [vmem:[%s3516_s7 + $0x20] sm:$0xff] (!%p595_p2)  ;;  %v791_v26 = vld [vmem:[%s3516_s7 + $0x28] sm:$0xff] (!%p595_p2)  ;;  %s3541_s1 = sld [smem:[#allocation8_spill]] (!%p595_p2)  ;;  %vm875_vm3 = vcmask (!%p595_p2), 253952  }
   0xe   : > { %v2824_v24 = vpack.c.bf16 (!%p595_p2), %v789_v23, %v788_v22  ;;  %v2827_v27 = vpack.c.bf16 (!%p595_p2), %v791_v26, %v790_v25  ;;  %v792_v28 = vld [vmem:[%s3516_s7 + $0x30] sm:$0xff] (!%p595_p2)  ;;  %v793_v29 = vld [vmem:[%s3516_s7 + $0x38] sm:$0xff] (!%p595_p2)  ;;  %v2508_v37 = vld [vmem:[%s3515_s6] ss:$0 sm:$0xff] (!%p595_p2)  ;;  %vm1053_vm4 = vcmask (!%p595_p2), 64512   ;;  %s3053_s23 = smov (!%p595_p2), 96  }
   0xf   : > { %v2830_v30 = vpack.c.bf16 (!%p595_p2), %v793_v29, %v792_v28  ;;  %v2509_v42 = vld [vmem:[%s3517_s8] ss:$0 sm:$0xff] (!%p595_p2)  ;;  %v884_v61 = vld [vmem:[%s3520_s11 + $0x8] sm:$0xff] (!%p595_p2)  ;;  %v885_v63 = vld [vmem:[%s3520_s11 + $0x10] sm:$0xff] (!%p595_p2)  ;;  %s3545_s27 = sld [smem:[#allocation4_spill]] (!%p595_p2)  ;;  %vm1151_vm6 = vcmask (!%p595_p2), 65536  }
  0x10   : > { %v883_v60 = vld [vmem:[%s3520_s11] sm:$0xff] (!%p595_p2)  ;;  %vm3287_vm5 = vmpackc.low (!%p595_p2), %vm1053_vm4, %vm1053_vm4  ;;  %vm1147_vm7 = vcmask (!%p595_p2), 72704   ;;  %s3056_s0 = smov (!%p595_p2), 112   ;;  %s3057_s4 = smov (!%p595_p2), 72   ;;  %vm1182_vm8 = vcmask (!%p595_p2), 1040384   ;;  %vm3060_vm9 = vmmov (!%p595_p2), 1  }
  0x11   : > { %v669_v0 = vld [vmem:[%s3538_s3] sm:$0xff] (!%p595_p2)  ;;  %v670_v1 = vld [vmem:[%s3538_s3 + $0x8] sm:$0xff] (!%p595_p2)  ;;  %v671_v2 = vld [vmem:[%s3538_s3 + $0x10] sm:$0xff] (!%p595_p2)  ;;  %v2832_v62 = vpack.c.bf16 (!%p595_p2), %v884_v61, %v883_v60  ;;  %s3058_s30 = smov (!%p595_p2), 104   ;;  %s3059_s5 = smov (!%p595_p2), 64  }
  0x12   : > { %v2815_v4 = vpack.c.bf16 (!%p595_p2), %v670_v1, %v669_v0  ;;  %v672_v5 = vld [vmem:[%s3538_s3 + $0x18] sm:$0xff] (!%p595_p2)  ;;  %vm3337_vm10 = vmpackc.low (!%p595_p2), %vm1182_vm8, %vm3060_vm9 }
  0x13   : > { %v2818_v7 = vpack.c.bf16 %v672_v5, %v671_v2  ;;  %s3549_s25 = smov (!%p656_p3, %s2497_s25), 1  ;;  %v2505_v9 = vld [vmem:[%s3540_s29] ss:$0 sm:$0xff]  ;;  %s3542_s29 = sld [smem:[#allocation5_spill]]  ;;  %v886_v0 = vld [vmem:[%s3520_s11 + $0x18] sm:$0xff] }
  0x14   : > { %2816 = vmatpush3.bf16.msra.mxu0 %v2815_v4  ;;  %s2502_s22 = sshll.u32 %s3549_s25, 3  ;;  %v2507_v35 = vld [vmem:[%s3541_s1] ss:$0 sm:$0xff]  ;;  %v2836_v1 = vpack.c.bf16 %v886_v0, %v885_v63  ;;  %s3054_s1 = smov 120  }
  0x15   : > { %2817 = vmatprep.subr.bf16.mxu0 %v3049_v3  ;;  %s659_s26 = scalar_lea.vmem %s3539_s24, %s2502_s22  ;;  %s3052_s22 = smov 88  }
  0x16   : > { %v668_v8 = vld [vmem:[%s659_s26] sm:$0xff]  ;;  %s662_s28 = scalar_lea.vmem %s3545_s27, %s3549_s25  ;;  %s3062_s27 = smov 48  }
  0x18   : > { %2819 = vmatpush3.bf16.msra.mxu0 %v2818_v7 }
  0x19   : > { %2820 = vmatprep.subr.bf16.mxu0 %v3049_v3  ;;  %v874_v41 = vld [vmem:[%s3542_s29] sm:$0x1]  ;;  %s3055_s29 = smov 80  }
  0x1a   : > { %876 = vst.msk [vmem:[#allocation2] sm:$0x1] %vm875_vm3, %v874_v41 }
  0x1b   : > { %2660 = vmatmul.mubr.msk.f32.vlgmr.msra.gmra.mrb[0].mxu0 %vm680_vm1, %v668_v8 }
  0x1c   : > { %2678 = vmatprep.mubr.msk.f32.mxu0 %vm3050_vm0, %v3051_v6  ;;  %2822 = vmatpush3.bf16.msra.mxu0 %v2821_v21 }
  0x1d   : > { %2823 = vmatprep.subr.bf16.mxu0 %v3049_v3 }
  0x20   : > { %2825 = vmatpush3.bf16.msra.mxu0 %v2824_v24 }
  0x21   : > { %2826 = vmatprep.subr.bf16.mxu0 %v3049_v3 }
  0x24   : > { %2828 = vmatpush3.bf16.msra.mxu0 %v2827_v27 }
  0x25   : > { %2829 = vmatprep.subr.bf16.mxu0 %v3049_v3 }
  0x28   : > { %2831 = vmatpush3.bf16.msra.mxu0 %v2830_v30 }
  0x29   : > { %2833 = vmatprep.subr.bf16.mxu0 %v2832_v62 }
  0xee   : > { %v750_v10 = vpop.f32.mrb[0].mxu0 }
  0xef   : > { %v751_v11 = vadd.f32 %v2505_v9, %v750_v10  ;;  %v2661_v12 = vpop.f32.mrb[1].mxu0  ;;  %v2511_v9 = vld [vmem:[%s3518_s9] ss:$0 sm:$0xff] }
  0xf1   : > { %v757_v13 = vsel %vm756_vm2, %v751_v11, 0.0 }
  0xf2   : > { %758 = vadd.xlane.f32.xlu0 %v757_v13 }
 0x17f   : > { %v759_v14 = vpop.xlane.xlu0 %758 }
 0x180   : > { %v761_v15 = vmul.f32 0.015625, %v759_v14 }
 0x182   : > { %v762_v16 = vsub.f32 %v751_v11, %v761_v15  ;;  %v2512_v11 = vld [vmem:[%s3519_s10] ss:$0 sm:$0xff] }
 0x184   : > { %v763_v17 = vmul.f32 %v762_v16, %v762_v16 }
 0x186   : > { %v764_v18 = vsel %vm756_vm2, %v763_v17, 0.0 }
 0x187   : > { %765 = vadd.xlane.f32.xlu0 %v764_v18  ;;  %v2513_v18 = vld [vmem:[%s3521_s12] ss:$0 sm:$0xff] }
 0x214   : > { %v766_v31 = vpop.xlane.xlu0 %765 }
 0x215   : > { %v767_v32 = vmul.f32 0.015625, %v766_v31 }
 0x217   : > { %v768_v33 = vadd.f32 1e-05, %v767_v32 }
 0x219   : > { %2999 = vrsqrt.f32 %v768_v33 }
 0x223   : > { %v3000_v34 = vpop.eup %2999 }
 0x224   : > { %v770_v36 = vmul.f32 %v3000_v34, %v762_v16 }
 0x226   : > { %v777_v38 = vmul.f32 %v2507_v35, %v770_v36  ;;  %v3306_v35 = vld [vmem:[%s662_s28] ss:$0 sm:$0xff]  ;;  %s3063_s28 = smov 40  }
 0x228   : > { %v784_v39 = vadd.f32 %v2508_v37, %v777_v38 }
 0x22a   : > { %v785_v40 = vmax.f32 %v784_v39, 0.0 }
 0x22c   : > { %2679 = vmatmul.mubr.msk.f32.vlgmr.msra.gmra.mrb[2].mxu0 %vm756_vm2, %v785_v40 }
 0x22d   : > { %2835 = vmatpush3.bf16.msra.mxu0 %v2832_v62 }
 0x22e   : > { %2837 = vmatprep.subr.bf16.mxu0 %v2836_v1 }
 0x231   : > { %2839 = vmatpush3.bf16.msra.mxu0 %v2836_v1 }
 0x2ff   : > { %v870_v43 = vpop.f32.mrb[2].mxu0 }
 0x300   : > { %v871_v44 = vadd.f32 %v2509_v42, %v870_v43  ;;  %v2680_v45 = vpop.f32.mrb[3].mxu0 }
 0x302   : > { %877 = vst.msk [vmem:[#allocation2 + $0x1] sm:$0xff] %vm680_vm1, %v871_v44 }
 0x309   : > { %v3245_v46 = vld [vmem:[#allocation2] sm:$0xff]  ;;  %v3249_v48 = vld [vmem:[#allocation2 + $0x8] sm:$0x1] }
 0x30a   : > { %v917_v47 = vsel %vm680_vm1, %v3245_v46, 0.0  ;;  %v920_v49 = vsel %vm875_vm3, %v3249_v48, 0.0 }
 0x30b   : > { %918 = vadd.xlane.f32.xlu1 %v917_v47 }
 0x30f   : > { %921 = vadd.xlane.f32.xlu1 %v920_v49 }
 0x398   : > { %v919_v50 = vpop.xlane.xlu1 %918 }
 0x399   : > { %v924_v51 = vmul.f32 0.03125, %v919_v50 }
 0x39b   : > { %v926_v52 = vsub.f32 %v3245_v46, %v924_v51 }
 0x39c   : > { %v922_v53 = vpop.xlane.xlu1 %921 }
 0x39d   : > { %v925_v54 = vmul.f32 0.03125, %v922_v53  ;;  %v928_v55 = vmul.f32 %v926_v52, %v926_v52 }
 0x39f   : > { %v927_v56 = vsub.f32 %v3249_v48, %v925_v54  ;;  %v930_v57 = vsel %vm680_vm1, %v928_v55, 0.0 }
 0x3a0   : > { %931 = vadd.xlane.f32.xlu0 %v930_v57 }
 0x3a1   : > { %v929_v58 = vmul.f32 %v927_v56, %v927_v56 }
 0x3a3   : > { %v933_v59 = vsel %vm875_vm3, %v929_v58, 0.0 }
 0x3a4   : > { %934 = vadd.xlane.f32.xlu1 %v933_v59 }
 0x42d   : > { %v932_v2 = vpop.xlane.xlu0 %931 }
 0x42e   : > { %v936_v3 = vmul.f32 0.03125, %v932_v2 }
 0x430   : > { %v938_v4 = vadd.f32 1e-05, %v936_v3 }
 0x431   : > { %v935_v5 = vpop.xlane.xlu1 %934 }
 0x432   : > { %3001 = vrsqrt.f32 %v938_v4  ;;  %v937_v6 = vmul.f32 0.03125, %v935_v5 }
 0x434   : > { %v939_v7 = vadd.f32 1e-05, %v937_v6 }
 0x436   : > { %3003 = vrsqrt.f32 %v939_v7 }
 0x43c   : > { %v3002_v8 = vpop.eup %3001 }
 0x43d   : > { %v942_v10 = vmul.f32 %v3002_v8, %v926_v52 }
 0x43f   : > { %v950_v12 = vmul.f32 %v2511_v9, %v942_v10 }
 0x440   : > { %v3004_v13 = vpop.eup %3003 }
 0x441   : > { %v943_v14 = vmul.f32 %v3004_v13, %v927_v56  ;;  %v958_v15 = vadd.f32 %v2512_v11, %v950_v12 }
 0x443   : > { %v951_v16 = vmul.f32 %v2511_v9, %v943_v14  ;;  %2689 = vmatprep.mubr.msk.f32.mxu0 %vm680_vm1, %v958_v15 }
 0x445   : > { %v959_v17 = vadd.f32 %v2512_v11, %v951_v16 }
 0x447   : > { %2690 = vmatmul.mubr.msk.f32.vlgmr.msra.gmra.mrb[4].mxu0 %vm680_vm1, %v959_v17 }
 0x51a   : > { %v2691_v19 = vpop.f32.mrb[4].mxu0 }
 0x51b   : > { %v1044_v20 = vadd.f32 %v2691_v19, %v2513_v18  ;;  %v1038_v21 = vpop.f32.mrb[5].mxu0 }
 0x51c   : > { %v1039_v22 = vadd.f32 %v2513_v18, %v1038_v21 }
 0x51e   : > { %2696 = vmatprep.mubr.msk.f32.mxu0 %vm1053_vm4, %v1039_v22  ;;  %v3281_v23 = vpack.i.bf16 %v1044_v20, %v1039_v22 }
 0x520   : > { %2965 = vrot.lane.b32.xlu1 %v3281_v23, %s3052_s22  ;;  %2960 = vrot.lane.b32.xlu0 %v3281_v23, %s3053_s23 }
 0x524   : > { %1349 = vrot.lane.b32.xlu1 %v1039_v22, %s3054_s1 }
 0x528   : > { %1351 = vrot.lane.b32.xlu1 %v1044_v20, %s3054_s1  ;;  %s3061_s1 = smov 56  }
 0x592   : > { %v2966_v24 = vpop.permute.xlu1 %2965  ;;  %v2961_v25 = vpop.permute.xlu0 %2960 }
 0x593   : > { %v2968_v26 = vunpack.i.h.bf16 %v2966_v24  ;;  %v2967_v27 = vunpack.i.l.bf16 %v2966_v24  ;;  %v2963_v28 = vunpack.i.h.bf16 %v2961_v25  ;;  %v2962_v29 = vunpack.i.l.bf16 %v2961_v25 }
 0x595   : > { %v2840_v31 = vpack.c.bf16 %v2963_v28, %v2962_v29  ;;  %v2852_v32 = vpack.c.bf16 %v2968_v26, %v2967_v27 }
 0x596   : > { %v1350_v33 = vpop.permute.xlu1 %1349 }
 0x597   : > { %2842 = vmatprep.subr.msk.bf16.mxu0 %vm3287_vm5, %v2840_v31 }
 0x598   : > { %2845 = vmatpush3.bf16.xpose.msk.msra.mxu0 %vm3287_vm5, %v2840_v31 }
 0x599   : > { %2854 = vmatprep.subr.msk.bf16.mxu0 %vm3287_vm5, %v2852_v32 }
 0x59a   : > { %v1352_v34 = vpop.permute.xlu1 %1351 }
 0x59f   : > { %2697 = vmatmul.mubr.msk.f32.vlgmr.msra.gmra.mrb[6].mxu0 %vm1053_vm4, %v1044_v20 }
 0x5a0   : > { %2857 = vmatpush3.bf16.xpose.msk.msra.mxu0 %vm3287_vm5, %v2852_v32  ;;  %2715 = vmatprep.mubr.msk.f32.mxu0 %vm1053_vm4, %v1350_v33 }
 0x5a7   : > { %2716 = vmatmul.mubr.msk.f32.vlgmr.msra.gmra.mrb[8].mxu0 %vm1053_vm4, %v1352_v34 }
 0x672   : > { %v2698_v36 = vpop.f32.mrb[6].mxu0 }
 0x673   : > { %v1138_v37 = vmul.f32 0.35355338, %v2698_v36  ;;  %v1128_v38 = vpop.f32.mrb[7].mxu0 }
 0x674   : > { %v1137_v39 = vmul.f32 0.35355338, %v1128_v38 }
 0x675   : > { %v1146_v40 = vadd.f32 %v3306_v35, %v1138_v37 }
 0x676   : > { %v1145_v41 = vadd.f32 %v3306_v35, %v1137_v39 }
 0x677   : > { %v1152_v42 = vsel %vm1151_vm6, %v1146_v40, -inf }
 0x678   : > { %1153 = vmax.xlane.f32.xlu1 %v1152_v42  ;;  %v1148_v43 = vsel %vm1147_vm7, %v1145_v41, -inf }
 0x679   : > { %1149 = vmax.xlane.f32.xlu0 %v1148_v43 }
 0x67a   : > { %v2717_v44 = vpop.f32.mrb[8].mxu0 }
 0x67b   : > { %v1431_v45 = vpop.f32.mrb[9].mxu0  ;;  %v1441_v47 = vmul.f32 0.35355338, %v2717_v44 }
 0x67c   : > { %v1440_v6 = vmul.f32 0.35355338, %v1431_v45 }
 0x67d   : > { %v1443_v49 = vadd.f32 %v3306_v35, %v1441_v47 }
 0x67e   : > { %v1442_v12 = vadd.f32 %v3306_v35, %v1440_v6 }
 0x67f   : > { %v1447_v50 = vsel %vm1151_vm6, %v1443_v49, -inf }
 0x680   : > { %v1444_v13 = vsel %vm1147_vm7, %v1442_v12, -inf }
 0x689   : > { %2975 = vrot.lane.b32.xlu1 %v3281_v23, %s3055_s29 }
 0x68d   : > { %1637 = vrot.lane.b32.xlu1 %v1039_v22, %s3056_s0 }
 0x691   : > { %1639 = vrot.lane.b32.xlu1 %v1044_v20, %s3056_s0 }
 0x6b5   : > { %1448 = vmax.xlane.f32.xlu1 %v1447_v50 }
 0x6c6   : > { %2985 = vrot.lane.b32.xlu1 %v3281_v23, %s3057_s4 }
 0x6ca   : > { %1925 = vrot.lane.b32.xlu1 %v1039_v22, %s3058_s30 }
 0x6ce   : > { %1927 = vrot.lane.b32.xlu1 %v1044_v20, %s3058_s30 }
 0x705   : > { %v1154_v51 = vpop.xlane.xlu1 %1153 }
 0x706   : > { %v1156_v52 = vsub.f32 %v1146_v40, %v1154_v51  ;;  %v1150_v53 = vpop.xlane.xlu0 %1149  ;;  %v888_v40 = vld [vmem:[%s3522_s13] sm:$0xff] }
 0x707   : > { %v1155_v54 = vsub.f32 %v1145_v41, %v1150_v53 }
 0x708   : > { %v1159_v55 = vmul.f32 1.442695, %v1156_v52 }
 0x709   : > { %v1157_v56 = vmul.f32 1.442695, %v1155_v54  ;;  %v2976_v57 = vpop.permute.xlu1 %2975 }
 0x70a   : > { %3005 = vpow2.f32 %v1159_v55  ;;  %v2978_v58 = vunpack.i.h.bf16 %v2976_v57  ;;  %v2977_v59 = vunpack.i.l.bf16 %v2976_v57 }
 0x70b   : > { %3007 = vpow2.f32 %v1157_v56 }
 0x70c   : > { %v2864_v60 = vpack.c.bf16 %v2978_v58, %v2977_v59 }
 0x70d   : > { %v1638_v61 = vpop.permute.xlu1 %1637 }
 0x70e   : > { %2866 = vmatprep.subr.msk.bf16.mxu0 %vm3287_vm5, %v2864_v60  ;;  %2734 = vmatprep.mubr.msk.f32.mxu0 %vm1053_vm4, %v1638_v61 }
 0x70f   : > { %2869 = vmatpush3.bf16.xpose.msk.msra.mxu0 %vm3287_vm5, %v2864_v60 }
 0x711   : > { %v1640_v63 = vpop.permute.xlu1 %1639 }
 0x714   : > { %v3006_v62 = vpop.eup %3005 }
 0x715   : > { %v1164_v0 = vsel %vm1151_vm6, %v3006_v62, 0.0  ;;  %v3008_v1 = vpop.eup %3007 }
 0x716   : > { %2735 = vmatmul.mubr.msk.f32.vlgmr.msra.gmra.mrb[10].mxu0 %vm1053_vm4, %v1640_v63  ;;  %1165 = vadd.xlane.f32.xlu0 %v1164_v0  ;;  %v1161_v2 = vsel %vm1147_vm7, %v3008_v1, 0.0 }
 0x71a   : > { %1162 = vadd.xlane.f32.xlu0 %v1161_v2 }
 0x730   : > { %2970 = vrot.lane.b32.xlu0 %v3281_v23, %s3059_s5  ;;  %s2562_s5 = sshll.u32 %s3549_s25, 4 }
 0x731   : > { %s667_s26 = scalar_lea.vmem %s3530_s21, %s2562_s5 }
 0x742   : > { %v1449_v3 = vpop.xlane.xlu1 %1448 }
 0x743   : > { %v1451_v4 = vsub.f32 %v1443_v49, %v1449_v3 }
 0x745   : > { %v1454_v5 = vmul.f32 1.442695, %v1451_v4 }
 0x746   : > { %v2986_v7 = vpop.permute.xlu1 %2985 }
 0x747   : > { %3009 = vpow2.f32 %v1454_v5  ;;  %v2988_v8 = vunpack.i.h.bf16 %v2986_v7  ;;  %v2987_v9 = vunpack.i.l.bf16 %v2986_v7 }
 0x749   : > { %v2876_v10 = vpack.c.bf16 %v2988_v8, %v2987_v9 }
 0x74a   : > { %v1926_v11 = vpop.permute.xlu1 %1925 }
 0x74b   : > { %2878 = vmatprep.subr.msk.bf16.mxu0 %vm3287_vm5, %v2876_v10  ;;  %2753 = vmatprep.mubr.msk.f32.mxu0 %vm1053_vm4, %v1926_v11 }
 0x74c   : > { %2881 = vmatpush3.bf16.xpose.msk.msra.mxu0 %vm3287_vm5, %v2876_v10 }
 0x74e   : > { %v1928_v15 = vpop.permute.xlu1 %1927 }
 0x74f   : > { %1445 = vmax.xlane.f32.xlu0 %v1444_v13 }
 0x751   : > { %v3332_v14 = vpop.eup %3009 }
 0x752   : > { %v1459_v16 = vsel %vm1151_vm6, %v3332_v14, 0.0 }
 0x753   : > { %2754 = vmatmul.mubr.msk.f32.vlgmr.msra.gmra.mrb[12].mxu0 %vm1053_vm4, %v1928_v15  ;;  %1460 = vadd.xlane.f32.xlu0 %v1459_v16 }
 0x7a3   : > { %v1166_v17 = vpop.xlane.xlu0 %1165 }
 0x7a4   : > { %3011 = vrcp.f32 %v1166_v17 }
 0x7a7   : > { %v1163_v18 = vpop.xlane.xlu0 %1162 }
 0x7a8   : > { %3013 = vrcp.f32 %v1163_v18 }
 0x7ab   : > { %v2971_v19 = vpop.permute.xlu0 %2970 }
 0x7ac   : > { %v2973_v20 = vunpack.i.h.bf16 %v2971_v19  ;;  %v2972_v21 = vunpack.i.l.bf16 %v2971_v19 }
 0x7ae   : > { %v2846_v24 = vpack.c.bf16 %v2973_v20, %v2972_v21  ;;  %v3012_v25 = vpop.eup %3011  ;;  %v889_v21 = vld [vmem:[%s3522_s13 + $0x8] sm:$0xff] }
 0x7af   : > { %v1170_v28 = vmul.f32 %v3012_v25, %v3006_v62 }
 0x7b0   : > { %2848 = vmatprep.subr.msk.bf16.mxu1 %vm3337_vm10, %v2846_v24 }
 0x7b1   : > { %2851 = vmatpush3.bf16.msk.msra.mxu1 %vm3337_vm10, %v2846_v24 }
 0x7b2   : > { %v3014_v26 = vpop.eup %3013  ;;  %2706 = vmatprep.subr.mxu1 %v888_v40 }
 0x7b3   : > { %v1169_v27 = vmul.f32 %v3014_v26, %v3008_v1 }
 0x7b5   : > { %2703 = vmatprep.mubr.msk.f32.mxu1 %vm1147_vm7, %v1169_v27 }
 0x7b6   : > { %2704 = vmatmul.mubr.msk.f32.vlgmr.msra.gmra.mrb[0].mxu1 %vm1147_vm7, %v1170_v28 }
 0x7b7   : > { %2707 = vmatpush3.msra.mxu1 %v888_v40 }
 0x7dc   : > { %v1446_v29 = vpop.xlane.xlu0 %1445 }
 0x7dd   : > { %v1450_v30 = vsub.f32 %v1442_v12, %v1446_v29 }
 0x7df   : > { %v1452_v31 = vmul.f32 1.442695, %v1450_v30 }
 0x7e0   : > { %v1461_v54 = vpop.xlane.xlu0 %1460 }
 0x7e1   : > { %3015 = vpow2.f32 %v1452_v31 }
 0x7e9   : > { %v2736_v32 = vpop.f32.mrb[10].mxu0 }
 0x7ea   : > { %v1729_v33 = vmul.f32 0.35355338, %v2736_v32  ;;  %v1719_v34 = vpop.f32.mrb[11].mxu0 }
 0x7eb   : > { %v3016_v36 = vpop.eup %3015  ;;  %v1728_v41 = vmul.f32 0.35355338, %v1719_v34 }
 0x7ec   : > { %v1456_v37 = vsel %vm1147_vm7, %v3016_v36, 0.0  ;;  %v1731_v38 = vadd.f32 %v3306_v35, %v1729_v33 }
 0x7ed   : > { %1457 = vadd.xlane.f32.xlu0 %v1456_v37  ;;  %v1730_v42 = vadd.f32 %v3306_v35, %v1728_v41 }
 0x7ee   : > { %v1735_v39 = vsel %vm1151_vm6, %v1731_v38, -inf }
 0x7ef   : > { %1736 = vmax.xlane.f32.xlu1 %v1735_v39  ;;  %v1732_v43 = vsel %vm1147_vm7, %v1730_v42, -inf }
 0x803   : > { %2980 = vrot.lane.b32.xlu0 %v3281_v23, %s3061_s1 }
 0x822   : > { %1733 = vmax.xlane.f32.xlu0 %v1732_v43 }
 0x826   : > { %v2755_v44 = vpop.f32.mrb[12].mxu0 }
 0x827   : > { %v2007_v45 = vpop.f32.mrb[13].mxu0  ;;  %v2017_v47 = vmul.f32 0.35355338, %v2755_v44 }
 0x828   : > { %v2016_v49 = vmul.f32 0.35355338, %v2007_v45 }
 0x829   : > { %v2019_v52 = vadd.f32 %v3306_v35, %v2017_v47 }
 0x82a   : > { %v2018_v50 = vadd.f32 %v3306_v35, %v2016_v49 }
 0x82b   : > { %v2023_v53 = vsel %vm1151_vm6, %v2019_v52, -inf }
 0x82c   : > { %v2020_v51 = vsel %vm1147_vm7, %v2018_v50, -inf }
 0x82d   : > { %2021 = vmax.xlane.f32.xlu1 %v2020_v51 }
 0x831   : > { %2024 = vmax.xlane.f32.xlu1 %v2023_v53 }
 0x87a   : > { %v1458_v55 = vpop.xlane.xlu0 %1457 }
 0x87b   : > { %3017 = vrcp.f32 %v1458_v55 }
 0x87c   : > { %v1737_v56 = vpop.xlane.xlu1 %1736  ;;  %3019 = vrcp.f32 %v1461_v54  ;;  %v2526_v54 = vld [vmem:[%s3523_s14] ss:$0 sm:$0xff] }
 0x87d   : > { %v1739_v57 = vsub.f32 %v1731_v38, %v1737_v56  ;;  %v890_v38 = vld [vmem:[%s3522_s13 + $0x10] sm:$0xff] }
 0x87e   : > { %v2981_v58 = vpop.permute.xlu0 %2980 }
 0x87f   : > { %v1742_v59 = vmul.f32 1.442695, %v1739_v57  ;;  %v2983_v60 = vunpack.i.h.bf16 %v2981_v58  ;;  %v2982_v61 = vunpack.i.l.bf16 %v2981_v58 }
 0x881   : > { %3021 = vpow2.f32 %v1742_v59  ;;  %v2858_v62 = vpack.c.bf16 %v2983_v60, %v2982_v61 }
 0x883   : > { %2860 = vmatprep.subr.msk.bf16.mxu1 %vm3337_vm10, %v2858_v62 }
 0x885   : > { %v3018_v35 = vpop.eup %3017 }
 0x886   : > { %v3020_v0 = vpop.eup %3019  ;;  %v1464_v4 = vmul.f32 %v3018_v35, %v3016_v36 }
 0x887   : > { %v1465_v5 = vmul.f32 %v3020_v0, %v3332_v14 }
 0x889   : > { %v2705_v63 = vpop.f32.mrb[0].mxu1 }
 0x88a   : > { %v1251_v1 = vpop.f32.mrb[1].mxu1 }
 0x88b   : > { %v3022_v2 = vpop.eup %3021  ;;  %2708 = vmatprep.mubr.msk.f32.mxu1 %vm1053_vm4, %v1251_v1 }
 0x88c   : > { %2709 = vmatmul.mubr.msk.f32.vlgmr.msra.gmra.mrb[2].mxu1 %vm1053_vm4, %v2705_v63  ;;  %v1747_v3 = vsel %vm1151_vm6, %v3022_v2, 0.0 }
 0x88d   : > { %2863 = vmatpush3.bf16.msk.msra.mxu1 %vm3337_vm10, %v2858_v62  ;;  %1748 = vadd.xlane.f32.xlu0 %v1747_v3 }
 0x88e   : > { %2722 = vmatprep.mubr.msk.f32.mxu1 %vm1147_vm7, %v1464_v4  ;;  %2725 = vmatprep.subr.mxu1 %v889_v21 }
 0x890   : > { %2723 = vmatmul.mubr.msk.f32.vlgmr.msra.gmra.mrb[4].mxu1 %vm1147_vm7, %v1465_v5  ;;  %v895_v5 = vld [vmem:[%s3526_s17] sm:$0xff] }
 0x891   : > { %2726 = vmatpush3.msra.mxu1 %v889_v21  ;;  %v907_v21 = vld [vmem:[%s3528_s19 + $0x38] sm:$0xff] }
 0x8af   : > { %v1734_v6 = vpop.xlane.xlu0 %1733 }
 0x8b0   : > { %v1738_v7 = vsub.f32 %v1730_v42, %v1734_v6  ;;  %v896_v6 = vld [vmem:[%s3526_s17 + $0x8] sm:$0xff] }
 0x8b2   : > { %v1740_v8 = vmul.f32 1.442695, %v1738_v7  ;;  %v2888_v7 = vpack.c.bf16 %v896_v6, %v895_v5 }
 0x8b4   : > { %3023 = vpow2.f32 %v1740_v8  ;;  %2889 = vmatprep.subr.bf16.mxu0 %v2888_v7  ;;  %v897_v8 = vld [vmem:[%s3526_s17 + $0x10] sm:$0xff] }
 0x8b5   : > { %2891 = vmatpush3.bf16.msra.mxu0 %v2888_v7 }
 0x8ba   : > { %v2022_v9 = vpop.xlane.xlu1 %2021 }
 0x8bb   : > { %v2026_v10 = vsub.f32 %v2018_v50, %v2022_v9  ;;  %v891_v50 = vld [vmem:[%s3522_s13 + $0x18] sm:$0xff] }
 0x8bc   : > { %v898_v9 = vld [vmem:[%s3526_s17 + $0x18] sm:$0xff] }
 0x8bd   : > { %v2028_v16 = vmul.f32 1.442695, %v2026_v10  ;;  %v2892_v10 = vpack.c.bf16 %v898_v9, %v897_v8 }
 0x8be   : > { %v3024_v11 = vpop.eup %3023  ;;  %v2025_v12 = vpop.xlane.xlu1 %2024 }
 0x8bf   : > { %v2027_v13 = vsub.f32 %v2019_v52, %v2025_v12  ;;  %v1744_v15 = vsel %vm1147_vm7, %v3024_v11, 0.0  ;;  %2893 = vmatprep.subr.bf16.mxu0 %v2892_v10  ;;  %v901_v12 = vld [vmem:[%s3528_s19 + $0x8] sm:$0xff] }
 0x8c0   : > { %1745 = vadd.xlane.f32.xlu0 %v1744_v15  ;;  %2895 = vmatpush3.bf16.msra.mxu0 %v2892_v10 }
 0x8c1   : > { %v2030_v17 = vmul.f32 1.442695, %v2027_v13  ;;  %v902_v13 = vld [vmem:[%s3528_s19 + $0x10] sm:$0xff] }
 0x8c3   : > { %3025 = vpow2.f32 %v2030_v17 }
 0x8c4   : > { %3027 = vpow2.f32 %v2028_v16  ;;  %v903_v16 = vld [vmem:[%s3528_s19 + $0x18] sm:$0xff] }
 0x8c5   : > { %v2900_v17 = vpack.c.bf16 %v903_v16, %v902_v13 }
 0x8cd   : > { %v3026_v14 = vpop.eup %3025 }
 0x8ce   : > { %v2035_v18 = vsel %vm1151_vm6, %v3026_v14, 0.0  ;;  %v3028_v19 = vpop.eup %3027 }
 0x8cf   : > { %2036 = vadd.xlane.f32.xlu1 %v2035_v18  ;;  %v2032_v20 = vsel %vm1147_vm7, %v3028_v19, 0.0  ;;  %v905_v18 = vld [vmem:[%s3528_s19 + $0x28] sm:$0xff] }
 0x8d3   : > { %2033 = vadd.xlane.f32.xlu1 %v2032_v20  ;;  %v906_v20 = vld [vmem:[%s3528_s19 + $0x30] sm:$0xff] }
 0x8d6   : > { %2990 = vrot.lane.b32.xlu0 %v3281_v23, %s3062_s27 }
 0x8e4   : > { %2995 = vrot.lane.b32.xlu1 %v3281_v23, %s3063_s28 }
 0x91a   : > { %v1749_v24 = vpop.xlane.xlu0 %1748 }
 0x94d   : > { %v1746_v25 = vpop.xlane.xlu0 %1745 }
 0x94e   : > { %3029 = vrcp.f32 %v1746_v25  ;;  %v908_v25 = vld [vmem:[%s3528_s19 + $0x40] sm:$0xff] }
 0x94f   : > { %3031 = vrcp.f32 %v1749_v24  ;;  %v2908_v24 = vpack.c.bf16 %v907_v21, %v906_v20 }
 0x951   : > { %v2991_v26 = vpop.permute.xlu0 %2990 }
 0x952   : > { %v2993_v27 = vunpack.i.h.bf16 %v2991_v26  ;;  %v2992_v28 = vunpack.i.l.bf16 %v2991_v26  ;;  %v909_v26 = vld [vmem:[%s3528_s19 + $0x48] sm:$0xff] }
 0x954   : > { %v2870_v29 = vpack.c.bf16 %v2993_v27, %v2992_v28  ;;  %v2912_v27 = vpack.c.bf16 %v909_v26, %v908_v25  ;;  %v910_v28 = vld [vmem:[%s3528_s19 + $0x50] sm:$0xff] }
 0x956   : > { %2872 = vmatprep.subr.msk.bf16.mxu1 %vm3337_vm10, %v2870_v29 }
 0x958   : > { %v3030_v32 = vpop.eup %3029 }
 0x959   : > { %v3032_v37 = vpop.eup %3031  ;;  %v1752_v23 = vmul.f32 %v3030_v32, %v3024_v11  ;;  %v900_v11 = vld [vmem:[%s3528_s19] sm:$0xff]  ;;  %v913_v32 = vld [vmem:[%s3528_s19 + $0x68] sm:$0xff] }
 0x95a   : > { %v1753_v41 = vmul.f32 %v3032_v37, %v3022_v2  ;;  %v2896_v15 = vpack.c.bf16 %v901_v12, %v900_v11 }
 0x95c   : > { %v2037_v30 = vpop.xlane.xlu1 %2036 }
 0x960   : > { %v2034_v31 = vpop.xlane.xlu1 %2033 }
 0x961   : > { %3033 = vrcp.f32 %v2034_v31  ;;  %v912_v31 = vld [vmem:[%s3528_s19 + $0x60] sm:$0xff] }
 0x962   : > { %3035 = vrcp.f32 %v2037_v30 }
 0x963   : > { %v2724_v33 = vpop.f32.mrb[4].mxu1 }
 0x964   : > { %v2996_v34 = vpop.permute.xlu1 %2995  ;;  %v1545_v36 = vpop.f32.mrb[5].mxu1 }
 0x965   : > { %2727 = vmatprep.mubr.msk.f32.mxu1 %vm1053_vm4, %v1545_v36  ;;  %v2998_v39 = vunpack.i.h.bf16 %v2996_v34  ;;  %v2997_v40 = vunpack.i.l.bf16 %v2996_v34 }
 0x966   : > { %2728 = vmatmul.mubr.msk.f32.vlgmr.msra.gmra.mrb[2].mxu1 %vm1053_vm4, %v2724_v33  ;;  %v2920_v33 = vpack.c.bf16 %v913_v32, %v912_v31 }
 0x967   : > { %2875 = vmatpush3.bf16.msk.msra.mxu1 %vm3337_vm10, %v2870_v29  ;;  %2741 = vmatprep.mubr.msk.f32.mxu1 %vm1147_vm7, %v1752_v23  ;;  %v2882_v42 = vpack.c.bf16 %v2998_v39, %v2997_v40  ;;  %v911_v29 = vld [vmem:[%s3528_s19 + $0x58] sm:$0xff] }
 0x968   : > { %2744 = vmatprep.subr.mxu1 %v890_v38  ;;  %v2916_v30 = vpack.c.bf16 %v911_v29, %v910_v28 }
 0x96a   : > { %2742 = vmatmul.mubr.msk.f32.vlgmr.msra.gmra.mrb[6].mxu1 %vm1147_vm7, %v1753_v41  ;;  %v2554_v41 = vld [vmem:[%s3524_s15] ss:$0 sm:$0xff] }
 0x96b   : > { %2745 = vmatpush3.msra.mxu1 %v890_v38  ;;  %v3034_v43 = vpop.eup %3033 }
 0x96c   : > { %2884 = vmatprep.subr.msk.bf16.mxu1 %vm3337_vm10, %v2882_v42  ;;  %v3036_v47 = vpop.eup %3035  ;;  %v2040_v49 = vmul.f32 %v3034_v43, %v3028_v19  ;;  %v2555_v43 = vld [vmem:[%s3525_s16] ss:$0 sm:$0xff] }
 0x96d   : > { %v2041_v51 = vmul.f32 %v3036_v47, %v3026_v14  ;;  %v904_v14 = vld [vmem:[%s3528_s19 + $0x20] sm:$0xff] }
 0x96e   : > { %v2904_v19 = vpack.c.bf16 %v905_v18, %v904_v14 }
 0xa3d   : > { %v2743_v44 = vpop.f32.mrb[6].mxu1 }
 0xa3e   : > { %v1833_v45 = vpop.f32.mrb[7].mxu1 }
 0xa3f   : > { %2746 = vmatprep.mubr.msk.f32.mxu1 %vm1053_vm4, %v1833_v45 }
 0xa40   : > { %2747 = vmatmul.mubr.msk.f32.vlgmr.msra.gmra.mrb[2].mxu1 %vm1053_vm4, %v2743_v44 }
 0xa41   : > { %2887 = vmatpush3.bf16.msk.msra.mxu1 %vm3337_vm10, %v2882_v42  ;;  %2760 = vmatprep.mubr.msk.f32.mxu1 %vm1147_vm7, %v2040_v49 }
 0xa42   : > { %2763 = vmatprep.subr.mxu1 %v891_v50 }
 0xa44   : > { %2761 = vmatmul.mubr.msk.f32.vlgmr.msra.gmra.mrb[8].mxu1 %vm1147_vm7, %v2041_v51 }
 0xa45   : > { %2764 = vmatpush3.msra.mxu1 %v891_v50 }
 0xa46   : > { %2897 = vmatprep.subr.bf16.mxu1 %v2896_v15 }
 0xb17   : > { %v2762_v52 = vpop.f32.mrb[8].mxu1 }
 0xb18   : > { %v2121_v53 = vpop.f32.mrb[9].mxu1 }
 0xb19   : > { %2765 = vmatprep.mubr.msk.f32.mxu1 %vm1053_vm4, %v2121_v53  ;;  %v915_v53 = vld [vmem:[%s3528_s19 + $0x78] sm:$0xff] }
 0xb1a   : > { %2766 = vmatmul.mubr.msk.f32.vlgmr.msra.gmra.mrb[2].mxu1 %vm1053_vm4, %v2762_v52  ;;  %v914_v52 = vld [vmem:[%s3528_s19 + $0x70] sm:$0xff] }
 0xb1b   : > { %2899 = vmatpush3.bf16.msra.mxu1 %v2896_v15 }
 0xb1c   : > { %2901 = vmatprep.subr.bf16.mxu1 %v2900_v17 }
 0xb1f   : > { %2903 = vmatpush3.bf16.msra.mxu1 %v2900_v17 }
 0xb20   : > { %2905 = vmatprep.subr.bf16.mxu1 %v2904_v19 }
 0xb23   : > { %2907 = vmatpush3.bf16.msra.mxu1 %v2904_v19 }
 0xb24   : > { %2909 = vmatprep.subr.bf16.mxu1 %v2908_v24 }
 0xb27   : > { %2911 = vmatpush3.bf16.msra.mxu1 %v2908_v24 }
 0xb28   : > { %2913 = vmatprep.subr.bf16.mxu1 %v2912_v27 }
 0xb2b   : > { %2915 = vmatpush3.bf16.msra.mxu1 %v2912_v27 }
 0xb2c   : > { %2917 = vmatprep.subr.bf16.mxu1 %v2916_v30 }
 0xb2f   : > { %2919 = vmatpush3.bf16.msra.mxu1 %v2916_v30 }
 0xb30   : > { %2921 = vmatprep.subr.bf16.mxu1 %v2920_v33 }
 0xb33   : > { %2923 = vmatpush3.bf16.msra.mxu1 %v2920_v33 }
 0xbed   : > { %v2767_v55 = vpop.f32.mrb[2].mxu1 }
 0xbee   : > { %v2928_v22 = vadd.f32 %v2767_v55, %v2526_v54  ;;  %v2202_v56 = vpop.f32.mrb[3].mxu1  ;;  %v2556_v55 = vld [vmem:[%s3527_s18] ss:$0 sm:$0xff] }
 0xbef   : > { %v2929_v57 = vadd.f32 %v2526_v54, %v2202_v56  ;;  %v2924_v54 = vpack.c.bf16 %v915_v53, %v914_v52 }
 0xbf0   : > { %v3406_v58 = vadd.f32 %v2928_v22, %v3249_v48 }
 0xbf1   : > { %v3409_v59 = vadd.f32 %v2929_v57, %v3245_v46  ;;  %2925 = vmatprep.subr.bf16.mxu1 %v2924_v54 }
 0xbf2   : > { %v2218_v60 = vsel %vm875_vm3, %v3406_v58, 0.0  ;;  %2927 = vmatpush3.bf16.msra.mxu1 %v2924_v54 }
 0xbf3   : > { %2219 = vadd.xlane.f32.xlu1 %v2218_v60  ;;  %v2215_v61 = vsel %vm680_vm1, %v3409_v59, 0.0 }
 0xbf4   : > { %2216 = vadd.xlane.f32.xlu0 %v2215_v61 }
 0xc80   : > { %v2220_v62 = vpop.xlane.xlu1 %2219 }
 0xc81   : > { %v2222_v35 = vmul.f32 0.03125, %v2220_v62  ;;  %v2217_v63 = vpop.xlane.xlu0 %2216 }
 0xc82   : > { %v2221_v0 = vmul.f32 0.03125, %v2217_v63 }
 0xc83   : > { %v3416_v1 = vsub.f32 %v3406_v58, %v2222_v35  ;;  %v2559_v35 = vld [vmem:[%s3529_s20] ss:$0 sm:$0xff] }
 0xc84   : > { %v2223_v48 = vsub.f32 %v3409_v59, %v2221_v0 }
 0xc85   : > { %v2226_v3 = vmul.f32 %v3416_v1, %v3416_v1 }
 0xc86   : > { %v2225_v2 = vmul.f32 %v2223_v48, %v2223_v48 }
 0xc87   : > { %v2230_v4 = vsel %vm875_vm3, %v2226_v3, 0.0 }
 0xc88   : > { %v2227_v46 = vsel %vm680_vm1, %v2225_v2, 0.0 }
 0xc89   : > { %2228 = vadd.xlane.f32.xlu0 %v2227_v46 }
 0xc8d   : > { %2231 = vadd.xlane.f32.xlu0 %v2230_v4 }
 0xd16   : > { %v2229_v34 = vpop.xlane.xlu0 %2228 }
 0xd17   : > { %v2233_v36 = vmul.f32 0.03125, %v2229_v34 }
 0xd19   : > { %v2235_v37 = vadd.f32 1e-05, %v2233_v36 }
 0xd1a   : > { %v2232_v23 = vpop.xlane.xlu0 %2231 }
 0xd1b   : > { %3037 = vrsqrt.f32 %v2235_v37  ;;  %v2234_v38 = vmul.f32 0.03125, %v2232_v23 }
 0xd1d   : > { %v2236_v39 = vadd.f32 1e-05, %v2234_v38 }
 0xd1f   : > { %3039 = vrsqrt.f32 %v2236_v39 }
 0xd25   : > { %v3038_v40 = vpop.eup %3037 }
 0xd26   : > { %v2239_v42 = vmul.f32 %v3038_v40, %v2223_v48 }
 0xd28   : > { %v2247_v44 = vmul.f32 %v2554_v41, %v2239_v42 }
 0xd29   : > { %v3040_v45 = vpop.eup %3039 }
 0xd2a   : > { %v2240_v47 = vmul.f32 %v3040_v45, %v3416_v1  ;;  %v2255_v49 = vadd.f32 %v2555_v43, %v2247_v44 }
 0xd2c   : > { %v2248_v50 = vmul.f32 %v2554_v41, %v2240_v47  ;;  %2776 = vmatprep.mubr.msk.f32.mxu0 %vm680_vm1, %v2255_v49 }
 0xd2e   : > { %v2256_v51 = vadd.f32 %v2555_v43, %v2248_v50 }
 0xd30   : > { %2777 = vmatmul.mubr.msk.f32.vlgmr.msra.gmra.mrb[14].mxu0 %vm680_vm1, %v2256_v51 }
 0xe03   : > { %v2778_v22 = vpop.f32.mrb[14].mxu0 }
 0xe04   : > { %v2341_v56 = vadd.f32 %v2778_v22, %v2556_v55  ;;  %v2335_v57 = vpop.f32.mrb[15].mxu0 }
 0xe05   : > { %v2336_v60 = vadd.f32 %v2556_v55, %v2335_v57 }
 0xe06   : > { %v2345_v62 = vmax.f32 %v2341_v56, 0.0 }
 0xe07   : > { %v2344_v61 = vmax.f32 %v2336_v60, 0.0 }
 0xe09   : > { %2811 = vmatprep.mubr.f32.mxu1 %v2344_v61 }
 0xe0a   : > { %2812 = vmatmul.mubr.f32.vlgmr.msra.gmra.mrb[10].mxu1 %v2345_v62 }
 0xedd   : > { %v2813_v63 = vpop.f32.mrb[10].mxu1 }
 0xede   : > { %v2422_v0 = vadd.f32 %v2813_v63, %v3406_v58  ;;  %v2412_v1 = vpop.f32.mrb[11].mxu1 }
 0xedf   : > { %v2421_v48 = vadd.f32 %v2412_v1, %v3409_v59 }
 0xee0   : > { %v2430_v2 = vadd.f32 %v2559_v35, %v2422_v0 }
 0xee1   : > { %v2429_v46 = vadd.f32 %v2559_v35, %v2421_v48 }
 0xee2   : > { %2432 = vst.msk [vmem:[%s667_s26 + $0x8] sm:$0x1] %vm875_vm3, %v2430_v2 }
 0xee3   : > { %2431 = vst.msk [vmem:[%s667_s26] sm:$0xff] %vm680_vm1, %v2429_v46 }
 0xee4 PF: > { %s31_s2 = sadd.s32 1, %s3047_s2  }
 0xee5   : > { %p28_p4 = scmp.ge.s32.totalorder %s31_s2, 4  }
 0xee7   :  { %30 = sbr.rel (!%p28_p4) target bundleno = 7 (0x7), region = 137 }

// kernel: _lambda_.6
= control target key start
LH: loop header
LB: loop body
LE: loop exit
PB: predicated region body
PF: predicated region fallthrough
CT: control target
= control target key end

     0   :  { %s4498_s6 = smov 1   ;;  %s4499_s10 = smov 2   ;;  %s5075_s0 = inlined_call_operand.smem [shape: u32[35], index: -1, kind: input, shape index: {}] }
   0x1   :  { %s4555_s5 = sld [smem:[%s5075_s0]]   ;;  %s4500_s14 = smov 3  }
   0x2   :  { %s4560_s9 = sld [smem:[%s5075_s0 + %s4498_s6]]   ;;  %s4501_s18 = smov 4  }
   0x3   :  { %s4565_s13 = sld [smem:[%s5075_s0 + %s4499_s10]]   ;;  %s4502_s22 = smov 5  }
   0x4   :  { %s4570_s17 = sld [smem:[%s5075_s0 + %s4500_s14]]   ;;  %s4503_s26 = smov 6  }
   0x5   :  { %s4575_s21 = sld [smem:[%s5075_s0 + %s4501_s18]]   ;;  %s4504_s30 = smov 7  }
   0x6   :  { %s4580_s25 = sld [smem:[%s5075_s0 + %s4502_s22]]   ;;  %s4505_s4 = smov 8  }
   0x7   :  { %s4585_s29 = sld [smem:[%s5075_s0 + %s4503_s26]]   ;;  %s4506_s10 = smov 9  }
   0x8   :  { %s4590_s3 = sld [smem:[%s5075_s0 + %s4504_s30]]   ;;  %s4507_s15 = smov 10  }
   0x9   :  { %s4595_s8 = sld [smem:[%s5075_s0 + %s4505_s4]]   ;;  %s4508_s20 = smov 11  }
   0xa   :  { %s4600_s14 = sld [smem:[%s5075_s0 + %s4506_s10]]   ;;  %s4509_s26 = smov 12  }
   0xb   :  { %s4605_s19 = sld [smem:[%s5075_s0 + %s4507_s15]]   ;;  %s4510_s1 = smov 13  }
   0xc   :  { %s4610_s24 = sld [smem:[%s5075_s0 + %s4508_s20]]   ;;  %s4511_s7 = smov 14  }
   0xd   :  { %s4615_s30 = sld [smem:[%s5075_s0 + %s4509_s26]]   ;;  %s4512_s15 = smov 15  }
   0xe   :  { %5084 = sst [smem:[#allocation4_spill]] %s4590_s3  ;;  %s4513_s22 = smov 16  }
   0xf   :  { %s4620_s6 = sld [smem:[%s5075_s0 + %s4510_s1]]   ;;  %s4514_s28 = smov 17  }
  0x10   :  { %s4625_s12 = sld [smem:[%s5075_s0 + %s4511_s7]]   ;;  %s4515_s7 = smov 18  }
  0x11   :  { %s4630_s20 = sld [smem:[%s5075_s0 + %s4512_s15]]   ;;  %s4516_s15 = smov 19  }
  0x12   :  { %s4635_s27 = sld [smem:[%s5075_s0 + %s4513_s22]]   ;;  %s4517_s22 = smov 20  }
  0x13   :  { %5085 = sst [smem:[#allocation5_spill]] %s4615_s30  ;;  %s4531_s10 = smov 34  }
  0x14   :  { %s4640_s4 = sld [smem:[%s5075_s0 + %s4514_s28]]   ;;  %s4518_s28 = smov 21  }
  0x15   :  { %s4645_s30 = sld [smem:[%s5075_s0 + %s4515_s7]]   ;;  %s4519_s7 = smov 22  }
  0x16   :  { %s4727_s16 = smov 0   ;;  %s4729_s18 = smov 0  }
  0x17   :  { %5086 = sst [smem:[#allocation6_spill]] %s4630_s20  ;;  %s4733_s23 = smov 0  }
  0x18   :  { %5087 = sst [smem:[#allocation7_spill]] %s4635_s27 }
  0x19   :  { %s4650_s20 = sld [smem:[%s5075_s0 + %s4516_s15]]   ;;  %s4520_s15 = smov 23  }
  0x1a   :  { %5088 = sst [smem:[#allocation8_spill]] %s4640_s4 }
  0x1b   :  { %5089 = sst [smem:[#allocation9_spill]] %s4645_s30 }
  0x1c   :  { %s4655_s27 = sld [smem:[%s5075_s0 + %s4517_s22]]   ;;  %s4521_s22 = smov 24  }
  0x1d   :  { %s4660_s4 = sld [smem:[%s5075_s0 + %s4518_s28]]   ;;  %s4522_s28 = smov 25  }
  0x1e   :  { %s4665_s30 = sld [smem:[%s5075_s0 + %s4519_s7]]   ;;  %s4523_s7 = smov 26  }
  0x1f   :  { %5090 = sst [smem:[#allocation10_spill]] %s4650_s20 }
  0x20   :  { %s4670_s20 = sld [smem:[%s5075_s0 + %s4520_s15]]   ;;  %s4524_s15 = smov 27  }
  0x22   :  { %5091 = sst [smem:[#allocation11_spill]] %s4655_s27 }
  0x23   :  { %5092 = sst [smem:[#allocation12_spill]] %s4660_s4 }
  0x24   :  { %5093 = sst [smem:[#allocation13_spill]] %s4665_s30 }
  0x25   :  { %s4675_s27 = sld [smem:[%s5075_s0 + %s4521_s22]]   ;;  %s4525_s22 = smov 28  }
  0x26   :  { %5094 = sst [smem:[#allocation14_spill]] %s4670_s20 }
  0x27   :  { %s4680_s4 = sld [smem:[%s5075_s0 + %s4522_s28]]   ;;  %s4526_s28 = smov 29  }
  0x28   :  { %s4685_s30 = sld [smem:[%s5075_s0 + %s4523_s7]]   ;;  %s4527_s7 = smov 30  }
  0x29   :  { %s4690_s20 = sld [smem:[%s5075_s0 + %s4524_s15]]   ;;  %s4528_s15 = smov 31  }
  0x2b   :  { %5095 = sst [smem:[#allocation15_spill]] %s4675_s27 }
  0x2c   :  { %s4695_s27 = sld [smem:[%s5075_s0 + %s4525_s22]]   ;;  %s4529_s22 = smov 32  }
  0x2d   :  { %5096 = sst [smem:[#allocation16_spill]] %s4680_s4 }
  0x2e   :  { %5097 = sst [smem:[#allocation17_spill]] %s4685_s30 }
  0x2f   :  { %5098 = sst [smem:[#allocation18_spill]] %s4690_s20 }
  0x30   :  { %s4700_s4 = sld [smem:[%s5075_s0 + %s4526_s28]]   ;;  %s4530_s28 = smov 33  }
  0x31   :  { %s4705_s30 = sld [smem:[%s5075_s0 + %s4527_s7]]  }
  0x32   :  { %5099 = sst [smem:[#allocation19_spill]] %s4695_s27 }
  0x33   :  { %s4710_s20 = sld [smem:[%s5075_s0 + %s4528_s15]]   ;;  %s4725_s15 = smov 0  }
  0x34   :  { %s4715_s27 = sld [smem:[%s5075_s0 + %s4529_s22]]   ;;  %s4731_s22 = smov 0  }
  0x36   :  { %5100 = sst [smem:[#allocation20_spill]] %s4700_s4 }
  0x37   :  { %5101 = sst [smem:[#allocation21_spill]] %s4705_s30 }
  0x38   :  { %s3710_s4 = sld [smem:[%s5075_s0 + %s4530_s28]]  }
  0x39   :  { %s4723_s30 = sld [smem:[%s5075_s0 + %s4531_s10]]  }
  0x3e   :  { %v74_v0 = vstv %s3710_s4 }
  0x3f   :  { %75 = vst [vmem:[#allocation3] sm:$0x1] %v74_v0 }
  0x40 LB: > { %s5102_s3 = sld [smem:[#allocation4_spill]]  ;;  %s90_s0 = sadd.s32 1, %s4488_s18  ;;  %s4480_s15 = sphi %s4725_s15, %s5124_s15   ;;  %s4496_s23 = sphi %s4733_s23, %s81_s23   ;;  %s4492_s22 = sphi %s4731_s22, %s5127_s22   ;;  %s4488_s18 = sphi %s4729_s18, %s5126_s18   ;;  %s4484_s16 = sphi %s4727_s16, %s5125_s16  }
  0x41   : > { %s93_s4 = sadd.s32 1, %s4492_s22  ;;  %p91_p0 = scmp.ge.s32.totalorder %s90_s0, 2 }
  0x42   : > { %p3715_p1 = scmp.ge.s32.totalorder %s4496_s23, 1  ;;  %p979_p2 = scmp.lt.s32.totalorder %s4496_s23, 5 }
  0x43   : > { %s5129_s0 = smov (%p91_p0, %s90_s0), 0  ;;  %s5131_s4 = smov (!%p91_p0, %s93_s4), %s4492_s22 }
  0x44   : > { %p980_p3 = pnand %p3715_p1, %p979_p2  ;;  %p95_p4 = scmp.ge.s32.totalorder %s5131_s4, 2 }
  0x45   : > { %v1094_v1 = vld [vmem:[%s4570_s17] sm:$0xff] (!%p980_p3)  ;;  %v1095_v2 = vld [vmem:[%s4570_s17 + $0x8] sm:$0xff] (!%p980_p3)  ;;  %v1096_v3 = vld [vmem:[%s4570_s17 + $0x10] sm:$0xff] (!%p980_p3)  ;;  %v4532_v4 = vmov (!%p980_p3), 0.0|0.0   ;;  %vm4533_vm0 = vmmov (!%p980_p3), 0   ;;  %v4534_v7 = vmov (!%p980_p3), 0.0  }
  0x46   : > { %s5133_s4 = smov (%p95_p4, %s5131_s4), 0  ;;  %983 = sbr.rel (%p980_p3) target bundleno = 5407 (0x151f), region = 156 }
  0x47   : > { %4149 = vmatprep.subr.bf16.mxu0 (!%p980_p3), %v4532_v4  ;;  %v4150_v5 = vpack.c.bf16 (!%p980_p3), %v1095_v2, %v1094_v1  ;;  %v1097_v6 = vld [vmem:[%s4570_s17 + $0x18] sm:$0xff] (!%p980_p3)  ;;  %3916 = vmatprep.mubr.msk.f32.mxu0 (!%p980_p3), %vm4533_vm0, %v4534_v7  ;;  %p1073_p5 = scmp.lt.s32.totalorder (!%p980_p3), %s4484_s16, 1  ;;  %p1077_p6 = scmp.lt.s32.totalorder (!%p980_p3), %s4480_s15, 1  ;;  %v1179_v9 = vld [vmem:[%s4580_s25] sm:$0xff] (!%p980_p3)  ;;  %v1180_v10 = vld [vmem:[%s4580_s25 + $0x8] sm:$0xff] (!%p980_p3)  ;;  %vm1105_vm1 = vcmask (!%p980_p3), 261120  }
  0x48   : > { %3946 = vmatprep.subr.mxu1 (!%p980_p3), %v4534_v7  ;;  %3948 = vmatprep.mubr.msk.f32.mxu1 (!%p980_p3), %vm4533_vm0, %v4534_v7  ;;  %v4153_v8 = vpack.c.bf16 (!%p980_p3), %v1097_v6, %v1096_v3  ;;  %v4156_v12 = vpack.c.bf16 (!%p980_p3), %v1180_v10, %v1179_v9  ;;  %v1181_v13 = vld [vmem:[%s4580_s25 + $0x10] sm:$0xff] (!%p980_p3)  ;;  %v1182_v14 = vld [vmem:[%s4580_s25 + $0x18] sm:$0xff] (!%p980_p3)  ;;  %v1263_v16 = vld [vmem:[%s5102_s3] sm:$0xff] (!%p980_p3)  ;;  %vm1428_vm2 = vcmask (!%p980_p3), 60416   ;;  %vm1440_vm3 = vcmask (!%p980_p3), 64512   ;;  %s5103_s7 = sld [smem:[#allocation5_spill]] (!%p980_p3) }
  0x49   : > { %4151 = vmatpush3.bf16.msra.mxu0 (!%p980_p3), %v4150_v5  ;;  %v4159_v15 = vpack.c.bf16 (!%p980_p3), %v1182_v14, %v1181_v13  ;;  %v1264_v17 = vld [vmem:[%s5102_s3 + $0x8] sm:$0xff] (!%p980_p3)  ;;  %v1265_v20 = vld [vmem:[%s5102_s3 + $0x10] sm:$0xff] (!%p980_p3)  ;;  %v1266_v21 = vld [vmem:[%s5102_s3 + $0x18] sm:$0xff] (!%p980_p3)  ;;  %s5104_s11 = sld [smem:[#allocation6_spill]] (!%p980_p3)  ;;  %vm2096_vm4 = vcmask (!%p980_p3), 257024   ;;  %vm1919_vm5 = vcmask (!%p980_p3), 31744  }
  0x4a   : > { %4152 = vmatprep.subr.bf16.mxu0 (!%p980_p3), %v4532_v4  ;;  %v4162_v19 = vpack.c.bf16 (!%p980_p3), %v1264_v17, %v1263_v16  ;;  %v4165_v22 = vpack.c.bf16 (!%p980_p3), %v1266_v21, %v1265_v20  ;;  %v3721_v25 = vld [vmem:[%s4585_s29] ss:$0 sm:$0xff] (!%p980_p3)  ;;  %v1515_v47 = vld [vmem:[%s4600_s14 + $0x8] sm:$0xff] (!%p980_p3)  ;;  %v1516_v48 = vld [vmem:[%s4600_s14 + $0x10] sm:$0xff] (!%p980_p3)  ;;  %vm1934_vm6 = vcmask (!%p980_p3), 1043456   ;;  %vm2094_vm7 = vcmask (!%p980_p3), 253952  }
  0x4b   : > { %v3719_v27 = vld [vmem:[%s4575_s21] ss:$0 sm:$0xff] (!%p980_p3)  ;;  %v1517_v50 = vld [vmem:[%s4600_s14 + $0x18] sm:$0xff] (!%p980_p3)  ;;  %v1600_v56 = vld [vmem:[%s4610_s24 + $0x8] sm:$0xff] (!%p980_p3)  ;;  %vm2140_vm8 = vcmask (!%p980_p3), 258048   ;;  %vm2363_vm10 = vcmask (!%p980_p3), 102400  }
  0x4c   : > { %v3723_v31 = vld [vmem:[%s4595_s8] ss:$0 sm:$0xff] (!%p980_p3)  ;;  %v4171_v51 = vpack.c.bf16 (!%p980_p3), %v1517_v50, %v1516_v48  ;;  %v1601_v58 = vld [vmem:[%s4610_s24 + $0x10] sm:$0xff] (!%p980_p3)  ;;  %v1602_v59 = vld [vmem:[%s4610_s24 + $0x18] sm:$0xff] (!%p980_p3)  ;;  %vm2359_vm11 = vcmask (!%p980_p3), 105472   ;;  %vm2394_vm12 = vcmask (!%p980_p3), 1044480  }
  0x4d   : > { %s5135_s16 = smov (!%p1073_p5, %s4484_s16), 1  ;;  %s5137_s15 = smov (!%p1077_p6, %s4480_s15), 1  ;;  %4154 = vmatpush3.bf16.msra.mxu0 %v4153_v8  ;;  %v1514_v46 = vld [vmem:[%s4600_s14] sm:$0xff]  ;;  %v4177_v60 = vpack.c.bf16 %v1602_v59, %v1601_v58  ;;  %v1681_v62 = vld [vmem:[%s4620_s6 + $0x8] sm:$0xff]  ;;  %v1682_v0 = vld [vmem:[%s4620_s6 + $0x10] sm:$0xff]  ;;  %vm4543_vm13 = vmmov 1  }
  0x4e   : > { %s3716_s26 = sshll.u32 %s5135_s16, 2  ;;  %4155 = vmatprep.subr.bf16.mxu0 %v4532_v4  ;;  %s3717_s1 = sshll.u32 %s5137_s15, 3  ;;  %v4168_v49 = vpack.c.bf16 %v1515_v47, %v1514_v46  ;;  %v1599_v55 = vld [vmem:[%s4610_s24] sm:$0xff]  ;;  %v1683_v1 = vld [vmem:[%s4620_s6 + $0x18] sm:$0xff]  ;;  %vm4910_vm9 = vmpackc.low %vm1440_vm3, %vm1440_vm3  ;;  %vm3580_vm15 = vcmask 0  }
  0x4f   : > { %s1076_s28 = scalar_lea.vmem %s4555_s5, %s3716_s26  ;;  %s1080_s2 = scalar_lea.vmem %s4560_s9, %s3717_s1  ;;  %v4174_v57 = vpack.c.bf16 %v1600_v56, %v1599_v55  ;;  %v1680_v61 = vld [vmem:[%s4620_s6] sm:$0xff]  ;;  %v4183_v5 = vpack.c.bf16 %v1683_v1, %v1682_v0  ;;  %vm4953_vm14 = vmpackc.low %vm2394_vm12, %vm4543_vm13 }
  0x50   : > { %v4782_v11 = vld [vmem:[%s1076_s28] sm:$0xf]  ;;  %s1083_s10 = scalar_lea.vmem %s4565_s13, %s5137_s15  ;;  %v4180_v63 = vpack.c.bf16 %v1681_v62, %v1680_v61  ;;  %s5105_s26 = sld [smem:[#allocation7_spill]] }
  0x51   : > { %3917 = vmatmul.mubr.msk.f32.vlgmr.msra.gmra.mrb[0].mxu0 %vm1105_vm1, %v4782_v11  ;;  %v4796_v18 = vld [vmem:[%s1080_s2] sm:$0xff]  ;;  %s5106_s28 = sld [smem:[#allocation8_spill]]  ;;  %s5107_s1 = sld [smem:[#allocation10_spill]] }
  0x52   : > { %4157 = vmatpush3.bf16.msra.mxu0 %v4156_v12  ;;  %3927 = vmatprep.mubr.msk.f32.mxu0 %vm4533_vm0, %v4534_v7  ;;  %v3727_v36 = vld [vmem:[%s1083_s10] ss:$0 sm:$0xff]  ;;  %s5108_s2 = sld [smem:[#allocation9_spill]]  ;;  %s5109_s10 = sld [smem:[#allocation13_spill]] }
  0x53   : > { %4158 = vmatprep.subr.bf16.mxu0 %v4532_v4  ;;  %v3729_v9 = vld [vmem:[%s4605_s19] ss:$0 sm:$0xff]  ;;  %s5123_s3 = sld [smem:[#allocation20_spill]] }
  0x54   : > { %v3731_v16 = vld [vmem:[%s5103_s7] ss:$0 sm:$0xff]  ;;  %s5110_s7 = sld [smem:[#allocation11_spill]] }
  0x56   : > { %4160 = vmatpush3.bf16.msra.mxu0 %v4159_v15  ;;  %v3733_v15 = vld [vmem:[%s4625_s12] ss:$0 sm:$0xff] }
  0x57   : > { %4161 = vmatprep.subr.bf16.mxu0 %v4532_v4 }
  0x59   : > { %3928 = vmatmul.mubr.msk.f32.vlgmr.msra.gmra.mrb[2].mxu0 %vm1105_vm1, %v4796_v18 }
  0x5a   : > { %4163 = vmatpush3.bf16.msra.mxu0 %v4162_v19  ;;  %3938 = vmatprep.mubr.msk.f32.mxu0 %vm4533_vm0, %v4534_v7 }
  0x5b   : > { %4164 = vmatprep.subr.bf16.mxu0 %v4532_v4 }
  0x5e   : > { %4166 = vmatpush3.bf16.msra.mxu0 %v4165_v22  ;;  %v1761_v22 = vld [vmem:[%s5104_s11] sm:$0xff] }
  0x5f   : > { %3941 = vmatprep.subr.mxu0 %v4534_v7 }
  0x61   : > { %3939 = vmatmul.mubr.msk.f32.vlgmr.msra.gmra.mrb[4].mxu0 %vm1105_vm1, %v4796_v18 }
  0x62   : > { %3943 = vmatprep.mubr.msk.f32.mxu0 %vm4533_vm0, %v4534_v7 }
 0x124   : > { %v1175_v23 = vpop.f32.mrb[0].mxu0 }
 0x125   : > { %v3918_v24 = vpop.f32.mrb[1].mxu0  ;;  %v1176_v30 = vadd.f32 %v3719_v27, %v1175_v23  ;;  %v1762_v23 = vld [vmem:[%s5104_s11 + $0x8] sm:$0xff] }
 0x126   : > { %v1763_v24 = vld [vmem:[%s5104_s11 + $0x10] sm:$0xff] }
 0x12c   : > { %v1259_v26 = vpop.f32.mrb[2].mxu0 }
 0x12d   : > { %v1260_v28 = vadd.f32 %v3721_v25, %v1259_v26  ;;  %v3929_v29 = vpop.f32.mrb[3].mxu0  ;;  %v4186_v25 = vpack.c.bf16 %v1762_v23, %v1761_v22  ;;  %v1764_v26 = vld [vmem:[%s5104_s11 + $0x18] sm:$0xff]  ;;  %v3743_v23 = vld [vmem:[%s5110_s7] ss:$0 sm:$0xff]  ;;  %s4536_s7 = smov 96  }
 0x12e   : > { %v4189_v27 = vpack.c.bf16 %v1764_v26, %v1763_v24 }
 0x12f   : > { %3942 = vmatpush3.xpose.msk.msra.mxu0 %vm1105_vm1, %v1260_v28 }
 0x130   : > { %4167 = vmatprep.subr.bf16.mxu0 %v4532_v4 }
 0x132   : > { %3944 = vmatmul.mubr.msk.f32.vlgmr.msra.gmra.mrb[6].mxu0 %vm1105_vm1, %v1176_v30 }
 0x133   : > { %3959 = vmatprep.mubr.msk.f32.mxu0 %vm4533_vm0, %v4534_v7  ;;  %4169 = vmatpush3.bf16.msra.mxu0 %v4168_v49 }
 0x134   : > { %v1340_v32 = vpop.f32.mrb[4].mxu0  ;;  %4170 = vmatprep.subr.bf16.mxu0 %v4532_v4 }
 0x135   : > { %v1341_v33 = vadd.f32 %v3723_v31, %v1340_v32  ;;  %v3940_v34 = vpop.f32.mrb[5].mxu0 }
 0x137   : > { %3947 = vmatpush3.msra.mxu1 %v1341_v33  ;;  %4172 = vmatpush3.bf16.msra.mxu0 %v4171_v51  ;;  %v2093_v51 = vld [vmem:[%s5107_s1] sm:$0x1]  ;;  %s5112_s1 = sld [smem:[#allocation14_spill]] }
 0x138   : > { %4173 = vmatprep.subr.bf16.mxu1 %v4532_v4  ;;  %4179 = vmatprep.subr.bf16.mxu0 %v4532_v4  ;;  %2095 = vst.msk [vmem:[#allocation2] sm:$0x1] %vm2094_vm7, %v2093_v51 }
 0x205   : > { %v1416_v35 = vpop.f32.mrb[6].mxu0 }
 0x206   : > { %v1420_v37 = vmul.f32 0.17677669, %v1416_v35  ;;  %v3945_v38 = vpop.f32.mrb[7].mxu0 }
 0x208   : > { %v1427_v39 = vadd.f32 %v3727_v36, %v1420_v37  ;;  %v3735_v37 = vld [vmem:[%s5105_s26] ss:$0 sm:$0xff]  ;;  %s5111_s26 = sld [smem:[#allocation12_spill]] }
 0x20a   : > { %v1429_v40 = vsel %vm1428_vm2, %v1427_v39, -inf }
 0x20b   : > { %1430 = vmax.xlane.f32.xlu0 %v1429_v40  ;;  %v2008_v40 = vld [vmem:[%s5106_s28] sm:$0xff] }
 0x20e   : > { %v3744_v26 = vld [vmem:[%s5111_s26] ss:$0 sm:$0xff]  ;;  %s4537_s26 = smov 120  }
 0x298   : > { %v1431_v41 = vpop.xlane.xlu0 %1430 }
 0x299   : > { %v1432_v42 = vsub.f32 %v1427_v39, %v1431_v41  ;;  %v2009_v41 = vld [vmem:[%s5106_s28 + $0x8] sm:$0xff] }
 0x29b   : > { %v1433_v43 = vmul.f32 1.442695, %v1432_v42  ;;  %v2010_v42 = vld [vmem:[%s5106_s28 + $0x10] sm:$0xff] }
 0x29d   : > { %4412 = vpow2.f32 %v1433_v43  ;;  %v4192_v43 = vpack.c.bf16 %v2009_v41, %v2008_v40 }
 0x2a7   : > { %v4413_v44 = vpop.eup %4412 }
 0x2a8   : > { %v1435_v45 = vsel %vm1428_vm2, %v4413_v44, 0.0 }
 0x2a9   : > { %1436 = vadd.xlane.f32.xlu0 %v1435_v45 }
 0x336   : > { %v1437_v52 = vpop.xlane.xlu0 %1436 }
 0x337   : > { %4414 = vrcp.f32 %v1437_v52  ;;  %v3741_v52 = vld [vmem:[%s5108_s2] ss:$0 sm:$0xff]  ;;  %s4535_s2 = smov 88  }
 0x341   : > { %v4415_v53 = vpop.eup %4414 }
 0x342   : > { %v1439_v54 = vmul.f32 %v4415_v53, %v4413_v44  ;;  %v2011_v44 = vld [vmem:[%s5106_s28 + $0x18] sm:$0xff] }
 0x343   : > { %v4195_v45 = vpack.c.bf16 %v2011_v44, %v2010_v42 }
 0x344   : > { %3949 = vmatmul.mubr.msk.f32.vlgmr.msra.gmra.mrb[0].mxu1 %vm1440_vm3, %v1439_v54 }
 0x345   : > { %3970 = vmatprep.mubr.msk.f32.mxu1 %vm4533_vm0, %v4534_v7  ;;  %4175 = vmatpush3.bf16.msra.mxu1 %v4174_v57 }
 0x346   : > { %4176 = vmatprep.subr.bf16.mxu1 %v4532_v4 }
 0x349   : > { %4178 = vmatpush3.bf16.msra.mxu1 %v4177_v60 }
 0x34a   : > { %4185 = vmatprep.subr.bf16.mxu1 %v4532_v4 }
 0x34c   : > { %3971 = vmatmul.mubr.msk.f32.vlgmr.msra.gmra.mrb[2].mxu1 %vm1105_vm1, %v4796_v18 }
 0x34d   : > { %3992 = vmatprep.mubr.msk.f32.mxu1 %vm4533_vm0, %v4534_v7  ;;  %4187 = vmatpush3.bf16.msra.mxu1 %v4186_v25 }
 0x34e   : > { %4188 = vmatprep.subr.bf16.mxu1 %v4532_v4 }
 0x351   : > { %4190 = vmatpush3.bf16.msra.mxu1 %v4189_v27 }
 0x352   : > { %4000 = vmatprep.subr.mxu1 %v4534_v7 }
 0x354   : > { %3993 = vmatmul.mubr.msk.f32.vlgmr.msra.gmra.mrb[4].mxu1 %vm1105_vm1, %v4782_v11 }
 0x355   : > { %4002 = vmatprep.mubr.msk.f32.mxu1 %vm4533_vm0, %v4534_v7 }
 0x417   : > { %v1510_v2 = vpop.f32.mrb[0].mxu1 }
 0x418   : > { %v3950_v3 = vpop.f32.mrb[1].mxu1  ;;  %3960 = vmatmul.mubr.msk.f32.vlgmr.msra.gmra.mrb[8].mxu0 %vm1105_vm1, %v1510_v2 }
 0x419   : > { %4181 = vmatpush3.bf16.msra.mxu0 %v4180_v63  ;;  %3981 = vmatprep.mubr.msk.f32.mxu0 %vm4533_vm0, %v4534_v7 }
 0x41a   : > { %4182 = vmatprep.subr.bf16.mxu0 %v4532_v4 }
 0x41d   : > { %4184 = vmatpush3.bf16.msra.mxu0 %v4183_v5 }
 0x41e   : > { %3995 = vmatprep.subr.mxu0 %v4534_v7 }
 0x41f   : > { %v1676_v6 = vpop.f32.mrb[2].mxu1 }
 0x420   : > { %3982 = vmatmul.mubr.msk.f32.vlgmr.msra.gmra.mrb[10].mxu0 %vm1105_vm1, %v4782_v11  ;;  %v3972_v8 = vpop.f32.mrb[3].mxu1  ;;  %v1677_v21 = vadd.f32 %v3731_v16, %v1676_v6 }
 0x421   : > { %3997 = vmatprep.mubr.msk.f32.mxu0 %vm4533_vm0, %v4534_v7  ;;  %v2103_v8 = vld [vmem:[%s5109_s10] sm:$0xff] }
 0x427   : > { %v1838_v36 = vpop.f32.mrb[4].mxu1 }
 0x428   : > { %v3994_v38 = vpop.f32.mrb[5].mxu1  ;;  %v1839_v39 = vadd.f32 %v3735_v37, %v1838_v36 }
 0x42a   : > { %4001 = vmatpush3.msk.msra.mxu1 %vm1934_vm6, %v1839_v39 }
 0x4eb   : > { %v1594_v10 = vpop.f32.mrb[8].mxu0 }
 0x4ec   : > { %v1595_v12 = vadd.f32 %v3729_v9, %v1594_v10  ;;  %v3961_v13 = vpop.f32.mrb[9].mxu0  ;;  %v2104_v9 = vld [vmem:[%s5109_s10 + $0x8] sm:$0xff] }
 0x4ed   : > { %v4197_v10 = vpack.c.bf16 %v2104_v9, %v2103_v8  ;;  %v2106_v13 = vld [vmem:[%s5109_s10 + $0x18] sm:$0xff] }
 0x4ee   : > { %v1598_v14 = vadd.f32 %v1595_v12, %v4782_v11  ;;  %v2105_v12 = vld [vmem:[%s5109_s10 + $0x10] sm:$0xff] }
 0x4ef   : > { %4198 = vmatprep.subr.bf16.mxu1 %v4197_v10 }
 0x4f0   : > { %2097 = vst.msk [vmem:[#allocation2 + $0x1] sm:$0xf] %vm2096_vm4, %v1598_v14  ;;  %v4201_v14 = vpack.c.bf16 %v2106_v13, %v2105_v12 }
 0x4f3   : > { %v1757_v17 = vpop.f32.mrb[10].mxu0 }
 0x4f4   : > { %v1758_v19 = vadd.f32 %v3733_v15, %v1757_v17  ;;  %v3983_v20 = vpop.f32.mrb[11].mxu0 }
 0x4f6   : > { %3996 = vmatpush3.xpose.msk.msra.mxu0 %vm1105_vm1, %v1758_v19 }
 0x4f7   : > { %4191 = vmatprep.subr.bf16.mxu0 %v4532_v4 }
 0x4f9   : > { %3998 = vmatmul.mubr.msk.f32.vlgmr.msra.gmra.mrb[12].mxu0 %vm1105_vm1, %v1677_v21 }
 0x4fa   : > { %4013 = vmatprep.mubr.msk.f32.mxu0 %vm4533_vm0, %v4534_v7  ;;  %4193 = vmatpush3.bf16.msra.mxu0 %v4192_v43 }
 0x4fb   : > { %4194 = vmatprep.subr.bf16.mxu0 %v4532_v4 }
 0x4fe   : > { %4196 = vmatpush3.bf16.msra.mxu0 %v4195_v45 }
 0x5cc   : > { %v1914_v28 = vpop.f32.mrb[12].mxu0 }
 0x5cd   : > { %v1918_v29 = vmul.f32 0.17677669, %v1914_v28  ;;  %v3999_v30 = vpop.f32.mrb[13].mxu0 }
 0x5cf   : > { %v1920_v31 = vsel %vm1919_vm5, %v1918_v29, -inf }
 0x5d0   : > { %1921 = vmax.xlane.f32.xlu1 %v1920_v31 }
 0x65d   : > { %v1922_v32 = vpop.xlane.xlu1 %1921 }
 0x65e   : > { %v1923_v33 = vsub.f32 %v1918_v29, %v1922_v32  ;;  %v3745_v32 = vld [vmem:[%s5112_s1] ss:$0 sm:$0xff]  ;;  %s4538_s1 = smov 80  }
 0x660   : > { %v1924_v34 = vmul.f32 1.442695, %v1923_v33 }
 0x662   : > { %4416 = vpow2.f32 %v1924_v34 }
 0x66c   : > { %v4417_v11 = vpop.eup %4416 }
 0x66d   : > { %v1926_v35 = vsel %vm1919_vm5, %v4417_v11, 0.0 }
 0x66e   : > { %1927 = vadd.xlane.f32.xlu1 %v1926_v35 }
 0x6fb   : > { %v1928_v46 = vpop.xlane.xlu1 %1927 }
 0x6fc   : > { %4418 = vrcp.f32 %v1928_v46 }
 0x706   : > { %v4419_v47 = vpop.eup %4418 }
 0x707   : > { %v1930_v48 = vmul.f32 %v4419_v47, %v4417_v11 }
 0x709   : > { %4003 = vmatmul.mubr.msk.f32.vlgmr.msra.gmra.mrb[6].mxu1 %vm1919_vm5, %v1930_v48 }
 0x70a   : > { %4200 = vmatpush3.bf16.msra.mxu1 %v4197_v10 }
 0x70b   : > { %4202 = vmatprep.subr.bf16.mxu1 %v4201_v14 }
 0x70e   : > { %4204 = vmatpush3.bf16.msra.mxu1 %v4201_v14 }
 0x7dc   : > { %v2004_v49 = vpop.f32.mrb[6].mxu1 }
 0x7dd   : > { %v4004_v50 = vpop.f32.mrb[7].mxu1  ;;  %4014 = vmatmul.mubr.msk.f32.vlgmr.msra.gmra.mrb[14].mxu0 %vm1105_vm1, %v2004_v49 }
 0x8b0   : > { %v2088_v53 = vpop.f32.mrb[14].mxu0 }
 0x8b1   : > { %v2089_v54 = vadd.f32 %v3741_v52, %v2088_v53  ;;  %v4015_v55 = vpop.f32.mrb[15].mxu0 }
 0x8b3   : > { %v2092_v56 = vadd.f32 %v2089_v54, %v4796_v18 }
 0x8b5   : > { %2098 = vst.msk [vmem:[#allocation2 + $0x5] sm:$0xff] %vm1105_vm1, %v2092_v56 }
 0x8bc   : > { %v2100_v57 = vld [vmem:[#allocation2 + $0x8] sm:$0x1f]  ;;  %v4888_v58 = vld [vmem:[#allocation2] sm:$0xff] }
 0x8bd   : > { %v2141_v59 = vsel %vm2140_vm8, %v2100_v57, 0.0  ;;  %v2137_v60 = vsel %vm1105_vm1, %v4888_v58, 0.0 }
 0x8be   : > { %2142 = vadd.xlane.f32.xlu1 %v2141_v59  ;;  %2138 = vadd.xlane.f32.xlu0 %v2137_v60 }
 0x94b   : > { %v2143_v61 = vpop.xlane.xlu1 %2142  ;;  %v2139_v62 = vpop.xlane.xlu0 %2138 }
 0x94c   : > { %v2146_v63 = vmul.f32 0.03125, %v2143_v61  ;;  %v2145_v18 = vmul.f32 0.03125, %v2139_v62 }
 0x94e   : > { %v2148_v0 = vsub.f32 %v2100_v57, %v2146_v63  ;;  %v2147_v1 = vsub.f32 %v4888_v58, %v2145_v18 }
 0x950   : > { %v2150_v2 = vmul.f32 %v2148_v0, %v2148_v0  ;;  %v2149_v3 = vmul.f32 %v2147_v1, %v2147_v1 }
 0x952   : > { %v2154_v5 = vsel %vm2140_vm8, %v2150_v2, 0.0  ;;  %v2151_v6 = vsel %vm1105_vm1, %v2149_v3, 0.0 }
 0x953   : > { %2155 = vadd.xlane.f32.xlu1 %v2154_v5  ;;  %2152 = vadd.xlane.f32.xlu0 %v2151_v6 }
 0x9e0   : > { %v2156_v15 = vpop.xlane.xlu1 %2155  ;;  %v2153_v16 = vpop.xlane.xlu0 %2152 }
 0x9e1   : > { %v2158_v17 = vmul.f32 0.03125, %v2156_v15  ;;  %v2157_v19 = vmul.f32 0.03125, %v2153_v16 }
 0x9e3   : > { %v2160_v20 = vadd.f32 1e-05, %v2158_v17  ;;  %v2159_v21 = vadd.f32 1e-05, %v2157_v19 }
 0x9e5   : > { %4420 = vrsqrt.f32 %v2160_v20 }
 0x9e6   : > { %4422 = vrsqrt.f32 %v2159_v21 }
 0x9ef   : > { %v4421_v22 = vpop.eup %4420 }
 0x9f0   : > { %v4423_v24 = vpop.eup %4422  ;;  %v2164_v25 = vmul.f32 %v4421_v22, %v2148_v0 }
 0x9f1   : > { %v2163_v27 = vmul.f32 %v4423_v24, %v2147_v1 }
 0x9f2   : > { %v2172_v28 = vmul.f32 %v3743_v23, %v2164_v25 }
 0x9f3   : > { %v2171_v29 = vmul.f32 %v3743_v23, %v2163_v27 }
 0x9f4   : > { %v2180_v30 = vadd.f32 %v3744_v26, %v2172_v28 }
 0x9f5   : > { %v2179_v31 = vadd.f32 %v3744_v26, %v2171_v29 }
 0x9f7   : > { %4024 = vmatprep.mubr.msk.f32.mxu1 %vm1105_vm1, %v2179_v31 }
 0x9f8   : > { %4025 = vmatmul.mubr.msk.f32.vlgmr.msra.gmra.mrb[8].mxu1 %vm1105_vm1, %v2180_v30 }
 0xacb   : > { %v4026_v33 = vpop.f32.mrb[8].mxu1 }
 0xacc   : > { %v2265_v34 = vadd.f32 %v4026_v33, %v3745_v32  ;;  %v2259_v11 = vpop.f32.mrb[9].mxu1 }
 0xacd   : > { %v2260_v35 = vadd.f32 %v3745_v32, %v2259_v11 }
 0xacf   : > { %4031 = vmatprep.mubr.msk.f32.mxu0 %vm1440_vm3, %v2260_v35  ;;  %v4904_v36 = vpack.i.bf16 %v2265_v34, %v2260_v35 }
 0xad1   : > { %4378 = vrot.lane.b32.xlu1 %v4904_v36, %s4535_s2  ;;  %4373 = vrot.lane.b32.xlu0 %v4904_v36, %s4536_s7  ;;  %s4539_s2 = smov 112   ;;  %s4540_s7 = smov 72  }
 0xad5   : > { %2559 = vrot.lane.b32.xlu1 %v2260_v35, %s4537_s26 }
 0xad9   : > { %2561 = vrot.lane.b32.xlu1 %v2265_v34, %s4537_s26  ;;  %s4541_s26 = smov 104  }
 0xb43   : > { %v4379_v37 = vpop.permute.xlu1 %4378  ;;  %v4374_v38 = vpop.permute.xlu0 %4373 }
 0xb44   : > { %v4381_v39 = vunpack.i.h.bf16 %v4379_v37  ;;  %v4380_v40 = vunpack.i.l.bf16 %v4379_v37  ;;  %v4376_v41 = vunpack.i.h.bf16 %v4374_v38  ;;  %v4375_v42 = vunpack.i.l.bf16 %v4374_v38 }
 0xb46   : > { %v4205_v44 = vpack.c.bf16 %v4376_v41, %v4375_v42  ;;  %v4217_v45 = vpack.c.bf16 %v4381_v39, %v4380_v40 }
 0xb47   : > { %v2560_v46 = vpop.permute.xlu1 %2559 }
 0xb48   : > { %4207 = vmatprep.subr.msk.bf16.mxu0 %vm4910_vm9, %v4205_v44 }
 0xb49   : > { %4210 = vmatpush3.bf16.xpose.msk.msra.mxu0 %vm4910_vm9, %v4205_v44 }
 0xb4a   : > { %4219 = vmatprep.subr.msk.bf16.mxu0 %vm4910_vm9, %v4217_v45 }
 0xb4b   : > { %v2562_v47 = vpop.permute.xlu1 %2561 }
 0xb50   : > { %4032 = vmatmul.mubr.msk.f32.vlgmr.msra.gmra.mrb[16].mxu0 %vm1440_vm3, %v2265_v34 }
 0xb51   : > { %4222 = vmatpush3.bf16.xpose.msk.msra.mxu0 %vm4910_vm9, %v4217_v45  ;;  %4050 = vmatprep.mubr.msk.f32.mxu0 %vm1440_vm3, %v2560_v46 }
 0xb58   : > { %4051 = vmatmul.mubr.msk.f32.vlgmr.msra.gmra.mrb[18].mxu0 %vm1440_vm3, %v2562_v47 }
 0xc23   : > { %v4033_v48 = vpop.f32.mrb[16].mxu0 }
 0xc24   : > { %v2358_v49 = vmul.f32 0.35355338, %v4033_v48  ;;  %v2348_v50 = vpop.f32.mrb[17].mxu0 }
 0xc25   : > { %v2357_v51 = vmul.f32 0.35355338, %v2348_v50 }
 0xc26   : > { %v2364_v52 = vsel %vm2363_vm10, %v2358_v49, -inf }
 0xc27   : > { %2365 = vmax.xlane.f32.xlu1 %v2364_v52  ;;  %v2360_v53 = vsel %vm2359_vm11, %v2357_v51, -inf }
 0xc28   : > { %2361 = vmax.xlane.f32.xlu0 %v2360_v53 }
 0xc2b   : > { %v4052_v54 = vpop.f32.mrb[18].mxu0 }
 0xc2c   : > { %v2641_v55 = vpop.f32.mrb[19].mxu0  ;;  %v2651_v56 = vmul.f32 0.35355338, %v4052_v54 }
 0xc2d   : > { %v2650_v21 = vmul.f32 0.35355338, %v2641_v55 }
 0xc2e   : > { %v2655_v57 = vsel %vm2363_vm10, %v2651_v56, -inf }
 0xc2f   : > { %v2652_v23 = vsel %vm2359_vm11, %v2650_v21, -inf }
 0xc38   : > { %4388 = vrot.lane.b32.xlu1 %v4904_v36, %s4538_s1  ;;  %s4542_s1 = smov 64  }
 0xc3c   : > { %2843 = vrot.lane.b32.xlu1 %v2260_v35, %s4539_s2 }
 0xc40   : > { %2845 = vrot.lane.b32.xlu1 %v2265_v34, %s4539_s2  ;;  %s5117_s2 = sld [smem:[#allocation15_spill]] }
 0xc46   : > { %v2108_v47 = vld [vmem:[%s5117_s2] sm:$0xff] }
 0xc64   : > { %2656 = vmax.xlane.f32.xlu1 %v2655_v57 }
 0xc75   : > { %4398 = vrot.lane.b32.xlu1 %v4904_v36, %s4540_s7  ;;  %s4544_s7 = smov 56  }
 0xc79   : > { %3127 = vrot.lane.b32.xlu1 %v2260_v35, %s4541_s26 }
 0xc7d   : > { %3129 = vrot.lane.b32.xlu1 %v2265_v34, %s4541_s26  ;;  %s4545_s26 = smov 48  }
 0xcb4   : > { %v2366_v59 = vpop.xlane.xlu1 %2365 }
 0xcb5   : > { %v2368_v60 = vsub.f32 %v2358_v49, %v2366_v59  ;;  %v2362_v61 = vpop.xlane.xlu0 %2361 }
 0xcb6   : > { %v2367_v62 = vsub.f32 %v2357_v51, %v2362_v61 }
 0xcb7   : > { %v2371_v63 = vmul.f32 1.442695, %v2368_v60 }
 0xcb8   : > { %v2369_v18 = vmul.f32 1.442695, %v2367_v62  ;;  %v4389_v0 = vpop.permute.xlu1 %4388 }
 0xcb9   : > { %4424 = vpow2.f32 %v2371_v63  ;;  %v4391_v1 = vunpack.i.h.bf16 %v4389_v0  ;;  %v4390_v2 = vunpack.i.l.bf16 %v4389_v0 }
 0xcba   : > { %4426 = vpow2.f32 %v2369_v18 }
 0xcbb   : > { %v4229_v3 = vpack.c.bf16 %v4391_v1, %v4390_v2 }
 0xcbc   : > { %v2844_v5 = vpop.permute.xlu1 %2843 }
 0xcbd   : > { %4231 = vmatprep.subr.msk.bf16.mxu0 %vm4910_vm9, %v4229_v3  ;;  %4069 = vmatprep.mubr.msk.f32.mxu0 %vm1440_vm3, %v2844_v5 }
 0xcbe   : > { %4234 = vmatpush3.bf16.xpose.msk.msra.mxu0 %vm4910_vm9, %v4229_v3 }
 0xcc0   : > { %v2846_v8 = vpop.permute.xlu1 %2845 }
 0xcc3   : > { %v4425_v6 = vpop.eup %4424 }
 0xcc4   : > { %v2376_v9 = vsel %vm2363_vm10, %v4425_v6, 0.0  ;;  %v4427_v10 = vpop.eup %4426 }
 0xcc5   : > { %4070 = vmatmul.mubr.msk.f32.vlgmr.msra.gmra.mrb[20].mxu0 %vm1440_vm3, %v2846_v8  ;;  %2377 = vadd.xlane.f32.xlu0 %v2376_v9  ;;  %v2373_v12 = vsel %vm2359_vm11, %v4427_v10, 0.0 }
 0xcc9   : > { %2374 = vadd.xlane.f32.xlu0 %v2373_v12 }
 0xcdf   : > { %4383 = vrot.lane.b32.xlu0 %v4904_v36, %s4542_s1  ;;  %s4546_s1 = smov 40  }
 0xcf1   : > { %v2657_v13 = vpop.xlane.xlu1 %2656 }
 0xcf2   : > { %v2659_v14 = vsub.f32 %v2651_v56, %v2657_v13 }
 0xcf4   : > { %v2662_v15 = vmul.f32 1.442695, %v2659_v14 }
 0xcf5   : > { %v4399_v16 = vpop.permute.xlu1 %4398 }
 0xcf6   : > { %4428 = vpow2.f32 %v2662_v15  ;;  %v4401_v17 = vunpack.i.h.bf16 %v4399_v16  ;;  %v4400_v19 = vunpack.i.l.bf16 %v4399_v16 }
 0xcf8   : > { %v4241_v20 = vpack.c.bf16 %v4401_v17, %v4400_v19 }
 0xcf9   : > { %v3128_v22 = vpop.permute.xlu1 %3127 }
 0xcfa   : > { %4243 = vmatprep.subr.msk.bf16.mxu0 %vm4910_vm9, %v4241_v20  ;;  %4088 = vmatprep.mubr.msk.f32.mxu0 %vm1440_vm3, %v3128_v22 }
 0xcfb   : > { %4246 = vmatpush3.bf16.xpose.msk.msra.mxu0 %vm4910_vm9, %v4241_v20 }
 0xcfc   : > { %4253 = vmatprep.subr.bf16.mxu0 %v4532_v4 }
 0xcfd   : > { %v3130_v25 = vpop.permute.xlu1 %3129 }
 0xcfe   : > { %2653 = vmax.xlane.f32.xlu0 %v2652_v23 }
 0xd00   : > { %v4946_v24 = vpop.eup %4428 }
 0xd01   : > { %v2667_v26 = vsel %vm2363_vm10, %v4946_v24, 0.0 }
 0xd02   : > { %4089 = vmatmul.mubr.msk.f32.vlgmr.msra.gmra.mrb[22].mxu0 %vm1440_vm3, %v3130_v25  ;;  %2668 = vadd.xlane.f32.xlu0 %v2667_v26 }
 0xd03   : > { %4111 = vmatprep.mubr.msk.f32.mxu0 %vm4533_vm0, %v4534_v7 }
 0xd52   : > { %v2378_v27 = vpop.xlane.xlu0 %2377 }
 0xd53   : > { %4430 = vrcp.f32 %v2378_v27 }
 0xd56   : > { %v2375_v28 = vpop.xlane.xlu0 %2374 }
 0xd57   : > { %4432 = vrcp.f32 %v2375_v28  ;;  %v2109_v28 = vld [vmem:[%s5117_s2 + $0x8] sm:$0xff] }
 0xd5a   : > { %v4384_v29 = vpop.permute.xlu0 %4383 }
 0xd5b   : > { %v4386_v30 = vunpack.i.h.bf16 %v4384_v29  ;;  %v4385_v31 = vunpack.i.l.bf16 %v4384_v29 }
 0xd5d   : > { %v4211_v33 = vpack.c.bf16 %v4386_v30, %v4385_v31  ;;  %v4431_v34 = vpop.eup %4430 }
 0xd5e   : > { %v2382_v37 = vmul.f32 %v4431_v34, %v4425_v6 }
 0xd5f   : > { %4213 = vmatprep.subr.msk.bf16.mxu1 %vm4953_vm14, %v4211_v33 }
 0xd60   : > { %4216 = vmatpush3.bf16.msk.msra.mxu1 %vm4953_vm14, %v4211_v33 }
 0xd61   : > { %v4433_v11 = vpop.eup %4432  ;;  %4041 = vmatprep.subr.mxu1 %v2108_v47 }
 0xd62   : > { %v2381_v35 = vmul.f32 %v4433_v11, %v4427_v10 }
 0xd64   : > { %4038 = vmatprep.mubr.msk.f32.mxu1 %vm2359_vm11, %v2381_v35 }
 0xd65   : > { %4039 = vmatmul.mubr.msk.f32.vlgmr.msra.gmra.mrb[10].mxu1 %vm2359_vm11, %v2382_v37 }
 0xd66   : > { %4042 = vmatpush3.msra.mxu1 %v2108_v47 }
 0xd8b   : > { %v2654_v38 = vpop.xlane.xlu0 %2653 }
 0xd8c   : > { %v2658_v39 = vsub.f32 %v2650_v21, %v2654_v38 }
 0xd8e   : > { %v2660_v40 = vmul.f32 1.442695, %v2658_v39 }
 0xd8f   : > { %v2669_v56 = vpop.xlane.xlu0 %2668 }
 0xd90   : > { %4434 = vpow2.f32 %v2660_v40 }
 0xd98   : > { %v4071_v41 = vpop.f32.mrb[20].mxu0 }
 0xd99   : > { %v2935_v42 = vmul.f32 0.35355338, %v4071_v41  ;;  %v2925_v43 = vpop.f32.mrb[21].mxu0 }
 0xd9a   : > { %v4435_v44 = vpop.eup %4434  ;;  %v2934_v48 = vmul.f32 0.35355338, %v2925_v43 }
 0xd9b   : > { %v2939_v45 = vsel %vm2363_vm10, %v2935_v42, -inf  ;;  %v2664_v46 = vsel %vm2359_vm11, %v4435_v44, 0.0 }
 0xd9c   : > { %2940 = vmax.xlane.f32.xlu1 %v2939_v45  ;;  %2665 = vadd.xlane.f32.xlu0 %v2664_v46  ;;  %v2936_v49 = vsel %vm2359_vm11, %v2934_v48, -inf  ;;  %v2110_v45 = vld [vmem:[%s5117_s2 + $0x10] sm:$0xff] }
 0xdb2   : > { %4393 = vrot.lane.b32.xlu0 %v4904_v36, %s4544_s7  ;;  %s5118_s7 = sld [smem:[#allocation16_spill]] }
 0xdd1   : > { %2937 = vmax.xlane.f32.xlu0 %v2936_v49 }
 0xdd5   : > { %v4090_v50 = vpop.f32.mrb[22].mxu0 }
 0xdd6   : > { %v3209_v51 = vpop.f32.mrb[23].mxu0  ;;  %v3219_v53 = vmul.f32 0.35355338, %v4090_v50  ;;  %v3757_v50 = vld [vmem:[%s5118_s7] ss:$0 sm:$0xff]  ;;  %s5121_s7 = sld [smem:[#allocation17_spill]] }
 0xdd7   : > { %v3218_v52 = vmul.f32 0.35355338, %v3209_v51 }
 0xdd8   : > { %v3223_v55 = vsel %vm2363_vm10, %v3219_v53, -inf }
 0xdd9   : > { %v3220_v54 = vsel %vm2359_vm11, %v3218_v52, -inf }
 0xdda   : > { %3221 = vmax.xlane.f32.xlu1 %v3220_v54 }
 0xdde   : > { %3224 = vmax.xlane.f32.xlu1 %v3223_v55 }
 0xe29   : > { %v2941_v57 = vpop.xlane.xlu1 %2940  ;;  %v2666_v59 = vpop.xlane.xlu0 %2665 }
 0xe2a   : > { %v2943_v60 = vsub.f32 %v2935_v42, %v2941_v57  ;;  %4436 = vrcp.f32 %v2666_v59 }
 0xe2c   : > { %v2946_v61 = vmul.f32 1.442695, %v2943_v60 }
 0xe2d   : > { %v4394_v62 = vpop.permute.xlu0 %4393 }
 0xe2e   : > { %4438 = vpow2.f32 %v2946_v61  ;;  %v4396_v63 = vunpack.i.h.bf16 %v4394_v62  ;;  %v4395_v18 = vunpack.i.l.bf16 %v4394_v62  ;;  %v2111_v62 = vld [vmem:[%s5117_s2 + $0x18] sm:$0xff]  ;;  %s5122_s2 = sld [smem:[#allocation18_spill]] }
 0xe2f   : > { %4440 = vrcp.f32 %v2669_v56 }
 0xe30   : > { %v4223_v0 = vpack.c.bf16 %v4396_v63, %v4395_v18 }
 0xe32   : > { %4225 = vmatprep.subr.msk.bf16.mxu1 %vm4953_vm14, %v4223_v0 }
 0xe34   : > { %v4437_v1 = vpop.eup %4436 }
 0xe35   : > { %v2672_v9 = vmul.f32 %v4437_v1, %v4435_v44 }
 0xe38   : > { %v4972_v2 = vpop.eup %4438  ;;  %v4040_v3 = vpop.f32.mrb[10].mxu1 }
 0xe39   : > { %v2463_v5 = vpop.f32.mrb[11].mxu1  ;;  %v2951_v6 = vsel %vm2363_vm10, %v4972_v2, 0.0  ;;  %v4441_v8 = vpop.eup %4440 }
 0xe3a   : > { %2952 = vadd.xlane.f32.xlu0 %v2951_v6  ;;  %4043 = vmatprep.mubr.msk.f32.mxu1 %vm1440_vm3, %v2463_v5  ;;  %v2673_v10 = vmul.f32 %v4441_v8, %v4946_v24 }
 0xe3b   : > { %4044 = vmatmul.mubr.msk.f32.vlgmr.msra.gmra.mrb[12].mxu1 %vm1440_vm3, %v4040_v3 }
 0xe3c   : > { %4228 = vmatpush3.bf16.msk.msra.mxu1 %vm4953_vm14, %v4223_v0  ;;  %4057 = vmatprep.mubr.msk.f32.mxu1 %vm2359_vm11, %v2672_v9 }
 0xe3d   : > { %4060 = vmatprep.subr.mxu1 %v2109_v28 }
 0xe3f   : > { %4058 = vmatmul.mubr.msk.f32.vlgmr.msra.gmra.mrb[14].mxu1 %vm2359_vm11, %v2673_v10 }
 0xe40   : > { %4061 = vmatpush3.msra.mxu1 %v2109_v28 }
 0xe5e   : > { %v2938_v12 = vpop.xlane.xlu0 %2937 }
 0xe5f   : > { %v2942_v13 = vsub.f32 %v2934_v48, %v2938_v12 }
 0xe61   : > { %v2944_v14 = vmul.f32 1.442695, %v2942_v13 }
 0xe63   : > { %4442 = vpow2.f32 %v2944_v14 }
 0xe67   : > { %v3222_v15 = vpop.xlane.xlu1 %3221 }
 0xe68   : > { %v3226_v16 = vsub.f32 %v3218_v52, %v3222_v15 }
 0xe6a   : > { %v3228_v21 = vmul.f32 1.442695, %v3226_v16 }
 0xe6b   : > { %v3225_v17 = vpop.xlane.xlu1 %3224 }
 0xe6c   : > { %v3227_v19 = vsub.f32 %v3219_v53, %v3225_v17 }
 0xe6d   : > { %v4443_v20 = vpop.eup %4442 }
 0xe6e   : > { %v3230_v22 = vmul.f32 1.442695, %v3227_v19  ;;  %v2948_v23 = vsel %vm2359_vm11, %v4443_v20, 0.0 }
 0xe6f   : > { %2949 = vadd.xlane.f32.xlu0 %v2948_v23 }
 0xe70   : > { %4444 = vpow2.f32 %v3230_v22 }
 0xe71   : > { %4446 = vpow2.f32 %v3228_v21 }
 0xe7a   : > { %v4445_v24 = vpop.eup %4444 }
 0xe7b   : > { %v3235_v25 = vsel %vm2363_vm10, %v4445_v24, 0.0  ;;  %v4447_v26 = vpop.eup %4446 }
 0xe7c   : > { %3236 = vadd.xlane.f32.xlu1 %v3235_v25  ;;  %v3232_v27 = vsel %vm2359_vm11, %v4447_v26, 0.0 }
 0xe80   : > { %3233 = vadd.xlane.f32.xlu1 %v3232_v27 }
 0xe85   : > { %4403 = vrot.lane.b32.xlu0 %v4904_v36, %s4545_s26  ;;  %s5119_s26 = sld [smem:[#allocation19_spill]] }
 0xe8b   : > { %v2115_v14 = vld [vmem:[%s5119_s26] sm:$0xff]  ;;  %v2116_v15 = vld [vmem:[%s5119_s26 + $0x8] sm:$0xff]  ;;  %v2117_v16 = vld [vmem:[%s5119_s26 + $0x10] sm:$0xff] }
 0xe8c   : > { %v2118_v17 = vld [vmem:[%s5119_s26 + $0x18] sm:$0xff] }
 0xe8d   : > { %v4257_v19 = vpack.c.bf16 %v2118_v17, %v2117_v16 }
 0xe91   : > { %4408 = vrot.lane.b32.xlu1 %v4904_v36, %s4546_s1  ;;  %s5120_s1 = sld [smem:[#allocation21_spill]] }
 0xe97   : > { %v2121_v21 = vld [vmem:[%s5120_s1 + $0x8] sm:$0xff]  ;;  %v2122_v22 = vld [vmem:[%s5120_s1 + $0x10] sm:$0xff] }
 0xe98   : > { %v2125_v27 = vld [vmem:[%s5120_s1 + $0x28] sm:$0xff] }
 0xec7   : > { %v2953_v29 = vpop.xlane.xlu0 %2952 }
 0xefc   : > { %v2950_v30 = vpop.xlane.xlu0 %2949 }
 0xefd   : > { %4448 = vrcp.f32 %v2950_v30  ;;  %v2127_v30 = vld [vmem:[%s5120_s1 + $0x38] sm:$0xff] }
 0xefe   : > { %4450 = vrcp.f32 %v2953_v29  ;;  %v2126_v29 = vld [vmem:[%s5120_s1 + $0x30] sm:$0xff] }
 0xf00   : > { %v4404_v31 = vpop.permute.xlu0 %4403 }
 0xf01   : > { %v4406_v33 = vunpack.i.h.bf16 %v4404_v31  ;;  %v4405_v34 = vunpack.i.l.bf16 %v4404_v31  ;;  %v4269_v31 = vpack.c.bf16 %v2127_v30, %v2126_v29 }
 0xf03   : > { %v4235_v11 = vpack.c.bf16 %v4406_v33, %v4405_v34  ;;  %v2128_v33 = vld [vmem:[%s5120_s1 + $0x40] sm:$0xff]  ;;  %v2129_v34 = vld [vmem:[%s5120_s1 + $0x48] sm:$0xff] }
 0xf05   : > { %4237 = vmatprep.subr.msk.bf16.mxu1 %vm4953_vm14, %v4235_v11 }
 0xf07   : > { %v4449_v40 = vpop.eup %4448 }
 0xf08   : > { %v4451_v43 = vpop.eup %4450  ;;  %v2956_v44 = vmul.f32 %v4449_v40, %v4443_v20  ;;  %v2120_v20 = vld [vmem:[%s5120_s1] sm:$0xff]  ;;  %v2133_v40 = vld [vmem:[%s5120_s1 + $0x68] sm:$0xff] }
 0xf09   : > { %v3237_v35 = vpop.xlane.xlu1 %3236  ;;  %v2957_v48 = vmul.f32 %v4451_v43, %v4972_v2  ;;  %v4260_v23 = vpack.c.bf16 %v2121_v21, %v2120_v20 }
 0xf0d   : > { %v3234_v37 = vpop.xlane.xlu1 %3233 }
 0xf0e   : > { %v4045_v38 = vpop.f32.mrb[12].mxu1  ;;  %4452 = vrcp.f32 %v3234_v37  ;;  %v2131_v37 = vld [vmem:[%s5120_s1 + $0x58] sm:$0xff] }
 0xf0f   : > { %v2544_v39 = vpop.f32.mrb[13].mxu1  ;;  %4454 = vrcp.f32 %v3237_v35  ;;  %v2130_v35 = vld [vmem:[%s5120_s1 + $0x50] sm:$0xff] }
 0xf10   : > { %v2558_v51 = vadd.f32 %v3757_v50, %v2544_v39  ;;  %v4275_v38 = vpack.c.bf16 %v2131_v37, %v2130_v35  ;;  %v2132_v39 = vld [vmem:[%s5120_s1 + $0x60] sm:$0xff]  ;;  %v2134_v50 = vld [vmem:[%s5120_s1 + $0x70] sm:$0xff] }
 0xf11   : > { %v4409_v41 = vpop.permute.xlu1 %4408 }
 0xf12   : > { %v4059_v42 = vpop.f32.mrb[14].mxu1  ;;  %v4411_v46 = vunpack.i.h.bf16 %v4409_v41  ;;  %v4410_v47 = vunpack.i.l.bf16 %v4409_v41  ;;  %v4278_v41 = vpack.c.bf16 %v2133_v40, %v2132_v39 }
 0xf13   : > { %v2753_v36 = vpop.f32.mrb[15].mxu1 }
 0xf14   : > { %4062 = vmatprep.mubr.msk.f32.mxu1 %vm1440_vm3, %v2753_v36  ;;  %v4247_v49 = vpack.c.bf16 %v4411_v46, %v4410_v47  ;;  %v2114_v47 = vld [vmem:[%s5122_s2] sm:$0x1]  ;;  %s3718_s2 = sshll.u32 %s5135_s16, 1 }
 0xf15   : > { %4063 = vmatmul.mubr.msk.f32.vlgmr.msra.gmra.mrb[16].mxu1 %vm1440_vm3, %v4059_v42 }
 0xf16   : > { %4240 = vmatpush3.bf16.msk.msra.mxu1 %vm4953_vm14, %v4235_v11  ;;  %4076 = vmatprep.mubr.msk.f32.mxu1 %vm2359_vm11, %v2956_v44  ;;  %v4272_v11 = vpack.c.bf16 %v2129_v34, %v2128_v33 }
 0xf17   : > { %4079 = vmatprep.subr.mxu1 %v2110_v45 }
 0xf18   : > { %v4453_v55 = vpop.eup %4452 }
 0xf19   : > { %4077 = vmatmul.mubr.msk.f32.vlgmr.msra.gmra.mrb[18].mxu1 %vm2359_vm11, %v2957_v48  ;;  %v4455_v59 = vpop.eup %4454  ;;  %v3240_v60 = vmul.f32 %v4453_v55, %v4447_v26  ;;  %v2124_v26 = vld [vmem:[%s5120_s1 + $0x20] sm:$0xff] }
 0xf1a   : > { %4080 = vmatpush3.msra.mxu1 %v2110_v45  ;;  %v3241_v61 = vmul.f32 %v4455_v59, %v4445_v24  ;;  %v2123_v24 = vld [vmem:[%s5120_s1 + $0x18] sm:$0xff]  ;;  %v4266_v28 = vpack.c.bf16 %v2125_v27, %v2124_v26  ;;  %v2113_v45 = vld [vmem:[%s5121_s7] sm:$0x1] }
 0xf1b   : > { %4249 = vmatprep.subr.msk.bf16.mxu1 %vm4953_vm14, %v4247_v49  ;;  %v4263_v25 = vpack.c.bf16 %v2123_v24, %v2122_v22 }
 0xfe8   : > { %v4064_v52 = vpop.f32.mrb[16].mxu1 }
 0xfe9   : > { %v2834_v53 = vpop.f32.mrb[17].mxu1 }
 0xfea   : > { %v2842_v54 = vadd.f32 %v2834_v53, %v2558_v51  ;;  %v2135_v51 = vld [vmem:[%s5120_s1 + $0x78] sm:$0xff] }
 0xfeb   : > { %v4281_v52 = vpack.c.bf16 %v2135_v51, %v2134_v50 }
 0xfec   : > { %v4078_v56 = vpop.f32.mrb[18].mxu1 }
 0xfed   : > { %v3037_v57 = vpop.f32.mrb[19].mxu1 }
 0xfee   : > { %4081 = vmatprep.mubr.msk.f32.mxu1 %vm1440_vm3, %v3037_v57  ;;  %v2136_v57 = vld [vmem:[%s4710_s20] sm:$0x1] }
 0xfef   : > { %4082 = vmatmul.mubr.msk.f32.vlgmr.msra.gmra.mrb[20].mxu1 %vm1440_vm3, %v4078_v56 }
 0xff0   : > { %4252 = vmatpush3.bf16.msk.msra.mxu1 %vm4953_vm14, %v4247_v49  ;;  %4095 = vmatprep.mubr.msk.f32.mxu1 %vm2359_vm11, %v3240_v60 }
 0xff1   : > { %4098 = vmatprep.subr.mxu1 %v2111_v62 }
 0xff3   : > { %4096 = vmatmul.mubr.msk.f32.vlgmr.msra.gmra.mrb[22].mxu1 %vm2359_vm11, %v3241_v61 }
 0xff4   : > { %4099 = vmatpush3.msra.mxu1 %v2111_v62  ;;  %v3573_v62 = vld [vmem:[%s4715_s27] sm:$0x1] }
 0xff5   : > { %4259 = vmatprep.subr.bf16.mxu1 %v4532_v4 }
0x10c2   : > { %v4083_v63 = vpop.f32.mrb[20].mxu1 }
0x10c3   : > { %v3118_v18 = vpop.f32.mrb[21].mxu1 }
0x10c4   : > { %v3126_v0 = vadd.f32 %v3118_v18, %v2842_v54 }
0x10c6   : > { %v4097_v1 = vpop.f32.mrb[22].mxu1 }
0x10c7   : > { %v3321_v2 = vpop.f32.mrb[23].mxu1 }
0x10c8   : > { %4100 = vmatprep.mubr.msk.f32.mxu1 %vm1440_vm3, %v3321_v2 }
0x10c9   : > { %4101 = vmatmul.mubr.msk.f32.vlgmr.msra.gmra.mrb[24].mxu1 %vm1440_vm3, %v4097_v1  ;;  %v3578_v1 = vld [vmem:[#allocation3] sm:$0x1] }
0x10ca   : > { %4146 = vmatprep.mubr.msk.f32.mxu1 %vm4533_vm0, %v4534_v7  ;;  %4261 = vmatpush3.bf16.msra.mxu1 %v4260_v23 }
0x10cb   : > { %4262 = vmatprep.subr.bf16.mxu1 %v4532_v4 }
0x10ce   : > { %4264 = vmatpush3.bf16.msra.mxu1 %v4263_v25 }
0x10cf   : > { %4265 = vmatprep.subr.bf16.mxu1 %v4532_v4 }
0x10d2   : > { %4267 = vmatpush3.bf16.msra.mxu1 %v4266_v28 }
0x10d3   : > { %4268 = vmatprep.subr.bf16.mxu1 %v4532_v4 }
0x10d6   : > { %4270 = vmatpush3.bf16.msra.mxu1 %v4269_v31 }
0x10d7   : > { %4271 = vmatprep.subr.bf16.mxu1 %v4532_v4 }
0x10da   : > { %4273 = vmatpush3.bf16.msra.mxu1 %v4272_v11 }
0x10db   : > { %4274 = vmatprep.subr.bf16.mxu1 %v4532_v4 }
0x10de   : > { %4276 = vmatpush3.bf16.msra.mxu1 %v4275_v38 }
0x10df   : > { %4277 = vmatprep.subr.bf16.mxu1 %v4532_v4 }
0x10e2   : > { %4279 = vmatpush3.bf16.msra.mxu1 %v4278_v41 }
0x10e3   : > { %4280 = vmatprep.subr.bf16.mxu1 %v4532_v4 }
0x10e6   : > { %4282 = vmatpush3.bf16.msra.mxu1 %v4281_v52 }
0x119c   : > { %v4102_v32 = vpop.f32.mrb[24].mxu1 }
0x119d   : > { %v3402_v3 = vpop.f32.mrb[25].mxu1 }
0x119e   : > { %v3410_v5 = vadd.f32 %v3402_v3, %v3126_v0 }
0x11a0   : > { %v5015_v6 = vadd.f32 %v3410_v5, %v4888_v58  ;;  %v4254_v58 = vpack.c.bf16 %v2116_v15, %v2115_v14 }
0x11a2   : > { %v3412_v8 = vsel %vm2094_vm7, %v5015_v6, 0.0  ;;  %4255 = vmatpush3.bf16.msra.mxu0 %v4254_v58 }
0x11a3   : > { %3413 = vadd.xlane.f32.xlu0 %v3412_v8  ;;  %4256 = vmatprep.subr.bf16.mxu0 %v4532_v4  ;;  %v2119_v4 = vld [vmem:[%s5123_s3] sm:$0x1]  ;;  %s1089_s3 = sadd.s32 %s3718_s2, %s5137_s15 }
0x11a4   : > { %s1090_s7 = scalar_lea.vmem %s4723_s30, %s1089_s3 }
0x11a6   : > { %4258 = vmatpush3.bf16.msra.mxu0 %v4257_v19 }
0x1230   : > { %v3414_v9 = vpop.xlane.xlu0 %3413 }
0x1231   : > { %v3415_v10 = vmul.f32 0.03125, %v3414_v9 }
0x1233   : > { %v3416_v12 = vsub.f32 %v5015_v6, %v3415_v10 }
0x1235   : > { %v3417_v7 = vmul.f32 %v3416_v12, %v3416_v12 }
0x1237   : > { %v3418_v13 = vsel %vm2094_vm7, %v3417_v7, 0.0 }
0x1238   : > { %3419 = vadd.xlane.f32.xlu1 %v3418_v13 }
0x12c5   : > { %v3420_v42 = vpop.xlane.xlu1 %3419 }
0x12c6   : > { %v3421_v36 = vmul.f32 0.03125, %v3420_v42 }
0x12c8   : > { %v3422_v43 = vadd.f32 1e-05, %v3421_v36 }
0x12ca   : > { %4456 = vrsqrt.f32 %v3422_v43 }
0x12d4   : > { %v4457_v44 = vpop.eup %4456 }
0x12d5   : > { %v3424_v46 = vmul.f32 %v4457_v44, %v3416_v12 }
0x12d7   : > { %v3425_v48 = vmul.f32 %v3424_v46, %v2113_v45 }
0x12d9   : > { %v3426_v49 = vadd.f32 %v3425_v48, %v2114_v47 }
0x12db   : > { %4112 = vmatmul.mubr.msk.f32.vlgmr.msra.gmra.mrb[24].mxu0 %vm1105_vm1, %v3426_v49 }
0x13ae   : > { %v3496_v53 = vpop.f32.mrb[24].mxu0 }
0x13af   : > { %v3497_v54 = vadd.f32 %v3496_v53, %v2119_v4  ;;  %v4113_v55 = vpop.f32.mrb[25].mxu0 }
0x13b1   : > { %v3500_v56 = vmax.f32 %v3497_v54, 0.0 }
0x13b3   : > { %4147 = vmatmul.mubr.f32.vlgmr.msra.gmra.mrb[26].mxu1 %v3500_v56 }
0x1486   : > { %v3567_v59 = vpop.f32.mrb[26].mxu1 }
0x1487   : > { %v3571_v60 = vadd.f32 %v3567_v59, %v5015_v6  ;;  %v4148_v61 = vpop.f32.mrb[27].mxu1 }
0x1489   : > { %v3572_v63 = vadd.f32 %v3571_v60, %v2136_v57 }
0x148b   : > { %v3574_v18 = vmul.f32 %v3573_v62, %v3572_v63 }
0x148d   : > { %v3575_v0 = vsel %vm2094_vm7, %v3574_v18, 0.0 }
0x148e   : > { %3576 = vadd.xlane.f32.xlu0 %v3575_v0 }
0x151b   : > { %v3577_v2 = vpop.xlane.xlu0 %3576 }
0x151c   : > { %v3579_v32 = vadd.f32 %v3578_v1, %v3577_v2 }
0x151e   : > { %3581 = vst.msk [vmem:[%s1090_s7] sm:$0x1] %vm3580_vm15, %v3579_v32 }
0x151f PF: > { %s81_s23 = sadd.s32 1, %s4496_s23   ;;  %s5124_s15 = smov %s4488_s18 }
0x1520   : > { %p78_p7 = scmp.ge.s32.totalorder %s81_s23, 6   ;;  %s5125_s16 = smov %s4492_s22 }
0x1521   : > { %s5126_s18 = smov %s5129_s0  ;;  %s5127_s22 = smov %s5133_s4 }
0x1522   :  { %80 = sbr.rel (!%p78_p7) target bundleno = 64 (0x40), region = 226 }

</bundles_post_ra>
